<compile_context>
chip_gen: v6e
topology: v6e:2x2x1
jax: 0.10.0
libtpu: 0.0.40
codegen_flags: <defaults>
</compile_context>

<pallas_src>
import functools
import math

import jax
import jax.numpy as jnp
from jax.experimental import pallas as pl
from jax.experimental.pallas import tpu as pltpu

V_TH = 0.0        # TODO(synk): LIF_Act source not provided; modeled as Heaviside(x - V_TH) spike.
BN_EPS = 1e-5     # eval-mode BatchNorm1d folded (gamma=1, beta=0, running_mean=0, running_var=1)
ROW_TILE = 1024   # row tile for the fused-MLP kernels
PT_TILE = 128     # point tile for the per-point transform kernel
VMEM_LIMIT = 32 * 1024 * 1024   # conservative scoped-VMEM budget (safe on v5e/v6e/v7x)


def _cparams():
    return pltpu.CompilerParams(dimension_semantics=("parallel",),
                                vmem_limit_bytes=VMEM_LIMIT)


def _round_up(x, m):
    return ((x + m - 1) // m) * m


def _row_tiling(r, tile):
    if r <= tile:
        return r, r                   # single full block, no padding
    return tile, _round_up(r, tile)


def _pad_rows(x, rp):
    r = x.shape[0]
    if rp == r:
        return x
    return jnp.pad(x, ((0, rp - r),) + ((0, 0),) * (x.ndim - 1))


def _spike(x):
    return (x >= V_TH).astype(jnp.float32)


# ----------------------------------------------------------------------------- kernels
def _linear_kernel(x_ref, w_ref, b_ref, o_ref, *, act, logsoftmax):
    y = jnp.dot(x_ref[...].astype(w_ref.dtype), w_ref[...],
                preferred_element_type=jnp.float32) + b_ref[...]
    if act:
        y = _spike(y)
    if logsoftmax:
        m = jnp.max(y, axis=-1, keepdims=True)
        y = y - (m + jnp.log(jnp.sum(jnp.exp(y - m), axis=-1, keepdims=True)))
    o_ref[...] = y


def _mlp1_kernel(x_ref, w1_ref, b1_ref, w2_ref, b2_ref, s2_ref, t2_ref, o_ref):
    # Linear(D,H) -> spike -> [BN1 folded into w2/b2] -> Linear(H,H) -> spike -> BN2
    h = jnp.dot(x_ref[...], w1_ref[...], preferred_element_type=jnp.float32) + b1_ref[...]
    h = _spike(h)
    h = jnp.dot(h.astype(w2_ref.dtype), w2_ref[...],
                preferred_element_type=jnp.float32) + b2_ref[...]
    h = _spike(h)
    o_ref[...] = h * s2_ref[...] + t2_ref[...]


def _tnet_kernel(x_ref, wl_ref, bl_ref, wa_ref, ba_ref, wb_ref, bb_ref, o_ref):
    # Linear(D*K,K^2) -> spike -> [BN_l folded] -> convA -> spike -> [BN_a,BN_b folded] -> convB
    a = jnp.dot(x_ref[...].astype(wl_ref.dtype), wl_ref[...],
                preferred_element_type=jnp.float32) + bl_ref[...]
    a = _spike(a)
    a = jnp.dot(a.astype(wa_ref.dtype), wa_ref[...],
                preferred_element_type=jnp.float32) + ba_ref[...]
    a = _spike(a)
    o_ref[...] = jnp.dot(a.astype(wb_ref.dtype), wb_ref[...],
                         preferred_element_type=jnp.float32) + bb_ref[...]


def _xform_kernel(t3_ref, xs_ref, cvw_ref, cvb_ref, wl_ref, bl_ref, o_ref,
                  *, K, dm, Ct, act):
    # t3: (bn, K, K)   T[n, k, m]
    # xs: (bn, K, Ct)  x_star channels-last
    # cvw: (dm*K, Ct)  depthwise Conv1d weights, row j*K + l; cvb: (dm, Ct)
    # wl : (dm*Ct, Cout) final Linear (rows ordered j*Ct + c); bl: (1, Cout)
    t3 = t3_ref[...]
    xs = xs_ref[...]
    cvw = cvw_ref[...]
    cvb = cvb_ref[...]
    bn = t3.shape[0]
    # Depthwise accumulators, one per depth-multiplier slot.  The per-point transform
    # (x_star^T @ T) and the depthwise Conv1d reduce are fused: xt is never materialized.
    acc = [jnp.broadcast_to(cvb[j:j + 1, :], (bn, Ct)) for j in range(dm)]
    for m in range(K):
        # xt[:, m, :] = sum_k T[:, k, m] * xs[:, k, :]   -- pure VPU broadcast-MAC
        xt_m = jnp.sum(t3[:, :, m:m + 1] * xs, axis=1)            # (bn, Ct)
        for j in range(dm):
            acc[j] = acc[j] + cvw[j * K + m:j * K + m + 1, :] * xt_m
    # Final Linear on the implicitly flattened (bn, dm*Ct) conv output.
    wl = wl_ref[...]
    y = bl_ref[...]
    for j in range(dm):
        y = y + jnp.dot(acc[j].astype(wl.dtype), wl[j * Ct:(j + 1) * Ct, :],
                        preferred_element_type=jnp.float32)
    if act:
        y = _spike(y)                                             # outer LIF activation
    o_ref[...] = y


# ----------------------------------------------------------------------------- wrappers
def pallas_linear(x, w, b, *, act=False, logsoftmax=False):
    R, Cin = x.shape
    Cout = w.shape[1]
    bm, Rp = _row_tiling(R, ROW_TILE)
    xp = _pad_rows(x, Rp)
    out = pl.pallas_call(
        functools.partial(_linear_kernel, act=act, logsoftmax=logsoftmax),
        out_shape=jax.ShapeDtypeStruct((Rp, Cout), jnp.float32),
        grid=(Rp // bm,),
        in_specs=[
            pl.BlockSpec((bm, Cin), lambda i: (i, 0)),
            pl.BlockSpec((Cin, Cout), lambda i: (0, 0)),
            pl.BlockSpec((1, Cout), lambda i: (0, 0)),
        ],
        out_specs=pl.BlockSpec((bm, Cout), lambda i: (i, 0)),
        compiler_params=_cparams(),
    )(xp, w, b)
    return out[:R]


def pallas_mlp1(x, p):
    R, Cin = x.shape
    H = p["m1_w1"].shape[1]
    bm, Rp = _row_tiling(R, ROW_TILE)
    xp = _pad_rows(x, Rp)
    out = pl.pallas_call(
        _mlp1_kernel,
        out_shape=jax.ShapeDtypeStruct((Rp, H), jnp.float32),
        grid=(Rp // bm,),
        in_specs=[
            pl.BlockSpec((bm, Cin), lambda i: (i, 0)),
            pl.BlockSpec((Cin, H), lambda i: (0, 0)),
            pl.BlockSpec((1, H), lambda i: (0, 0)),
            pl.BlockSpec((H, H), lambda i: (0, 0)),
            pl.BlockSpec((1, H), lambda i: (0, 0)),
            pl.BlockSpec((1, H), lambda i: (0, 0)),
            pl.BlockSpec((1, H), lambda i: (0, 0)),
        ],
        out_specs=pl.BlockSpec((bm, H), lambda i: (i, 0)),
        compiler_params=_cparams(),
    )(xp, p["m1_w1"], p["m1_b1"], p["m1_w2"], p["m1_b2"], p["m1_s2"], p["m1_t2"])
    return out[:R]


def pallas_tnet(x, p):
    R, Cin = x.shape                       # Cin = K*D
    KK = p["m2_wl"].shape[1]               # K*K
    bm, Rp = _row_tiling(R, ROW_TILE)
    xp = _pad_rows(x, Rp)
    out = pl.pallas_call(
        _tnet_kernel,
        out_shape=jax.ShapeDtypeStruct((Rp, KK), jnp.float32),
        grid=(Rp // bm,),
        in_specs=[
            pl.BlockSpec((bm, Cin), lambda i: (i, 0)),
            pl.BlockSpec((Cin, KK), lambda i: (0, 0)),
            pl.BlockSpec((1, KK), lambda i: (0, 0)),
            pl.BlockSpec((KK, KK), lambda i: (0, 0)),
            pl.BlockSpec((1, KK), lambda i: (0, 0)),
            pl.BlockSpec((KK, KK), lambda i: (0, 0)),
            pl.BlockSpec((1, KK), lambda i: (0, 0)),
        ],
        out_specs=pl.BlockSpec((bm, KK), lambda i: (i, 0)),
        compiler_params=_cparams(),
    )(xp, p["m2_wl"], p["m2_bl"], p["m2_wa"], p["m2_ba"], p["m2_wb"], p["m2_bb"])
    return out[:R]


def pallas_xform(t3, x_star, p, *, act):
    N, K, Ct = x_star.shape
    dm = p["dm"]
    cout = p["cv_wl"].shape[1]
    bn, Np = _row_tiling(N, PT_TILE)
    t3p = _pad_rows(t3, Np)
    xsp = _pad_rows(x_star, Np)
    out = pl.pallas_call(
        functools.partial(_xform_kernel, K=K, dm=dm, Ct=Ct, act=act),
        out_shape=jax.ShapeDtypeStruct((Np, cout), jnp.float32),
        grid=(Np // bn,),
        in_specs=[
            pl.BlockSpec((bn, K, K), lambda i: (i, 0, 0)),
            pl.BlockSpec((bn, K, Ct), lambda i: (i, 0, 0)),
            pl.BlockSpec((dm * K, Ct), lambda i: (0, 0)),
            pl.BlockSpec((dm, Ct), lambda i: (0, 0)),
            pl.BlockSpec((dm * Ct, cout), lambda i: (0, 0)),
            pl.BlockSpec((1, cout), lambda i: (0, 0)),
        ],
        out_specs=pl.BlockSpec((bn, cout), lambda i: (i, 0)),
        compiler_params=_cparams(),
    )(t3p, xsp, p["cv_w"], p["cv_b"], p["cv_wl"], p["cv_bl"])
    return out[:N]


# ----------------------------------------------------------------------------- graph glue (plain JAX)
def knn_cols(pos, batch, K, dilation):
    # knn_graph(pos, K*dilation, loop=True, flow='target_to_source') then [:, ::dilation]
    d2 = jnp.sum((pos[:, None, :] - pos[None, :, :]) ** 2, axis=-1)
    d2 = jnp.where(batch[:, None] == batch[None, :], d2, jnp.inf)
    order = jnp.argsort(d2, axis=-1)
    return order[:, : K * dilation : dilation]          # (N, K)


def _fps_single(p, m):
    def body(i, carry):
        sel, dist = carry
        nxt = jnp.argmax(dist).astype(jnp.int32)
        sel = sel.at[i].set(nxt)
        dist = jnp.minimum(dist, jnp.sum((p - p[nxt]) ** 2, axis=-1))
        return sel, dist

    sel0 = jnp.zeros((m,), jnp.int32)
    dist0 = jnp.sum((p - p[0]) ** 2, axis=-1)
    sel, _ = jax.lax.fori_loop(1, m, body, (sel0, dist0))
    return sel


def fps(pos, batch_counts, ratio):
    # deterministic start (node 0 of each graph) instead of torch_geometric's random start
    idxs, new_counts, start = [], [], 0
    for nb in batch_counts:
        m = int(math.ceil(ratio * nb))
        sel = _fps_single(pos[start:start + nb], m)
        idxs.append(sel + start)
        new_counts.append(m)
        start += nb
    return jnp.concatenate(idxs), new_counts


def global_mean_pool(x, batch, num_graphs):
    sums = jax.ops.segment_sum(x, batch, num_segments=num_graphs)
    cnts = jax.ops.segment_sum(jnp.ones((x.shape[0], 1), jnp.float32), batch,
                               num_segments=num_graphs)
    return sums / cnts


# ----------------------------------------------------------------------------- parameters
def _uniform(key, shape, bound):
    return jax.random.uniform(key, shape, jnp.float32, -bound, bound)


def _bn_scale_shift(c):
    # eval-mode BatchNorm1d with default stats (placeholder): y = x * s + t
    s = jnp.full((c,), 1.0 / math.sqrt(1.0 + BN_EPS), jnp.float32)
    t = jnp.zeros((c,), jnp.float32)
    return s, t


def _block_diag_conv(w):
    # w: (G, M, L) grouped-Conv1d(G, G*M, L, groups=G) weights  ->  (G*L, G*M) block-diag
    # matmul weight: out[g*M+m] = sum_l w[g,m,l] * in[g*L+l].
    G, M, L = w.shape
    big = jnp.zeros((G * L, G * M), jnp.float32)
    for g in range(G):
        big = big.at[g * L:(g + 1) * L, g * M:(g + 1) * M].set(w[g].T)
    return big


def init_xconv(key, cin, cout, D, K, hidden):
    Ct = cin + hidden
    dm = int(math.ceil(cout / Ct))
    ks = jax.random.split(key, 14)
    p = {"K": K, "D": D, "hidden": hidden, "Ct": Ct, "dm": dm}

    # ---- mlp1: Linear(D,H) -> spike -> BN1 -> Linear(H,H) -> spike -> BN2
    bw = 1.0 / math.sqrt(D)
    w1 = _uniform(ks[0], (D, hidden), bw)
    b1 = _uniform(ks[1], (hidden,), bw)
    bw = 1.0 / math.sqrt(hidden)
    w2 = _uniform(ks[2], (hidden, hidden), bw)
    b2 = _uniform(ks[3], (hidden,), bw)
    s1, t1 = _bn_scale_shift(hidden)
    s2, t2 = _bn_scale_shift(hidden)
    p["m1_w1"] = w1                                   # tiny (D,H) matmul kept in f32
    p["m1_b1"] = b1.reshape(1, hidden)
    p["m1_w2"] = (s1[:, None] * w2).astype(jnp.bfloat16)   # BN1 folded into Linear2
    p["m1_b2"] = (b2 + t1 @ w2).reshape(1, hidden)
    p["m1_s2"] = s2.reshape(1, hidden)
    p["m1_t2"] = t2.reshape(1, hidden)

    # ---- mlp2 / T-net: Linear(D*K,K^2) -> spike -> BN -> convA -> spike -> BN -> convB -> BN
    KK = K * K
    bw = 1.0 / math.sqrt(D * K)
    wl = _uniform(ks[4], (D * K, KK), bw)
    bl = _uniform(ks[5], (KK,), bw)
    sl, tl = _bn_scale_shift(KK)
    bw = 1.0 / math.sqrt(K)                           # grouped Conv1d fan-in = 1 * K
    wa = _block_diag_conv(_uniform(ks[6], (K, K, K), bw))
    ba = _uniform(ks[7], (KK,), bw)
    sa, ta = _bn_scale_shift(KK)
    wb = _block_diag_conv(_uniform(ks[8], (K, K, K), bw))
    bb = _uniform(ks[9], (KK,), bw)
    sb, tb = _bn_scale_shift(KK)
    p["m2_wl"] = wl.astype(jnp.bfloat16)
    p["m2_bl"] = bl.reshape(1, KK)
    p["m2_wa"] = (sl[:, None] * wa).astype(jnp.bfloat16)        # BN_l folded into convA
    p["m2_ba"] = (ba + tl @ wa).reshape(1, KK)
    p["m2_wb"] = ((sa[:, None] * wb) * sb[None, :]).astype(jnp.bfloat16)  # BN_a + BN_b folded
    p["m2_bb"] = ((bb + ta @ wb) * sb + tb).reshape(1, KK)

    # ---- conv: depthwise Conv1d(Ct, Ct*dm, K, groups=Ct) + Linear(Ct*dm, cout)
    bw = 1.0 / math.sqrt(K)
    p["cv_w"] = _uniform(ks[10], (dm * K, Ct), bw)    # row j*K + l, column c
    p["cv_b"] = _uniform(ks[11], (dm, Ct), bw)
    bw = 1.0 / math.sqrt(Ct * dm)
    p["cv_wl"] = _uniform(ks[12], (dm * Ct, cout), bw).astype(jnp.bfloat16)  # row j*Ct + c
    p["cv_bl"] = _uniform(ks[13], (cout,), bw).reshape(1, cout)
    return p


def init_model_params(key, num_classes):
    ks = jax.random.split(key, 7)
    params = {
        "c1": init_xconv(ks[0], 0, 48, 3, 8, 32),
        "c2": init_xconv(ks[1], 48, 96, 3, 12, 64),
        "c3": init_xconv(ks[2], 96, 192, 3, 16, 128),
        "c4": init_xconv(ks[3], 192, 384, 3, 16, 256),
    }

    def lin(k, cin, cout):
        k1, k2 = jax.random.split(k)
        bw = 1.0 / math.sqrt(cin)
        return _uniform(k1, (cin, cout), bw), _uniform(k2, (cout,), bw).reshape(1, cout)

    params["l1_w"], params["l1_b"] = lin(ks[4], 384, 256)
    params["l2_w"], params["l2_b"] = lin(ks[5], 256, 128)
    params["l3_w"], params["l3_b"] = lin(ks[6], 128, num_classes)
    return params


# ----------------------------------------------------------------------------- Spike_XConv / Spike_PointCNN
def spike_xconv(p, x, pos, batch, dilation, out_act=True):
    N, D = pos.shape
    K, hidden = p["K"], p["hidden"]

    col = knn_cols(pos, batch, K, dilation)              # (N, K) neighbors (loop=True: includes self)
    colf = col.reshape(-1)
    row = jnp.repeat(jnp.arange(N), K)
    pos_rel = pos[colf] - pos[row]                       # (N*K, D)

    # mlp1 (fused) -> x_star (N, K, C_delta) channels-last, concat gathered features
    h = pallas_mlp1(pos_rel, p)
    x_star = h.reshape(N, K, hidden)
    if x is not None:
        x_star = jnp.concatenate([x_star, x[colf].reshape(N, K, x.shape[1])], axis=-1)

    # mlp2 / T-net (fused, lane-dense (N, K*K))
    t_flat = pallas_tnet(pos_rel.reshape(N, K * D), p)
    t3 = t_flat.reshape(N, K, K)                         # T[n, k, m]

    # fused per-point transform + depthwise Conv1d + Linear (+ outer LIF spike)
    return pallas_xform(t3, x_star, p, act=out_act)


def spike_pointcnn_forward(params, pos, batch, batch_counts, num_graphs):
    x = spike_xconv(params["c1"], None, pos, batch, dilation=1)
    idx, batch_counts = fps(pos, batch_counts, 0.375)
    x, pos, batch = x[idx], pos[idx], batch[idx]
    x = spike_xconv(params["c2"], x, pos, batch, dilation=2)
    idx, batch_counts = fps(pos, batch_counts, 0.334)
    x, pos, batch = x[idx], pos[idx], batch[idx]
    x = spike_xconv(params["c3"], x, pos, batch, dilation=2)
    x = spike_xconv(params["c4"], x, pos, batch, dilation=2)
    x = global_mean_pool(x, batch, num_graphs)
    x = pallas_linear(x, params["l1_w"], params["l1_b"], act=True)
    x = pallas_linear(x, params["l2_w"], params["l2_b"], act=True)
    # TODO(synk): F.dropout(p=0.5) omitted -- inference-mode forward (identity).
    x = pallas_linear(x, params["l3_w"], params["l3_b"], act=False, logsoftmax=True)
    return x


if __name__ == "__main__":
    NUM_CLASSES = 10
    B, NPTS = 2, 256                                     # 256 pts/graph so every knn has enough neighbors
    key = jax.random.PRNGKey(0)
    kpos, kpar = jax.random.split(key)
    pos = jax.random.uniform(kpos, (B * NPTS, 3), jnp.float32, -1.0, 1.0)
    batch = jnp.repeat(jnp.arange(B, dtype=jnp.int32), NPTS)
    params = init_model_params(kpar, NUM_CLASSES)

    out = spike_pointcnn_forward(params, pos, batch, [NPTS] * B, B)
    out = jax.block_until_ready(out)
    assert out.shape == (B, NUM_CLASSES)
    assert bool(jnp.all(jnp.isfinite(out)))
    print("KERNEL_OK")
</pallas_src>

<mosaic_0001>
module attributes {stable_mosaic.version = 11 : i64} {
  func.func @_mlp1_kernel(%arg0: i32, %arg1: memref<1024x3xf32, #tpu.memory_space<vmem>>, %arg2: memref<3x32xf32, #tpu.memory_space<vmem>>, %arg3: memref<1x32xf32, #tpu.memory_space<vmem>>, %arg4: memref<32x32xbf16, #tpu.memory_space<vmem>>, %arg5: memref<1x32xf32, #tpu.memory_space<vmem>>, %arg6: memref<1x32xf32, #tpu.memory_space<vmem>>, %arg7: memref<1x32xf32, #tpu.memory_space<vmem>>, %arg8: memref<1024x32xf32, #tpu.memory_space<vmem>>) attributes {dimension_semantics = [#tpu.dimension_semantics<parallel>], iteration_bounds = array<i64: 4>, scalar_prefetch = 0 : i64, scratch_operands = 0 : i64, tpu.core_type = #tpu.core_type<tc>, window_params = [{transform_indices = @transform_0, window_bounds = array<i64: 1024, 3>}, {pipeline_mode = #tpu.pipeline_mode<synchronous>, transform_indices = @transform_1, window_bounds = array<i64: 3, 32>}, {pipeline_mode = #tpu.pipeline_mode<synchronous>, transform_indices = @transform_2, window_bounds = array<i64: 1, 32>}, {pipeline_mode = #tpu.pipeline_mode<synchronous>, transform_indices = @transform_3, window_bounds = array<i64: 32, 32>}, {pipeline_mode = #tpu.pipeline_mode<synchronous>, transform_indices = @transform_4, window_bounds = array<i64: 1, 32>}, {pipeline_mode = #tpu.pipeline_mode<synchronous>, transform_indices = @transform_5, window_bounds = array<i64: 1, 32>}, {pipeline_mode = #tpu.pipeline_mode<synchronous>, transform_indices = @transform_6, window_bounds = array<i64: 1, 32>}, {transform_indices = @transform_7, window_bounds = array<i64: 1024, 32>}]} {
    %c0 = arith.constant 0 : index
    %c0_0 = arith.constant 0 : index
    %0 = vector.load %arg1[%c0, %c0_0] : memref<1024x3xf32, #tpu.memory_space<vmem>>, vector<1024x3xf32>
    %c0_1 = arith.constant 0 : index
    %c0_2 = arith.constant 0 : index
    %1 = vector.load %arg2[%c0_1, %c0_2] : memref<3x32xf32, #tpu.memory_space<vmem>>, vector<3x32xf32>
    %cst = arith.constant dense<0.000000e+00> : vector<1024x32xf32>
    %2 = tpu.matmul %0, %1, %cst {dimension_numbers = #tpu.dot_dimension_numbers<[1], [0], [0], [1], [0, 0, 1, 1], [], []>} : vector<1024x3xf32>, vector<3x32xf32>, vector<1024x32xf32> -> vector<1024x32xf32>
    %c0_3 = arith.constant 0 : index
    %c0_4 = arith.constant 0 : index
    %3 = vector.load %arg3[%c0_3, %c0_4] : memref<1x32xf32, #tpu.memory_space<vmem>>, vector<1x32xf32>
    %4 = vector.broadcast %3 : vector<1x32xf32> to vector<1024x32xf32>
    %5 = arith.addf %2, %4 : vector<1024x32xf32>
    %cst_5 = arith.constant 0.000000e+00 : f32
    %6 = vector.broadcast %cst_5 : f32 to vector<1024x32xf32>
    %7 = arith.cmpf oge, %5, %6 : vector<1024x32xf32>
    %8 = arith.extui %7 : vector<1024x32xi1> to vector<1024x32xi32>
    %9 = arith.sitofp %8 : vector<1024x32xi32> to vector<1024x32xf32>
    %10 = arith.truncf %9 : vector<1024x32xf32> to vector<1024x32xbf16>
    %c0_6 = arith.constant 0 : index
    %c0_7 = arith.constant 0 : index
    %11 = vector.load %arg4[%c0_6, %c0_7] : memref<32x32xbf16, #tpu.memory_space<vmem>>, vector<32x32xbf16>
    %cst_8 = arith.constant dense<0.000000e+00> : vector<1024x32xf32>
    %12 = tpu.matmul %10, %11, %cst_8 {dimension_numbers = #tpu.dot_dimension_numbers<[1], [0], [0], [1], [0, 0, 1, 1], [], []>} : vector<1024x32xbf16>, vector<32x32xbf16>, vector<1024x32xf32> -> vector<1024x32xf32>
    %c0_9 = arith.constant 0 : index
    %c0_10 = arith.constant 0 : index
    %13 = vector.load %arg5[%c0_9, %c0_10] : memref<1x32xf32, #tpu.memory_space<vmem>>, vector<1x32xf32>
    %14 = vector.broadcast %13 : vector<1x32xf32> to vector<1024x32xf32>
    %15 = arith.addf %12, %14 : vector<1024x32xf32>
    %cst_11 = arith.constant 0.000000e+00 : f32
    %16 = vector.broadcast %cst_11 : f32 to vector<1024x32xf32>
    %17 = arith.cmpf oge, %15, %16 : vector<1024x32xf32>
    %18 = arith.extui %17 : vector<1024x32xi1> to vector<1024x32xi32>
    %19 = arith.sitofp %18 : vector<1024x32xi32> to vector<1024x32xf32>
    %c0_12 = arith.constant 0 : index
    %c0_13 = arith.constant 0 : index
    %20 = vector.load %arg6[%c0_12, %c0_13] : memref<1x32xf32, #tpu.memory_space<vmem>>, vector<1x32xf32>
    %21 = vector.broadcast %20 : vector<1x32xf32> to vector<1024x32xf32>
    %22 = arith.mulf %19, %21 : vector<1024x32xf32>
    %c0_14 = arith.constant 0 : index
    %c0_15 = arith.constant 0 : index
    %23 = vector.load %arg7[%c0_14, %c0_15] : memref<1x32xf32, #tpu.memory_space<vmem>>, vector<1x32xf32>
    %24 = vector.broadcast %23 : vector<1x32xf32> to vector<1024x32xf32>
    %25 = arith.addf %22, %24 : vector<1024x32xf32>
    %c0_16 = arith.constant 0 : index
    %c0_17 = arith.constant 0 : index
    %26 = vector.load %arg8[%c0_16, %c0_17] : memref<1024x32xf32, #tpu.memory_space<vmem>>, vector<1024x32xf32>
    tpu.vector_store %arg8[%c0_16, %c0_17], %25 {strides = array<i32>} : memref<1024x32xf32, #tpu.memory_space<vmem>>, vector<1024x32xf32>,
    return
  }
  func.func @transform_0(%arg0: i32) -> (i32, i32) {
    %c0_i32 = arith.constant 0 : i32
    %c0_i32_0 = arith.constant 0 : i32
    return %arg0, %c0_i32 : i32, i32
  }
  func.func @transform_1(%arg0: i32) -> (i32, i32) {
    %c0_i32 = arith.constant 0 : i32
    %c0_i32_0 = arith.constant 0 : i32
    %c0_i32_1 = arith.constant 0 : i32
    return %c0_i32, %c0_i32_0 : i32, i32
  }
  func.func @transform_2(%arg0: i32) -> (i32, i32) {
    %c0_i32 = arith.constant 0 : i32
    %c0_i32_0 = arith.constant 0 : i32
    %c0_i32_1 = arith.constant 0 : i32
    return %c0_i32, %c0_i32_0 : i32, i32
  }
  func.func @transform_3(%arg0: i32) -> (i32, i32) {
    %c0_i32 = arith.constant 0 : i32
    %c0_i32_0 = arith.constant 0 : i32
    %c0_i32_1 = arith.constant 0 : i32
    return %c0_i32, %c0_i32_0 : i32, i32
  }
  func.func @transform_4(%arg0: i32) -> (i32, i32) {
    %c0_i32 = arith.constant 0 : i32
    %c0_i32_0 = arith.constant 0 : i32
    %c0_i32_1 = arith.constant 0 : i32
    return %c0_i32, %c0_i32_0 : i32, i32
  }
  func.func @transform_5(%arg0: i32) -> (i32, i32) {
    %c0_i32 = arith.constant 0 : i32
    %c0_i32_0 = arith.constant 0 : i32
    %c0_i32_1 = arith.constant 0 : i32
    return %c0_i32, %c0_i32_0 : i32, i32
  }
  func.func @transform_6(%arg0: i32) -> (i32, i32) {
    %c0_i32 = arith.constant 0 : i32
    %c0_i32_0 = arith.constant 0 : i32
    %c0_i32_1 = arith.constant 0 : i32
    return %c0_i32, %c0_i32_0 : i32, i32
  }
  func.func @transform_7(%arg0: i32) -> (i32, i32) {
    %c0_i32 = arith.constant 0 : i32
    %c0_i32_0 = arith.constant 0 : i32
    return %arg0, %c0_i32 : i32, i32
  }
}

</mosaic_0001>

<bundles_post_ra>
// kernel: tpu_custom_call.1
= control target key start
LH: loop header
LB: loop body
LE: loop exit
PB: predicated region body
PF: predicated region fallthrough
CT: control target
= control target key end

     0   :  { %s4611_s24 = smov 0   ;;  %s6032_s0 = inlined_call_operand.vmem [shape: f32[4096,3], index: 0, kind: input, shape index: {}]   ;;  %s6033_s1 = inlined_call_operand.vmem [shape: f32[3,32], index: 1, kind: input, shape index: {}]   ;;  %s6034_s2 = inlined_call_operand.vmem [shape: f32[1,32], index: 2, kind: input, shape index: {}]   ;;  %s6035_s3 = inlined_call_operand.vmem [shape: bf16[32,32], index: 3, kind: input, shape index: {}]   ;;  %s6036_s4 = inlined_call_operand.vmem [shape: f32[1,32], index: 4, kind: input, shape index: {}]   ;;  %s6037_s5 = inlined_call_operand.vmem [shape: f32[1,32], index: 5, kind: input, shape index: {}]   ;;  %s6038_s6 = inlined_call_operand.vmem [shape: f32[1,32], index: 6, kind: input, shape index: {}]   ;;  %s6039_s7 = inlined_call_operand.vmem [shape: f32[4096,32], index: 7, kind: output, shape index: {}]  }
   0x1 LB: > { %s3560_s25 = sadd.s32 4294967295, %s4568_s24   ;;  %p3564_p0 = scmp.ge.s32.totalorder %s4568_s24, 1  ;;  %s4568_s24 = sphi %s4611_s24, %s17_s24  }
   0x2   : > { %p238_p1 = scmp.lt.s32.totalorder %s4568_s24, 5 }
   0x4   : > { %p239_p2 = pnand %p3564_p0, %p238_p1 }
   0x5   : > { %s3565_s28 = sshll.u32 (!%p239_p2), %s3560_s25, 7 }
   0x6   : > { %242 = sbr.rel (%p239_p2) target bundleno = 680 (0x2a8), region = 48  ;;  %p271_p3 = scmp.lt.s32.totalorder (!%p239_p2), %s3565_s28, 511 }
   0xb   : > { %v411_v0 = vld [vmem:[%s6033_s1] sm:$0x7]  ;;  %vm804_vm0 = vcmask 1042432   ;;  %s6041_s28 = smov (!%p271_p3, %s3565_s28), 511  ;;  %vm419_vm1 = vcmask 23552   ;;  %v4556_v38 = vld [vmem:[%s6035_s3 + $0x8] sm:$0xff]  }
   0xc   : > { %4221 = vmatprep.subr.msk.mxu0 %vm804_vm0, %v411_v0  ;;  %s3566_s29 = sshll.u32 %s6041_s28, 3  ;;  %4415 = vmatprep.subr.bf16.mxu1 %v4556_v38  ;;  %v4557_v41 = vld [vmem:[%s6035_s3] sm:$0xff]   ;;  %vm1984_vm4 = vcmask 261120  }
   0xd   : > { %4222 = vmatpush3.msk.msra.mxu0 %vm804_vm0, %v411_v0  ;;  %s4630_s9 = scalar_lea.vmem %s6032_s0, %s3566_s29  ;;  %4416 = vmatpush3.bf16.msra.mxu1 %v4556_v38  ;;  %s5189_s27 = scalar_lea.vmem %s6039_s7, %s3566_s29 }
   0xe   : > { %v283_v1 = vld [vmem:[%s4630_s9] sm:$0xff]  ;;  %v284_v2 = vld [vmem:[%s4630_s9 + $0x8] sm:$0xff]  ;;  %v285_v3 = vld [vmem:[%s4630_s9 + $0x10] sm:$0xff]  ;;  %4417 = vmatprep.subr.bf16.mxu1 %v4557_v41 }
   0xf   : > { %4223 = vmatprep.mubr.msk.f32.mxu0 %vm419_vm1, %v283_v1  ;;  %v286_v4 = vld [vmem:[%s4630_s9 + $0x18] sm:$0xff]  ;;  %v287_v5 = vld [vmem:[%s4630_s9 + $0x20] sm:$0xff]  ;;  %v288_v6 = vld [vmem:[%s4630_s9 + $0x28] sm:$0xff] }
  0x10   : > { %4224 = vmatmul.mubr.msk.f32.vlgmr.msra.gmra.mxu0 %vm419_vm1, %v284_v2  ;;  %v289_v7 = vld [vmem:[%s4630_s9 + $0x30] sm:$0xff]  ;;  %v290_v8 = vld [vmem:[%s4630_s9 + $0x38] sm:$0xff]  ;;  %v291_v9 = vld [vmem:[%s4630_s9 + $0x40] sm:$0xff] }
  0x11   : > { %4226 = vmatprep.mubr.msk.f32.mxu0 %vm419_vm1, %v285_v3  ;;  %v292_v10 = vld [vmem:[%s4630_s9 + $0x48] sm:$0xff]  ;;  %v293_v11 = vld [vmem:[%s4630_s9 + $0x50] sm:$0xff]  ;;  %v294_v12 = vld [vmem:[%s4630_s9 + $0x58] sm:$0xff]  ;;  %4418 = vmatpush3.bf16.msra.mxu1 %v4557_v41 }
  0x12   : > { %v295_v13 = vld [vmem:[%s4630_s9 + $0x60] sm:$0xff]  ;;  %v296_v14 = vld [vmem:[%s4630_s9 + $0x68] sm:$0xff]  ;;  %v297_v15 = vld [vmem:[%s4630_s9 + $0x70] sm:$0xff] }
  0x13   : > { %v298_v16 = vld [vmem:[%s4630_s9 + $0x78] sm:$0xff]  ;;  %v299_v17 = vld [vmem:[%s4630_s9 + $0x80] sm:$0xff]  ;;  %v300_v18 = vld [vmem:[%s4630_s9 + $0x88] sm:$0xff] }
  0x14   : > { %4227 = vmatmul.mubr.msk.f32.gmra.mxu0 %vm419_vm1, %v286_v4  ;;  %v301_v19 = vld [vmem:[%s4630_s9 + $0x90] sm:$0xff]  ;;  %v302_v20 = vld [vmem:[%s4630_s9 + $0x98] sm:$0xff]  ;;  %v303_v21 = vld [vmem:[%s4630_s9 + $0xa0] sm:$0xff] }
  0x15   : > { %4229 = vmatprep.mubr.msk.f32.mxu0 %vm419_vm1, %v287_v5  ;;  %v304_v22 = vld [vmem:[%s4630_s9 + $0xa8] sm:$0xff]  ;;  %v305_v23 = vld [vmem:[%s4630_s9 + $0xb0] sm:$0xff]  ;;  %v306_v24 = vld [vmem:[%s4630_s9 + $0xb8] sm:$0xff] }
  0x16   : > { %v307_v25 = vld [vmem:[%s4630_s9 + $0xc0] sm:$0xff]  ;;  %v308_v26 = vld [vmem:[%s4630_s9 + $0xc8] sm:$0xff]  ;;  %v309_v27 = vld [vmem:[%s4630_s9 + $0xd0] sm:$0xff] }
  0x17   : > { %v310_v28 = vld [vmem:[%s4630_s9 + $0xd8] sm:$0xff]  ;;  %v311_v29 = vld [vmem:[%s4630_s9 + $0xe0] sm:$0xff]  ;;  %v312_v30 = vld [vmem:[%s4630_s9 + $0xe8] sm:$0xff] }
  0x18   : > { %4230 = vmatmul.mubr.msk.f32.gmra.mxu0 %vm419_vm1, %v288_v6  ;;  %v313_v31 = vld [vmem:[%s4630_s9 + $0xf0] sm:$0xff]  ;;  %v314_v32 = vld [vmem:[%s4630_s9 + $0xf8] sm:$0xff]  ;;  %v315_v33 = vld [vmem:[%s4630_s9 + $0x100] sm:$0xff] }
  0x19   : > { %4232 = vmatprep.mubr.msk.f32.mxu0 %vm419_vm1, %v289_v7  ;;  %v316_v34 = vld [vmem:[%s4630_s9 + $0x108] sm:$0xff]  ;;  %v317_v35 = vld [vmem:[%s4630_s9 + $0x110] sm:$0xff]  ;;  %v318_v36 = vld [vmem:[%s4630_s9 + $0x118] sm:$0xff] }
  0x1a   : > { %v319_v37 = vld [vmem:[%s4630_s9 + $0x120] sm:$0xff]  ;;  %v320_v39 = vld [vmem:[%s4630_s9 + $0x128] sm:$0xff]  ;;  %v321_v40 = vld [vmem:[%s4630_s9 + $0x130] sm:$0xff] }
  0x1b   : > { %v322_v42 = vld [vmem:[%s4630_s9 + $0x138] sm:$0xff]  ;;  %v323_v43 = vld [vmem:[%s4630_s9 + $0x140] sm:$0xff]  ;;  %v324_v44 = vld [vmem:[%s4630_s9 + $0x148] sm:$0xff] }
  0x1c   : > { %4233 = vmatmul.mubr.msk.f32.gmra.mxu0 %vm419_vm1, %v290_v8  ;;  %v325_v45 = vld [vmem:[%s4630_s9 + $0x150] sm:$0xff]  ;;  %v326_v46 = vld [vmem:[%s4630_s9 + $0x158] sm:$0xff]  ;;  %v327_v47 = vld [vmem:[%s4630_s9 + $0x160] sm:$0xff] }
  0x1d   : > { %4235 = vmatprep.mubr.msk.f32.mxu0 %vm419_vm1, %v291_v9  ;;  %v328_v48 = vld [vmem:[%s4630_s9 + $0x168] sm:$0xff]  ;;  %v329_v49 = vld [vmem:[%s4630_s9 + $0x170] sm:$0xff]  ;;  %v330_v50 = vld [vmem:[%s4630_s9 + $0x178] sm:$0xff] }
  0x1e   : > { %v331_v51 = vld [vmem:[%s4630_s9 + $0x180] sm:$0xff]  ;;  %v332_v52 = vld [vmem:[%s4630_s9 + $0x188] sm:$0xff]  ;;  %v333_v53 = vld [vmem:[%s4630_s9 + $0x190] sm:$0xff] }
  0x1f   : > { %v334_v54 = vld [vmem:[%s4630_s9 + $0x198] sm:$0xff]  ;;  %v335_v55 = vld [vmem:[%s4630_s9 + $0x1a0] sm:$0xff]  ;;  %v336_v56 = vld [vmem:[%s4630_s9 + $0x1a8] sm:$0xff] }
  0x20   : > { %4236 = vmatmul.mubr.msk.f32.gmra.mxu0 %vm419_vm1, %v292_v10  ;;  %v337_v57 = vld [vmem:[%s4630_s9 + $0x1b0] sm:$0xff]  ;;  %v338_v58 = vld [vmem:[%s4630_s9 + $0x1b8] sm:$0xff]  ;;  %v339_v59 = vld [vmem:[%s4630_s9 + $0x1c0] sm:$0xff] }
  0x21   : > { %4238 = vmatprep.mubr.msk.f32.mxu0 %vm419_vm1, %v293_v11  ;;  %v340_v60 = vld [vmem:[%s4630_s9 + $0x1c8] sm:$0xff]  ;;  %v341_v61 = vld [vmem:[%s4630_s9 + $0x1d0] sm:$0xff]  ;;  %v342_v62 = vld [vmem:[%s4630_s9 + $0x1d8] sm:$0xff] }
  0x22   : > { %v343_v63 = vld [vmem:[%s4630_s9 + $0x1e0] sm:$0xff]  ;;  %v344_v0 = vld [vmem:[%s4630_s9 + $0x1e8] sm:$0xff]  ;;  %v345_v1 = vld [vmem:[%s4630_s9 + $0x1f0] sm:$0xff] }
  0x23   : > { %v346_v2 = vld [vmem:[%s4630_s9 + $0x1f8] sm:$0xff]  ;;  %v347_v3 = vld [vmem:[%s4630_s9 + $0x200] sm:$0xff]  ;;  %v348_v4 = vld [vmem:[%s4630_s9 + $0x208] sm:$0xff] }
  0x24   : > { %4239 = vmatmul.mubr.msk.f32.gmra.mxu0 %vm419_vm1, %v294_v12  ;;  %v349_v5 = vld [vmem:[%s4630_s9 + $0x210] sm:$0xff]  ;;  %v350_v6 = vld [vmem:[%s4630_s9 + $0x218] sm:$0xff]  ;;  %v351_v7 = vld [vmem:[%s4630_s9 + $0x220] sm:$0xff] }
  0x25   : > { %4241 = vmatprep.mubr.msk.f32.mxu0 %vm419_vm1, %v295_v13  ;;  %v352_v8 = vld [vmem:[%s4630_s9 + $0x228] sm:$0xff]  ;;  %v353_v9 = vld [vmem:[%s4630_s9 + $0x230] sm:$0xff]  ;;  %v354_v10 = vld [vmem:[%s4630_s9 + $0x238] sm:$0xff] }
  0x26   : > { %v355_v11 = vld [vmem:[%s4630_s9 + $0x240] sm:$0xff]  ;;  %v356_v12 = vld [vmem:[%s4630_s9 + $0x248] sm:$0xff]  ;;  %v357_v13 = vld [vmem:[%s4630_s9 + $0x250] sm:$0xff] }
  0x27   : > { %v381_v38 = vld [vmem:[%s4630_s9 + $0x310] sm:$0xff]  ;;  %v382_v41 = vld [vmem:[%s4630_s9 + $0x318] sm:$0xff] }
  0x28   : > { %4242 = vmatmul.mubr.msk.f32.gmra.mxu0 %vm419_vm1, %v296_v14  ;;  %v358_v14 = vld [vmem:[%s4630_s9 + $0x258] sm:$0xff] }
  0x29   : > { %4244 = vmatprep.mubr.msk.f32.mxu0 %vm419_vm1, %v297_v15  ;;  %v359_v15 = vld [vmem:[%s4630_s9 + $0x260] sm:$0xff] }
  0x2c   : > { %4245 = vmatmul.mubr.msk.f32.gmra.mxu0 %vm419_vm1, %v298_v16  ;;  %v360_v16 = vld [vmem:[%s4630_s9 + $0x268] sm:$0xff] }
  0x2d   : > { %4247 = vmatprep.mubr.msk.f32.mxu0 %vm419_vm1, %v299_v17  ;;  %v361_v17 = vld [vmem:[%s4630_s9 + $0x270] sm:$0xff] }
  0x30   : > { %4248 = vmatmul.mubr.msk.f32.gmra.mxu0 %vm419_vm1, %v300_v18  ;;  %v362_v18 = vld [vmem:[%s4630_s9 + $0x278] sm:$0xff] }
  0x31   : > { %4250 = vmatprep.mubr.msk.f32.mxu0 %vm419_vm1, %v301_v19  ;;  %v363_v19 = vld [vmem:[%s4630_s9 + $0x280] sm:$0xff] }
  0x34   : > { %4251 = vmatmul.mubr.msk.f32.gmra.mxu0 %vm419_vm1, %v302_v20  ;;  %v364_v20 = vld [vmem:[%s4630_s9 + $0x288] sm:$0xff] }
  0x35   : > { %4253 = vmatprep.mubr.msk.f32.mxu0 %vm419_vm1, %v303_v21  ;;  %v365_v21 = vld [vmem:[%s4630_s9 + $0x290] sm:$0xff] }
  0x38   : > { %4254 = vmatmul.mubr.msk.f32.gmra.mxu0 %vm419_vm1, %v304_v22  ;;  %v366_v22 = vld [vmem:[%s4630_s9 + $0x298] sm:$0xff] }
  0x39   : > { %4256 = vmatprep.mubr.msk.f32.mxu0 %vm419_vm1, %v305_v23  ;;  %v367_v23 = vld [vmem:[%s4630_s9 + $0x2a0] sm:$0xff] }
  0x3c   : > { %4257 = vmatmul.mubr.msk.f32.gmra.mxu0 %vm419_vm1, %v306_v24  ;;  %v368_v24 = vld [vmem:[%s4630_s9 + $0x2a8] sm:$0xff] }
  0x3d   : > { %4259 = vmatprep.mubr.msk.f32.mxu0 %vm419_vm1, %v307_v25  ;;  %v369_v25 = vld [vmem:[%s4630_s9 + $0x2b0] sm:$0xff] }
  0x40   : > { %4260 = vmatmul.mubr.msk.f32.gmra.mxu0 %vm419_vm1, %v308_v26  ;;  %v370_v26 = vld [vmem:[%s4630_s9 + $0x2b8] sm:$0xff] }
  0x41   : > { %4262 = vmatprep.mubr.msk.f32.mxu0 %vm419_vm1, %v309_v27  ;;  %v371_v27 = vld [vmem:[%s4630_s9 + $0x2c0] sm:$0xff] }
  0x44   : > { %4263 = vmatmul.mubr.msk.f32.gmra.mxu0 %vm419_vm1, %v310_v28  ;;  %v372_v28 = vld [vmem:[%s4630_s9 + $0x2c8] sm:$0xff] }
  0x45   : > { %4265 = vmatprep.mubr.msk.f32.mxu0 %vm419_vm1, %v311_v29  ;;  %v373_v29 = vld [vmem:[%s4630_s9 + $0x2d0] sm:$0xff] }
  0x48   : > { %4266 = vmatmul.mubr.msk.f32.gmra.mxu0 %vm419_vm1, %v312_v30  ;;  %v374_v30 = vld [vmem:[%s4630_s9 + $0x2d8] sm:$0xff] }
  0x49   : > { %4268 = vmatprep.mubr.msk.f32.mxu0 %vm419_vm1, %v313_v31  ;;  %v375_v31 = vld [vmem:[%s4630_s9 + $0x2e0] sm:$0xff] }
  0x4c   : > { %4269 = vmatmul.mubr.msk.f32.gmra.mxu0 %vm419_vm1, %v314_v32  ;;  %v376_v32 = vld [vmem:[%s4630_s9 + $0x2e8] sm:$0xff] }
  0x4d   : > { %4271 = vmatprep.mubr.msk.f32.mxu0 %vm419_vm1, %v315_v33  ;;  %v377_v33 = vld [vmem:[%s4630_s9 + $0x2f0] sm:$0xff] }
  0x50   : > { %4272 = vmatmul.mubr.msk.f32.gmra.mxu0 %vm419_vm1, %v316_v34  ;;  %v378_v34 = vld [vmem:[%s4630_s9 + $0x2f8] sm:$0xff] }
  0x51   : > { %4274 = vmatprep.mubr.msk.f32.mxu0 %vm419_vm1, %v317_v35  ;;  %v379_v35 = vld [vmem:[%s4630_s9 + $0x300] sm:$0xff] }
  0x54   : > { %4275 = vmatmul.mubr.msk.f32.gmra.mxu0 %vm419_vm1, %v318_v36  ;;  %v380_v36 = vld [vmem:[%s4630_s9 + $0x308] sm:$0xff] }
  0x55   : > { %4277 = vmatprep.mubr.msk.f32.mxu0 %vm419_vm1, %v319_v37  ;;  %v4836_v37 = vld [vmem:[%s6034_s2] ss:$0 sm:$0xff] }
  0x58   : > { %4278 = vmatmul.mubr.msk.f32.gmra.mxu0 %vm419_vm1, %v320_v39 }
  0x59   : > { %4280 = vmatprep.mubr.msk.f32.mxu0 %vm419_vm1, %v321_v40 }
  0x5c   : > { %4281 = vmatmul.mubr.msk.f32.gmra.mxu0 %vm419_vm1, %v322_v42 }
  0x5d   : > { %4283 = vmatprep.mubr.msk.f32.mxu0 %vm419_vm1, %v323_v43  ;;  %v383_v43 = vld [vmem:[%s4630_s9 + $0x320] sm:$0xff] }
  0x60   : > { %4284 = vmatmul.mubr.msk.f32.gmra.mxu0 %vm419_vm1, %v324_v44 }
  0x61   : > { %4286 = vmatprep.mubr.msk.f32.mxu0 %vm419_vm1, %v325_v45 }
  0x64   : > { %4287 = vmatmul.mubr.msk.f32.gmra.mxu0 %vm419_vm1, %v326_v46 }
  0x65   : > { %4289 = vmatprep.mubr.msk.f32.mxu0 %vm419_vm1, %v327_v47  ;;  %v384_v47 = vld [vmem:[%s4630_s9 + $0x328] sm:$0xff] }
  0x68   : > { %4290 = vmatmul.mubr.msk.f32.gmra.mxu0 %vm419_vm1, %v328_v48  ;;  %v4570_v48 = vmov 0.0  }
  0x69   : > { %4292 = vmatprep.mubr.msk.f32.mxu0 %vm419_vm1, %v329_v49 }
  0x6c   : > { %4293 = vmatmul.mubr.msk.f32.gmra.mxu0 %vm419_vm1, %v330_v50 }
  0x6d   : > { %4295 = vmatprep.mubr.msk.f32.mxu0 %vm419_vm1, %v331_v51 }
  0x70   : > { %4296 = vmatmul.mubr.msk.f32.gmra.mxu0 %vm419_vm1, %v332_v52  ;;  %v385_v52 = vld [vmem:[%s4630_s9 + $0x330] sm:$0xff] }
  0x71   : > { %4298 = vmatprep.mubr.msk.f32.mxu0 %vm419_vm1, %v333_v53 }
  0x74   : > { %4299 = vmatmul.mubr.msk.f32.gmra.mxu0 %vm419_vm1, %v334_v54 }
  0x75   : > { %4301 = vmatprep.mubr.msk.f32.mxu0 %vm419_vm1, %v335_v55 }
  0x78   : > { %4302 = vmatmul.mubr.msk.f32.gmra.mxu0 %vm419_vm1, %v336_v56 }
  0x79   : > { %4304 = vmatprep.mubr.msk.f32.mxu0 %vm419_vm1, %v337_v57  ;;  %v386_v57 = vld [vmem:[%s4630_s9 + $0x338] sm:$0xff] }
  0x7c   : > { %4305 = vmatmul.mubr.msk.f32.gmra.mxu0 %vm419_vm1, %v338_v58 }
  0x7d   : > { %4307 = vmatprep.mubr.msk.f32.mxu0 %vm419_vm1, %v339_v59 }
  0x80   : > { %4308 = vmatmul.mubr.msk.f32.gmra.mxu0 %vm419_vm1, %v340_v60 }
  0x81   : > { %4310 = vmatprep.mubr.msk.f32.mxu0 %vm419_vm1, %v341_v61  ;;  %v387_v61 = vld [vmem:[%s4630_s9 + $0x340] sm:$0xff] }
  0x84   : > { %4311 = vmatmul.mubr.msk.f32.gmra.mxu0 %vm419_vm1, %v342_v62 }
  0x85   : > { %4313 = vmatprep.mubr.msk.f32.mxu0 %vm419_vm1, %v343_v63 }
  0x88   : > { %4314 = vmatmul.mubr.msk.f32.gmra.mxu0 %vm419_vm1, %v344_v0 }
  0x89   : > { %4316 = vmatprep.mubr.msk.f32.mxu0 %vm419_vm1, %v345_v1 }
  0x8c   : > { %4317 = vmatmul.mubr.msk.f32.gmra.mxu0 %vm419_vm1, %v346_v2  ;;  %v388_v2 = vld [vmem:[%s4630_s9 + $0x348] sm:$0xff] }
  0x8d   : > { %4319 = vmatprep.mubr.msk.f32.mxu0 %vm419_vm1, %v347_v3 }
  0x90   : > { %4320 = vmatmul.mubr.msk.f32.gmra.mxu0 %vm419_vm1, %v348_v4 }
  0x91   : > { %4322 = vmatprep.mubr.msk.f32.mxu0 %vm419_vm1, %v349_v5 }
  0x94   : > { %4323 = vmatmul.mubr.msk.f32.gmra.mxu0 %vm419_vm1, %v350_v6  ;;  %v389_v6 = vld [vmem:[%s4630_s9 + $0x350] sm:$0xff] }
  0x95   : > { %4325 = vmatprep.mubr.msk.f32.mxu0 %vm419_vm1, %v351_v7 }
  0x98   : > { %4326 = vmatmul.mubr.msk.f32.gmra.mxu0 %vm419_vm1, %v352_v8 }
  0x99   : > { %4328 = vmatprep.mubr.msk.f32.mxu0 %vm419_vm1, %v353_v9 }
  0x9c   : > { %4329 = vmatmul.mubr.msk.f32.gmra.mxu0 %vm419_vm1, %v354_v10 }
  0x9d   : > { %4331 = vmatprep.mubr.msk.f32.mxu0 %vm419_vm1, %v355_v11  ;;  %v390_v11 = vld [vmem:[%s4630_s9 + $0x358] sm:$0xff] }
  0xa0   : > { %4332 = vmatmul.mubr.msk.f32.gmra.mxu0 %vm419_vm1, %v356_v12 }
  0xa1   : > { %4334 = vmatprep.mubr.msk.f32.mxu0 %vm419_vm1, %v357_v13 }
  0xa4   : > { %4335 = vmatmul.mubr.msk.f32.gmra.mxu0 %vm419_vm1, %v358_v14 }
  0xa5   : > { %4337 = vmatprep.mubr.msk.f32.mxu0 %vm419_vm1, %v359_v15  ;;  %v391_v15 = vld [vmem:[%s4630_s9 + $0x360] sm:$0xff] }
  0xa8   : > { %4338 = vmatmul.mubr.msk.f32.gmra.mxu0 %vm419_vm1, %v360_v16 }
  0xa9   : > { %4340 = vmatprep.mubr.msk.f32.mxu0 %vm419_vm1, %v361_v17 }
  0xac   : > { %4341 = vmatmul.mubr.msk.f32.gmra.mxu0 %vm419_vm1, %v362_v18 }
  0xad   : > { %4343 = vmatprep.mubr.msk.f32.mxu0 %vm419_vm1, %v363_v19 }
  0xb0   : > { %4344 = vmatmul.mubr.msk.f32.gmra.mxu0 %vm419_vm1, %v364_v20  ;;  %v392_v20 = vld [vmem:[%s4630_s9 + $0x368] sm:$0xff] }
  0xb1   : > { %4346 = vmatprep.mubr.msk.f32.mxu0 %vm419_vm1, %v365_v21 }
  0xb4   : > { %4347 = vmatmul.mubr.msk.f32.gmra.mxu0 %vm419_vm1, %v366_v22 }
  0xb5   : > { %4349 = vmatprep.mubr.msk.f32.mxu0 %vm419_vm1, %v367_v23 }
  0xb8   : > { %4350 = vmatmul.mubr.msk.f32.gmra.mxu0 %vm419_vm1, %v368_v24  ;;  %v393_v24 = vld [vmem:[%s4630_s9 + $0x370] sm:$0xff] }
  0xb9   : > { %4352 = vmatprep.mubr.msk.f32.mxu0 %vm419_vm1, %v369_v25 }
  0xbc   : > { %4353 = vmatmul.mubr.msk.f32.gmra.mxu0 %vm419_vm1, %v370_v26 }
  0xbd   : > { %4355 = vmatprep.mubr.msk.f32.mxu0 %vm419_vm1, %v371_v27 }
  0xc0   : > { %4356 = vmatmul.mubr.msk.f32.gmra.mxu0 %vm419_vm1, %v372_v28 }
  0xc1   : > { %4358 = vmatprep.mubr.msk.f32.mxu0 %vm419_vm1, %v373_v29  ;;  %v394_v29 = vld [vmem:[%s4630_s9 + $0x378] sm:$0xff] }
  0xc4   : > { %4359 = vmatmul.mubr.msk.f32.gmra.mxu0 %vm419_vm1, %v374_v30 }
  0xc5   : > { %4361 = vmatprep.mubr.msk.f32.mxu0 %vm419_vm1, %v375_v31 }
  0xc8   : > { %4362 = vmatmul.mubr.msk.f32.gmra.mxu0 %vm419_vm1, %v376_v32 }
  0xc9   : > { %4364 = vmatprep.mubr.msk.f32.mxu0 %vm419_vm1, %v377_v33  ;;  %v395_v33 = vld [vmem:[%s4630_s9 + $0x380] sm:$0xff] }
  0xcc   : > { %4365 = vmatmul.mubr.msk.f32.gmra.mxu0 %vm419_vm1, %v378_v34 }
  0xcd   : > { %4367 = vmatprep.mubr.msk.f32.mxu0 %vm419_vm1, %v379_v35 }
  0xd0   : > { %v4225_v39 = vpop.f32.mrf.mxu0  ;;  %4368 = vmatmul.mubr.msk.f32.gmra.mxu0 %vm419_vm1, %v380_v36 }
  0xd1   : > { %v880_v40 = vadd.f32 %v4225_v39, %v4836_v37  ;;  %4370 = vmatprep.mubr.msk.f32.mxu0 %vm419_vm1, %v381_v38  ;;  %v396_v39 = vld [vmem:[%s4630_s9 + $0x388] sm:$0xff] }
  0xd2   : > { %v874_v42 = vpop.f32.mrf.mxu0 }
  0xd3   : > { %vm1514_vm2 = vcmp.ge.f32.partialorder %v880_v40, 0.0  ;;  %v875_v44 = vadd.f32 %v4836_v37, %v874_v42 }
  0xd4   : > { %v4228_v45 = vpop.f32.mrf.mxu0  ;;  %4371 = vmatmul.mubr.msk.f32.gmra.mxu0 %vm419_vm1, %v382_v41  ;;  %v3700_v49 = vsel %vm1514_vm2, 1.0, %v4570_v48 }
  0xd5   : > { %vm1513_vm3 = vcmp.ge.f32.partialorder %v875_v44, 0.0  ;;  %v890_v46 = vadd.f32 %v4228_v45, %v4836_v37  ;;  %4373 = vmatprep.mubr.msk.f32.mxu0 %vm419_vm1, %v383_v43  ;;  %v397_v43 = vld [vmem:[%s4630_s9 + $0x390] sm:$0xff] }
  0xd6   : > { %v884_v50 = vpop.f32.mrf.mxu0  ;;  %v3699_v51 = vsel %vm1513_vm3, 1.0, %v4570_v48 }
  0xd7   : > { %vm1516_vm5 = vcmp.ge.f32.partialorder %v890_v46, 0.0  ;;  %v885_v53 = vadd.f32 %v4836_v37, %v884_v50  ;;  %v1897_v54 = vpack.c.bf16 %v3700_v49, %v3699_v51  ;;  %v398_v49 = vld [vmem:[%s4630_s9 + $0x398] sm:$0xff] }
  0xd8   : > { %v4231_v55 = vpop.f32.mrf.mxu0  ;;  %4374 = vmatmul.mubr.msk.f32.gmra.mxu0 %vm419_vm1, %v384_v47  ;;  %v3702_v58 = vsel %vm1516_vm5, 1.0, %v4570_v48 }
  0xd9   : > { %vm1515_vm6 = vcmp.ge.f32.partialorder %v885_v53, 0.0  ;;  %v900_v56 = vadd.f32 %v4231_v55, %v4836_v37  ;;  %4419 = vmatprep.mubr.msk.bf16.mxu1 %vm1984_vm4, %v1897_v54  ;;  %4376 = vmatprep.mubr.msk.f32.mxu0 %vm419_vm1, %v385_v52  ;;  %v399_v53 = vld [vmem:[%s4630_s9 + $0x3a0] sm:$0xff] }
  0xda   : > { %v3701_v59 = vsel %vm1515_vm6, 1.0, %v4570_v48  ;;  %v894_v60 = vpop.f32.mrf.mxu0 }
  0xdb   : > { %v1898_v62 = vpack.c.bf16 %v3702_v58, %v3701_v59  ;;  %vm1518_vm7 = vcmp.ge.f32.partialorder %v900_v56, 0.0  ;;  %v895_v63 = vadd.f32 %v4836_v37, %v894_v60  ;;  %v400_v58 = vld [vmem:[%s4630_s9 + $0x3a8] sm:$0xff] }
  0xdc   : > { %v4234_v0 = vpop.f32.mrf.mxu0  ;;  %4377 = vmatmul.mubr.msk.f32.gmra.mxu0 %vm419_vm1, %v386_v57  ;;  %v3704_v3 = vsel %vm1518_vm7, 1.0, %v4570_v48 }
  0xdd   : > { %vm1517_vm8 = vcmp.ge.f32.partialorder %v895_v63, 0.0  ;;  %v910_v1 = vadd.f32 %v4234_v0, %v4836_v37  ;;  %4420 = vmatmul.mubr.msk.bf16.vlgmr.msra.gmra.mxu1 %vm1984_vm4, %v1898_v62  ;;  %4379 = vmatprep.mubr.msk.f32.mxu0 %vm419_vm1, %v387_v61  ;;  %v401_v62 = vld [vmem:[%s4630_s9 + $0x3b0] sm:$0xff] }
  0xde   : > { %v3703_v4 = vsel %vm1517_vm8, 1.0, %v4570_v48  ;;  %v904_v5 = vpop.f32.mrf.mxu0 }
  0xdf   : > { %v1899_v7 = vpack.c.bf16 %v3704_v3, %v3703_v4  ;;  %vm1520_vm9 = vcmp.ge.f32.partialorder %v910_v1, 0.0  ;;  %v905_v8 = vadd.f32 %v4836_v37, %v904_v5  ;;  %v402_v3 = vld [vmem:[%s4630_s9 + $0x3b8] sm:$0xff] }
  0xe0   : > { %v4237_v9 = vpop.f32.mrf.mxu0  ;;  %4380 = vmatmul.mubr.msk.f32.gmra.mxu0 %vm419_vm1, %v388_v2  ;;  %v3706_v12 = vsel %vm1520_vm9, 1.0, %v4570_v48 }
  0xe1   : > { %vm1519_vm10 = vcmp.ge.f32.partialorder %v905_v8, 0.0  ;;  %v920_v10 = vadd.f32 %v4237_v9, %v4836_v37  ;;  %4423 = vmatprep.mubr.msk.bf16.mxu1 %vm1984_vm4, %v1899_v7  ;;  %4382 = vmatprep.mubr.msk.f32.mxu0 %vm419_vm1, %v389_v6  ;;  %v403_v7 = vld [vmem:[%s4630_s9 + $0x3c0] sm:$0xff] }
  0xe2   : > { %v3705_v13 = vsel %vm1519_vm10, 1.0, %v4570_v48  ;;  %v914_v14 = vpop.f32.mrf.mxu0 }
  0xe3   : > { %v1900_v16 = vpack.c.bf16 %v3706_v12, %v3705_v13  ;;  %vm1522_vm11 = vcmp.ge.f32.partialorder %v920_v10, 0.0  ;;  %v915_v17 = vadd.f32 %v4836_v37, %v914_v14  ;;  %v404_v12 = vld [vmem:[%s4630_s9 + $0x3c8] sm:$0xff] }
  0xe4   : > { %v4240_v18 = vpop.f32.mrf.mxu0  ;;  %4383 = vmatmul.mubr.msk.f32.gmra.mxu0 %vm419_vm1, %v390_v11  ;;  %v3708_v21 = vsel %vm1522_vm11, 1.0, %v4570_v48 }
  0xe5   : > { %vm1521_vm12 = vcmp.ge.f32.partialorder %v915_v17, 0.0  ;;  %v930_v19 = vadd.f32 %v4240_v18, %v4836_v37  ;;  %4424 = vmatmul.mubr.msk.bf16.gmra.mxu1 %vm1984_vm4, %v1900_v16  ;;  %4385 = vmatprep.mubr.msk.f32.mxu0 %vm419_vm1, %v391_v15  ;;  %v405_v16 = vld [vmem:[%s4630_s9 + $0x3d0] sm:$0xff] }
  0xe6   : > { %v3707_v22 = vsel %vm1521_vm12, 1.0, %v4570_v48  ;;  %v924_v23 = vpop.f32.mrf.mxu0 }
  0xe7   : > { %v1901_v25 = vpack.c.bf16 %v3708_v21, %v3707_v22  ;;  %vm1524_vm13 = vcmp.ge.f32.partialorder %v930_v19, 0.0  ;;  %v925_v26 = vadd.f32 %v4836_v37, %v924_v23  ;;  %v406_v21 = vld [vmem:[%s4630_s9 + $0x3d8] sm:$0xff] }
  0xe8   : > { %v4243_v27 = vpop.f32.mrf.mxu0  ;;  %4386 = vmatmul.mubr.msk.f32.gmra.mxu0 %vm419_vm1, %v392_v20  ;;  %v3710_v30 = vsel %vm1524_vm13, 1.0, %v4570_v48 }
  0xe9   : > { %vm1523_vm14 = vcmp.ge.f32.partialorder %v925_v26, 0.0  ;;  %v940_v28 = vadd.f32 %v4243_v27, %v4836_v37  ;;  %4427 = vmatprep.mubr.msk.bf16.mxu1 %vm1984_vm4, %v1901_v25  ;;  %4388 = vmatprep.mubr.msk.f32.mxu0 %vm419_vm1, %v393_v24  ;;  %v407_v25 = vld [vmem:[%s4630_s9 + $0x3e0] sm:$0xff] }
  0xea   : > { %v3709_v31 = vsel %vm1523_vm14, 1.0, %v4570_v48  ;;  %v934_v32 = vpop.f32.mrf.mxu0 }
  0xeb   : > { %v1902_v34 = vpack.c.bf16 %v3710_v30, %v3709_v31  ;;  %vm1526_vm15 = vcmp.ge.f32.partialorder %v940_v28, 0.0  ;;  %v935_v35 = vadd.f32 %v4836_v37, %v934_v32  ;;  %v408_v30 = vld [vmem:[%s4630_s9 + $0x3e8] sm:$0xff] }
  0xec   : > { %v4246_v36 = vpop.f32.mrf.mxu0  ;;  %4389 = vmatmul.mubr.msk.f32.gmra.mxu0 %vm419_vm1, %v394_v29  ;;  %v3712_v40 = vsel %vm1526_vm15, 1.0, %v4570_v48 }
  0xed   : > { %vm1525_vm0 = vcmp.ge.f32.partialorder %v935_v35, 0.0  ;;  %v950_v38 = vadd.f32 %v4246_v36, %v4836_v37  ;;  %4428 = vmatmul.mubr.msk.bf16.gmra.mxu1 %vm1984_vm4, %v1902_v34  ;;  %4391 = vmatprep.mubr.msk.f32.mxu0 %vm419_vm1, %v395_v33  ;;  %v409_v34 = vld [vmem:[%s4630_s9 + $0x3f0] sm:$0xff] }
  0xee   : > { %v3711_v41 = vsel %vm1525_vm0, 1.0, %v4570_v48  ;;  %v944_v42 = vpop.f32.mrf.mxu0 }
  0xef   : > { %v1903_v44 = vpack.c.bf16 %v3712_v40, %v3711_v41  ;;  %vm1528_vm2 = vcmp.ge.f32.partialorder %v950_v38, 0.0  ;;  %v945_v45 = vadd.f32 %v4836_v37, %v944_v42  ;;  %v410_v40 = vld [vmem:[%s4630_s9 + $0x3f8] sm:$0xff] }
  0xf0   : > { %v4249_v46 = vpop.f32.mrf.mxu0  ;;  %4392 = vmatmul.mubr.msk.f32.gmra.mxu0 %vm419_vm1, %v396_v39  ;;  %v3714_v50 = vsel %vm1528_vm2, 1.0, %v4570_v48 }
  0xf1   : > { %vm1527_vm3 = vcmp.ge.f32.partialorder %v945_v45, 0.0  ;;  %v960_v47 = vadd.f32 %v4249_v46, %v4836_v37  ;;  %4431 = vmatprep.mubr.msk.bf16.mxu1 %vm1984_vm4, %v1903_v44  ;;  %4394 = vmatprep.mubr.msk.f32.mxu0 %vm419_vm1, %v397_v43 }
  0xf2   : > { %v3713_v51 = vsel %vm1527_vm3, 1.0, %v4570_v48  ;;  %v954_v52 = vpop.f32.mrf.mxu0 }
  0xf3   : > { %v1904_v54 = vpack.c.bf16 %v3714_v50, %v3713_v51  ;;  %vm1530_vm5 = vcmp.ge.f32.partialorder %v960_v47, 0.0  ;;  %v955_v55 = vadd.f32 %v4836_v37, %v954_v52 }
  0xf4   : > { %v4252_v56 = vpop.f32.mrf.mxu0  ;;  %4395 = vmatmul.mubr.msk.f32.gmra.mxu0 %vm419_vm1, %v398_v49  ;;  %v3716_v59 = vsel %vm1530_vm5, 1.0, %v4570_v48 }
  0xf5   : > { %vm1529_vm6 = vcmp.ge.f32.partialorder %v955_v55, 0.0  ;;  %v970_v57 = vadd.f32 %v4252_v56, %v4836_v37  ;;  %4432 = vmatmul.mubr.msk.bf16.gmra.mxu1 %vm1984_vm4, %v1904_v54  ;;  %4397 = vmatprep.mubr.msk.f32.mxu0 %vm419_vm1, %v399_v53 }
  0xf6   : > { %v3715_v60 = vsel %vm1529_vm6, 1.0, %v4570_v48  ;;  %v964_v61 = vpop.f32.mrf.mxu0 }
  0xf7   : > { %v1905_v63 = vpack.c.bf16 %v3716_v59, %v3715_v60  ;;  %vm1532_vm7 = vcmp.ge.f32.partialorder %v970_v57, 0.0  ;;  %v965_v0 = vadd.f32 %v4836_v37, %v964_v61 }
  0xf8   : > { %v4255_v1 = vpop.f32.mrf.mxu0  ;;  %4398 = vmatmul.mubr.msk.f32.gmra.mxu0 %vm419_vm1, %v400_v58  ;;  %v3718_v4 = vsel %vm1532_vm7, 1.0, %v4570_v48 }
  0xf9   : > { %vm1531_vm8 = vcmp.ge.f32.partialorder %v965_v0, 0.0  ;;  %v980_v2 = vadd.f32 %v4255_v1, %v4836_v37  ;;  %4435 = vmatprep.mubr.msk.bf16.mxu1 %vm1984_vm4, %v1905_v63  ;;  %4400 = vmatprep.mubr.msk.f32.mxu0 %vm419_vm1, %v401_v62 }
  0xfa   : > { %v3717_v5 = vsel %vm1531_vm8, 1.0, %v4570_v48  ;;  %v974_v6 = vpop.f32.mrf.mxu0 }
  0xfb   : > { %v1906_v8 = vpack.c.bf16 %v3718_v4, %v3717_v5  ;;  %vm1534_vm9 = vcmp.ge.f32.partialorder %v980_v2, 0.0  ;;  %v975_v9 = vadd.f32 %v4836_v37, %v974_v6 }
  0xfc   : > { %v4258_v10 = vpop.f32.mrf.mxu0  ;;  %4401 = vmatmul.mubr.msk.f32.gmra.mxu0 %vm419_vm1, %v402_v3  ;;  %v3720_v13 = vsel %vm1534_vm9, 1.0, %v4570_v48 }
  0xfd   : > { %vm1533_vm10 = vcmp.ge.f32.partialorder %v975_v9, 0.0  ;;  %v990_v11 = vadd.f32 %v4258_v10, %v4836_v37  ;;  %4436 = vmatmul.mubr.msk.bf16.gmra.mxu1 %vm1984_vm4, %v1906_v8  ;;  %4403 = vmatprep.mubr.msk.f32.mxu0 %vm419_vm1, %v403_v7 }
  0xfe   : > { %v3719_v14 = vsel %vm1533_vm10, 1.0, %v4570_v48  ;;  %v984_v15 = vpop.f32.mrf.mxu0 }
  0xff   : > { %v1907_v17 = vpack.c.bf16 %v3720_v13, %v3719_v14  ;;  %vm1536_vm11 = vcmp.ge.f32.partialorder %v990_v11, 0.0  ;;  %v985_v18 = vadd.f32 %v4836_v37, %v984_v15 }
 0x100   : > { %v4261_v19 = vpop.f32.mrf.mxu0  ;;  %4404 = vmatmul.mubr.msk.f32.gmra.mxu0 %vm419_vm1, %v404_v12  ;;  %v3722_v22 = vsel %vm1536_vm11, 1.0, %v4570_v48 }
 0x101   : > { %vm1535_vm12 = vcmp.ge.f32.partialorder %v985_v18, 0.0  ;;  %v1000_v20 = vadd.f32 %v4261_v19, %v4836_v37  ;;  %4439 = vmatprep.mubr.msk.bf16.mxu1 %vm1984_vm4, %v1907_v17  ;;  %4406 = vmatprep.mubr.msk.f32.mxu0 %vm419_vm1, %v405_v16 }
 0x102   : > { %v3721_v23 = vsel %vm1535_vm12, 1.0, %v4570_v48  ;;  %v994_v24 = vpop.f32.mrf.mxu0 }
 0x103   : > { %v1908_v26 = vpack.c.bf16 %v3722_v22, %v3721_v23  ;;  %vm1538_vm13 = vcmp.ge.f32.partialorder %v1000_v20, 0.0  ;;  %v995_v27 = vadd.f32 %v4836_v37, %v994_v24 }
 0x104   : > { %v4264_v28 = vpop.f32.mrf.mxu0  ;;  %4407 = vmatmul.mubr.msk.f32.gmra.mxu0 %vm419_vm1, %v406_v21  ;;  %v3724_v31 = vsel %vm1538_vm13, 1.0, %v4570_v48 }
 0x105   : > { %vm1537_vm14 = vcmp.ge.f32.partialorder %v995_v27, 0.0  ;;  %v1010_v29 = vadd.f32 %v4264_v28, %v4836_v37  ;;  %4440 = vmatmul.mubr.msk.bf16.gmra.mxu1 %vm1984_vm4, %v1908_v26  ;;  %4409 = vmatprep.mubr.msk.f32.mxu0 %vm419_vm1, %v407_v25 }
 0x106   : > { %v3723_v32 = vsel %vm1537_vm14, 1.0, %v4570_v48  ;;  %v1004_v33 = vpop.f32.mrf.mxu0 }
 0x107   : > { %v1909_v35 = vpack.c.bf16 %v3724_v31, %v3723_v32  ;;  %vm1540_vm15 = vcmp.ge.f32.partialorder %v1010_v29, 0.0  ;;  %v1005_v36 = vadd.f32 %v4836_v37, %v1004_v33 }
 0x108   : > { %v4267_v38 = vpop.f32.mrf.mxu0  ;;  %4410 = vmatmul.mubr.msk.f32.gmra.mxu0 %vm419_vm1, %v408_v30  ;;  %v3726_v41 = vsel %vm1540_vm15, 1.0, %v4570_v48 }
 0x109   : > { %vm1539_vm0 = vcmp.ge.f32.partialorder %v1005_v36, 0.0  ;;  %v1020_v39 = vadd.f32 %v4267_v38, %v4836_v37  ;;  %4443 = vmatprep.mubr.msk.bf16.mxu1 %vm1984_vm4, %v1909_v35  ;;  %4412 = vmatprep.mubr.msk.f32.mxu0 %vm419_vm1, %v409_v34 }
 0x10a   : > { %v3725_v42 = vsel %vm1539_vm0, 1.0, %v4570_v48  ;;  %v1014_v43 = vpop.f32.mrf.mxu0 }
 0x10b   : > { %v1910_v44 = vpack.c.bf16 %v3726_v41, %v3725_v42  ;;  %vm1542_vm2 = vcmp.ge.f32.partialorder %v1020_v39, 0.0  ;;  %v1015_v45 = vadd.f32 %v4836_v37, %v1014_v43 }
 0x10c   : > { %v4270_v46 = vpop.f32.mrf.mxu0  ;;  %4413 = vmatmul.mubr.msk.f32.gmra.mxu0 %vm419_vm1, %v410_v40  ;;  %v3728_v49 = vsel %vm1542_vm2, 1.0, %v4570_v48 }
 0x10d   : > { %vm1541_vm3 = vcmp.ge.f32.partialorder %v1015_v45, 0.0  ;;  %v1030_v47 = vadd.f32 %v4270_v46, %v4836_v37  ;;  %4444 = vmatmul.mubr.msk.bf16.gmra.mxu1 %vm1984_vm4, %v1910_v44 }
 0x10e   : > { %v3727_v50 = vsel %vm1541_vm3, 1.0, %v4570_v48  ;;  %v1024_v51 = vpop.f32.mrf.mxu0 }
 0x10f   : > { %v1911_v52 = vpack.c.bf16 %v3728_v49, %v3727_v50  ;;  %vm1544_vm5 = vcmp.ge.f32.partialorder %v1030_v47, 0.0  ;;  %v1025_v53 = vadd.f32 %v4836_v37, %v1024_v51 }
 0x110   : > { %v4273_v54 = vpop.f32.mrf.mxu0  ;;  %v3730_v56 = vsel %vm1544_vm5, 1.0, %v4570_v48 }
 0x111   : > { %vm1543_vm6 = vcmp.ge.f32.partialorder %v1025_v53, 0.0  ;;  %v1040_v55 = vadd.f32 %v4273_v54, %v4836_v37  ;;  %4447 = vmatprep.mubr.msk.bf16.mxu1 %vm1984_vm4, %v1911_v52 }
 0x112   : > { %v3729_v57 = vsel %vm1543_vm6, 1.0, %v4570_v48  ;;  %v1034_v58 = vpop.f32.mrf.mxu0 }
 0x113   : > { %v1912_v59 = vpack.c.bf16 %v3730_v56, %v3729_v57  ;;  %vm1546_vm1 = vcmp.ge.f32.partialorder %v1040_v55, 0.0  ;;  %v1035_v60 = vadd.f32 %v4836_v37, %v1034_v58 }
 0x114   : > { %v4276_v61 = vpop.f32.mrf.mxu0  ;;  %v3732_v63 = vsel %vm1546_vm1, 1.0, %v4570_v48 }
 0x115   : > { %vm1545_vm7 = vcmp.ge.f32.partialorder %v1035_v60, 0.0  ;;  %v1050_v62 = vadd.f32 %v4276_v61, %v4836_v37  ;;  %4448 = vmatmul.mubr.msk.bf16.gmra.mxu1 %vm1984_vm4, %v1912_v59 }
 0x116   : > { %v3731_v0 = vsel %vm1545_vm7, 1.0, %v4570_v48  ;;  %v1044_v1 = vpop.f32.mrf.mxu0 }
 0x117   : > { %v1913_v2 = vpack.c.bf16 %v3732_v63, %v3731_v0  ;;  %vm1548_vm8 = vcmp.ge.f32.partialorder %v1050_v62, 0.0  ;;  %v1045_v3 = vadd.f32 %v4836_v37, %v1044_v1 }
 0x118   : > { %v4279_v4 = vpop.f32.mrf.mxu0  ;;  %v3734_v6 = vsel %vm1548_vm8, 1.0, %v4570_v48 }
 0x119   : > { %vm1547_vm9 = vcmp.ge.f32.partialorder %v1045_v3, 0.0  ;;  %v1060_v5 = vadd.f32 %v4279_v4, %v4836_v37  ;;  %4451 = vmatprep.mubr.msk.bf16.mxu1 %vm1984_vm4, %v1913_v2 }
 0x11a   : > { %v3733_v7 = vsel %vm1547_vm9, 1.0, %v4570_v48  ;;  %v1054_v8 = vpop.f32.mrf.mxu0 }
 0x11b   : > { %v1914_v9 = vpack.c.bf16 %v3734_v6, %v3733_v7  ;;  %vm1550_vm10 = vcmp.ge.f32.partialorder %v1060_v5, 0.0  ;;  %v1055_v10 = vadd.f32 %v4836_v37, %v1054_v8 }
 0x11c   : > { %v4282_v11 = vpop.f32.mrf.mxu0  ;;  %v3736_v13 = vsel %vm1550_vm10, 1.0, %v4570_v48 }
 0x11d   : > { %vm1549_vm11 = vcmp.ge.f32.partialorder %v1055_v10, 0.0  ;;  %v1070_v12 = vadd.f32 %v4282_v11, %v4836_v37  ;;  %4452 = vmatmul.mubr.msk.bf16.gmra.mxu1 %vm1984_vm4, %v1914_v9 }
 0x11e   : > { %v3735_v14 = vsel %vm1549_vm11, 1.0, %v4570_v48  ;;  %v1064_v15 = vpop.f32.mrf.mxu0 }
 0x11f   : > { %v1915_v16 = vpack.c.bf16 %v3736_v13, %v3735_v14  ;;  %vm1552_vm12 = vcmp.ge.f32.partialorder %v1070_v12, 0.0  ;;  %v1065_v17 = vadd.f32 %v4836_v37, %v1064_v15 }
 0x120   : > { %v4285_v18 = vpop.f32.mrf.mxu0  ;;  %v3738_v20 = vsel %vm1552_vm12, 1.0, %v4570_v48 }
 0x121   : > { %vm1551_vm13 = vcmp.ge.f32.partialorder %v1065_v17, 0.0  ;;  %v1080_v19 = vadd.f32 %v4285_v18, %v4836_v37  ;;  %4455 = vmatprep.mubr.msk.bf16.mxu1 %vm1984_vm4, %v1915_v16 }
 0x122   : > { %v3737_v21 = vsel %vm1551_vm13, 1.0, %v4570_v48  ;;  %v1074_v22 = vpop.f32.mrf.mxu0 }
 0x123   : > { %v1916_v23 = vpack.c.bf16 %v3738_v20, %v3737_v21  ;;  %vm1554_vm14 = vcmp.ge.f32.partialorder %v1080_v19, 0.0  ;;  %v1075_v24 = vadd.f32 %v4836_v37, %v1074_v22 }
 0x124   : > { %v4288_v25 = vpop.f32.mrf.mxu0  ;;  %v3740_v27 = vsel %vm1554_vm14, 1.0, %v4570_v48 }
 0x125   : > { %vm1553_vm15 = vcmp.ge.f32.partialorder %v1075_v24, 0.0  ;;  %v1090_v26 = vadd.f32 %v4288_v25, %v4836_v37  ;;  %4456 = vmatmul.mubr.msk.bf16.gmra.mxu1 %vm1984_vm4, %v1916_v23 }
 0x126   : > { %v3739_v28 = vsel %vm1553_vm15, 1.0, %v4570_v48  ;;  %v1084_v29 = vpop.f32.mrf.mxu0 }
 0x127   : > { %v1917_v30 = vpack.c.bf16 %v3740_v27, %v3739_v28  ;;  %vm1556_vm0 = vcmp.ge.f32.partialorder %v1090_v26, 0.0  ;;  %v1085_v31 = vadd.f32 %v4836_v37, %v1084_v29 }
 0x128   : > { %v4291_v32 = vpop.f32.mrf.mxu0  ;;  %v3742_v34 = vsel %vm1556_vm0, 1.0, %v4570_v48 }
 0x129   : > { %vm1555_vm2 = vcmp.ge.f32.partialorder %v1085_v31, 0.0  ;;  %v1100_v33 = vadd.f32 %v4291_v32, %v4836_v37  ;;  %4459 = vmatprep.mubr.msk.bf16.mxu1 %vm1984_vm4, %v1917_v30 }
 0x12a   : > { %v3741_v35 = vsel %vm1555_vm2, 1.0, %v4570_v48  ;;  %v1094_v36 = vpop.f32.mrf.mxu0 }
 0x12b   : > { %v1918_v38 = vpack.c.bf16 %v3742_v34, %v3741_v35  ;;  %vm1558_vm3 = vcmp.ge.f32.partialorder %v1100_v33, 0.0  ;;  %v1095_v39 = vadd.f32 %v4836_v37, %v1094_v36 }
 0x12c   : > { %v4294_v40 = vpop.f32.mrf.mxu0  ;;  %v3744_v42 = vsel %vm1558_vm3, 1.0, %v4570_v48 }
 0x12d   : > { %vm1557_vm5 = vcmp.ge.f32.partialorder %v1095_v39, 0.0  ;;  %v1110_v41 = vadd.f32 %v4294_v40, %v4836_v37  ;;  %4460 = vmatmul.mubr.msk.bf16.gmra.mxu1 %vm1984_vm4, %v1918_v38 }
 0x12e   : > { %v3743_v43 = vsel %vm1557_vm5, 1.0, %v4570_v48  ;;  %v1104_v44 = vpop.f32.mrf.mxu0 }
 0x12f   : > { %v1919_v45 = vpack.c.bf16 %v3744_v42, %v3743_v43  ;;  %vm1560_vm6 = vcmp.ge.f32.partialorder %v1110_v41, 0.0  ;;  %v1105_v46 = vadd.f32 %v4836_v37, %v1104_v44 }
 0x130   : > { %v4297_v47 = vpop.f32.mrf.mxu0  ;;  %v3746_v50 = vsel %vm1560_vm6, 1.0, %v4570_v48 }
 0x131   : > { %vm1559_vm1 = vcmp.ge.f32.partialorder %v1105_v46, 0.0  ;;  %v1120_v49 = vadd.f32 %v4297_v47, %v4836_v37  ;;  %4463 = vmatprep.mubr.msk.bf16.mxu1 %vm1984_vm4, %v1919_v45 }
 0x132   : > { %v3745_v51 = vsel %vm1559_vm1, 1.0, %v4570_v48  ;;  %v1114_v52 = vpop.f32.mrf.mxu0 }
 0x133   : > { %v1920_v53 = vpack.c.bf16 %v3746_v50, %v3745_v51  ;;  %vm1562_vm7 = vcmp.ge.f32.partialorder %v1120_v49, 0.0  ;;  %v1115_v54 = vadd.f32 %v4836_v37, %v1114_v52 }
 0x134   : > { %v4300_v55 = vpop.f32.mrf.mxu0  ;;  %v3748_v57 = vsel %vm1562_vm7, 1.0, %v4570_v48 }
 0x135   : > { %vm1561_vm8 = vcmp.ge.f32.partialorder %v1115_v54, 0.0  ;;  %v1130_v56 = vadd.f32 %v4300_v55, %v4836_v37  ;;  %4464 = vmatmul.mubr.msk.bf16.gmra.mxu1 %vm1984_vm4, %v1920_v53 }
 0x136   : > { %v3747_v58 = vsel %vm1561_vm8, 1.0, %v4570_v48  ;;  %v1124_v59 = vpop.f32.mrf.mxu0 }
 0x137   : > { %v1921_v60 = vpack.c.bf16 %v3748_v57, %v3747_v58  ;;  %vm1564_vm9 = vcmp.ge.f32.partialorder %v1130_v56, 0.0  ;;  %v1125_v61 = vadd.f32 %v4836_v37, %v1124_v59 }
 0x138   : > { %v4303_v62 = vpop.f32.mrf.mxu0  ;;  %v3750_v0 = vsel %vm1564_vm9, 1.0, %v4570_v48 }
 0x139   : > { %vm1563_vm10 = vcmp.ge.f32.partialorder %v1125_v61, 0.0  ;;  %v1140_v63 = vadd.f32 %v4303_v62, %v4836_v37  ;;  %4467 = vmatprep.mubr.msk.bf16.mxu1 %vm1984_vm4, %v1921_v60 }
 0x13a   : > { %v3749_v1 = vsel %vm1563_vm10, 1.0, %v4570_v48  ;;  %v1134_v2 = vpop.f32.mrf.mxu0 }
 0x13b   : > { %v1922_v3 = vpack.c.bf16 %v3750_v0, %v3749_v1  ;;  %vm1566_vm11 = vcmp.ge.f32.partialorder %v1140_v63, 0.0  ;;  %v1135_v4 = vadd.f32 %v4836_v37, %v1134_v2 }
 0x13c   : > { %v4306_v5 = vpop.f32.mrf.mxu0  ;;  %v3752_v7 = vsel %vm1566_vm11, 1.0, %v4570_v48 }
 0x13d   : > { %vm1565_vm12 = vcmp.ge.f32.partialorder %v1135_v4, 0.0  ;;  %v1150_v6 = vadd.f32 %v4306_v5, %v4836_v37  ;;  %4468 = vmatmul.mubr.msk.bf16.gmra.mxu1 %vm1984_vm4, %v1922_v3 }
 0x13e   : > { %v3751_v8 = vsel %vm1565_vm12, 1.0, %v4570_v48  ;;  %v1144_v9 = vpop.f32.mrf.mxu0 }
 0x13f   : > { %v1923_v10 = vpack.c.bf16 %v3752_v7, %v3751_v8  ;;  %vm1568_vm13 = vcmp.ge.f32.partialorder %v1150_v6, 0.0  ;;  %v1145_v11 = vadd.f32 %v4836_v37, %v1144_v9 }
 0x140   : > { %v4309_v12 = vpop.f32.mrf.mxu0  ;;  %v3754_v14 = vsel %vm1568_vm13, 1.0, %v4570_v48 }
 0x141   : > { %vm1567_vm14 = vcmp.ge.f32.partialorder %v1145_v11, 0.0  ;;  %v1160_v13 = vadd.f32 %v4309_v12, %v4836_v37  ;;  %4471 = vmatprep.mubr.msk.bf16.mxu1 %vm1984_vm4, %v1923_v10 }
 0x142   : > { %v3753_v15 = vsel %vm1567_vm14, 1.0, %v4570_v48  ;;  %v1154_v16 = vpop.f32.mrf.mxu0 }
 0x143   : > { %v1924_v17 = vpack.c.bf16 %v3754_v14, %v3753_v15  ;;  %vm1570_vm15 = vcmp.ge.f32.partialorder %v1160_v13, 0.0  ;;  %v1155_v18 = vadd.f32 %v4836_v37, %v1154_v16 }
 0x144   : > { %v4312_v19 = vpop.f32.mrf.mxu0  ;;  %v3756_v21 = vsel %vm1570_vm15, 1.0, %v4570_v48 }
 0x145   : > { %vm1569_vm0 = vcmp.ge.f32.partialorder %v1155_v18, 0.0  ;;  %v1170_v20 = vadd.f32 %v4312_v19, %v4836_v37  ;;  %4472 = vmatmul.mubr.msk.bf16.gmra.mxu1 %vm1984_vm4, %v1924_v17 }
 0x146   : > { %v3755_v22 = vsel %vm1569_vm0, 1.0, %v4570_v48  ;;  %v1164_v23 = vpop.f32.mrf.mxu0 }
 0x147   : > { %v1925_v24 = vpack.c.bf16 %v3756_v21, %v3755_v22  ;;  %vm1572_vm2 = vcmp.ge.f32.partialorder %v1170_v20, 0.0  ;;  %v1165_v25 = vadd.f32 %v4836_v37, %v1164_v23 }
 0x148   : > { %v4315_v26 = vpop.f32.mrf.mxu0  ;;  %v3758_v28 = vsel %vm1572_vm2, 1.0, %v4570_v48 }
 0x149   : > { %vm1571_vm3 = vcmp.ge.f32.partialorder %v1165_v25, 0.0  ;;  %v1180_v27 = vadd.f32 %v4315_v26, %v4836_v37  ;;  %4475 = vmatprep.mubr.msk.bf16.mxu1 %vm1984_vm4, %v1925_v24 }
 0x14a   : > { %v3757_v29 = vsel %vm1571_vm3, 1.0, %v4570_v48  ;;  %v1174_v30 = vpop.f32.mrf.mxu0 }
 0x14b   : > { %v1926_v31 = vpack.c.bf16 %v3758_v28, %v3757_v29  ;;  %vm1574_vm5 = vcmp.ge.f32.partialorder %v1180_v27, 0.0  ;;  %v1175_v32 = vadd.f32 %v4836_v37, %v1174_v30 }
 0x14c   : > { %v4318_v33 = vpop.f32.mrf.mxu0  ;;  %v3760_v35 = vsel %vm1574_vm5, 1.0, %v4570_v48 }
 0x14d   : > { %vm1573_vm6 = vcmp.ge.f32.partialorder %v1175_v32, 0.0  ;;  %v1190_v34 = vadd.f32 %v4318_v33, %v4836_v37  ;;  %4476 = vmatmul.mubr.msk.bf16.gmra.mxu1 %vm1984_vm4, %v1926_v31 }
 0x14e   : > { %v3759_v36 = vsel %vm1573_vm6, 1.0, %v4570_v48  ;;  %v1184_v38 = vpop.f32.mrf.mxu0 }
 0x14f   : > { %v1927_v39 = vpack.c.bf16 %v3760_v35, %v3759_v36  ;;  %vm1576_vm1 = vcmp.ge.f32.partialorder %v1190_v34, 0.0  ;;  %v1185_v40 = vadd.f32 %v4836_v37, %v1184_v38 }
 0x150   : > { %v4321_v41 = vpop.f32.mrf.mxu0  ;;  %v3762_v43 = vsel %vm1576_vm1, 1.0, %v4570_v48 }
 0x151   : > { %vm1575_vm7 = vcmp.ge.f32.partialorder %v1185_v40, 0.0  ;;  %v1200_v42 = vadd.f32 %v4321_v41, %v4836_v37  ;;  %4479 = vmatprep.mubr.msk.bf16.mxu1 %vm1984_vm4, %v1927_v39 }
 0x152   : > { %v3761_v44 = vsel %vm1575_vm7, 1.0, %v4570_v48  ;;  %v1194_v45 = vpop.f32.mrf.mxu0 }
 0x153   : > { %v1928_v46 = vpack.c.bf16 %v3762_v43, %v3761_v44  ;;  %vm1578_vm8 = vcmp.ge.f32.partialorder %v1200_v42, 0.0  ;;  %v1195_v47 = vadd.f32 %v4836_v37, %v1194_v45 }
 0x154   : > { %v4324_v49 = vpop.f32.mrf.mxu0  ;;  %v3764_v51 = vsel %vm1578_vm8, 1.0, %v4570_v48 }
 0x155   : > { %vm1577_vm9 = vcmp.ge.f32.partialorder %v1195_v47, 0.0  ;;  %v1210_v50 = vadd.f32 %v4324_v49, %v4836_v37  ;;  %4480 = vmatmul.mubr.msk.bf16.gmra.mxu1 %vm1984_vm4, %v1928_v46 }
 0x156   : > { %v3763_v52 = vsel %vm1577_vm9, 1.0, %v4570_v48  ;;  %v1204_v53 = vpop.f32.mrf.mxu0 }
 0x157   : > { %v1929_v54 = vpack.c.bf16 %v3764_v51, %v3763_v52  ;;  %vm1580_vm10 = vcmp.ge.f32.partialorder %v1210_v50, 0.0  ;;  %v1205_v55 = vadd.f32 %v4836_v37, %v1204_v53 }
 0x158   : > { %v4327_v56 = vpop.f32.mrf.mxu0  ;;  %v3766_v58 = vsel %vm1580_vm10, 1.0, %v4570_v48 }
 0x159   : > { %vm1579_vm11 = vcmp.ge.f32.partialorder %v1205_v55, 0.0  ;;  %v1220_v57 = vadd.f32 %v4327_v56, %v4836_v37  ;;  %4483 = vmatprep.mubr.msk.bf16.mxu1 %vm1984_vm4, %v1929_v54 }
 0x15a   : > { %v3765_v59 = vsel %vm1579_vm11, 1.0, %v4570_v48  ;;  %v1214_v60 = vpop.f32.mrf.mxu0 }
 0x15b   : > { %v1930_v61 = vpack.c.bf16 %v3766_v58, %v3765_v59  ;;  %vm1582_vm12 = vcmp.ge.f32.partialorder %v1220_v57, 0.0  ;;  %v1215_v62 = vadd.f32 %v4836_v37, %v1214_v60 }
 0x15c   : > { %v4330_v63 = vpop.f32.mrf.mxu0  ;;  %v3768_v1 = vsel %vm1582_vm12, 1.0, %v4570_v48 }
 0x15d   : > { %vm1581_vm13 = vcmp.ge.f32.partialorder %v1215_v62, 0.0  ;;  %v1230_v0 = vadd.f32 %v4330_v63, %v4836_v37  ;;  %4484 = vmatmul.mubr.msk.bf16.gmra.mxu1 %vm1984_vm4, %v1930_v61 }
 0x15e   : > { %v3767_v2 = vsel %vm1581_vm13, 1.0, %v4570_v48  ;;  %v1224_v3 = vpop.f32.mrf.mxu0 }
 0x15f   : > { %v1931_v4 = vpack.c.bf16 %v3768_v1, %v3767_v2  ;;  %vm1584_vm14 = vcmp.ge.f32.partialorder %v1230_v0, 0.0  ;;  %v1225_v5 = vadd.f32 %v4836_v37, %v1224_v3 }
 0x160   : > { %v4333_v6 = vpop.f32.mrf.mxu0  ;;  %v3770_v8 = vsel %vm1584_vm14, 1.0, %v4570_v48 }
 0x161   : > { %vm1583_vm15 = vcmp.ge.f32.partialorder %v1225_v5, 0.0  ;;  %v1240_v7 = vadd.f32 %v4333_v6, %v4836_v37  ;;  %4487 = vmatprep.mubr.msk.bf16.mxu1 %vm1984_vm4, %v1931_v4 }
 0x162   : > { %v3769_v9 = vsel %vm1583_vm15, 1.0, %v4570_v48  ;;  %v1234_v10 = vpop.f32.mrf.mxu0 }
 0x163   : > { %v1932_v11 = vpack.c.bf16 %v3770_v8, %v3769_v9  ;;  %vm1586_vm0 = vcmp.ge.f32.partialorder %v1240_v7, 0.0  ;;  %v1235_v12 = vadd.f32 %v4836_v37, %v1234_v10 }
 0x164   : > { %v4336_v13 = vpop.f32.mrf.mxu0  ;;  %v3772_v15 = vsel %vm1586_vm0, 1.0, %v4570_v48 }
 0x165   : > { %vm1585_vm2 = vcmp.ge.f32.partialorder %v1235_v12, 0.0  ;;  %v1250_v14 = vadd.f32 %v4336_v13, %v4836_v37  ;;  %4488 = vmatmul.mubr.msk.bf16.gmra.mxu1 %vm1984_vm4, %v1932_v11  ;;  %v5127_v13 = vld [vmem:[%s6034_s2] ss:$0 sm:$0xff] }
 0x166   : > { %v3771_v16 = vsel %vm1585_vm2, 1.0, %v4570_v48  ;;  %v1244_v17 = vpop.f32.mrf.mxu0 }
 0x167   : > { %v1933_v18 = vpack.c.bf16 %v3772_v15, %v3771_v16  ;;  %vm1588_vm3 = vcmp.ge.f32.partialorder %v1250_v14, 0.0  ;;  %v1245_v19 = vadd.f32 %v4836_v37, %v1244_v17 }
 0x168   : > { %v4339_v20 = vpop.f32.mrf.mxu0  ;;  %v3774_v22 = vsel %vm1588_vm3, 1.0, %v4570_v48 }
 0x169   : > { %vm1587_vm5 = vcmp.ge.f32.partialorder %v1245_v19, 0.0  ;;  %v1260_v21 = vadd.f32 %v4339_v20, %v4836_v37  ;;  %4491 = vmatprep.mubr.msk.bf16.mxu1 %vm1984_vm4, %v1933_v18 }
 0x16a   : > { %v3773_v23 = vsel %vm1587_vm5, 1.0, %v4570_v48  ;;  %v1254_v24 = vpop.f32.mrf.mxu0 }
 0x16b   : > { %v1934_v25 = vpack.c.bf16 %v3774_v22, %v3773_v23  ;;  %vm1590_vm6 = vcmp.ge.f32.partialorder %v1260_v21, 0.0  ;;  %v1255_v26 = vadd.f32 %v4836_v37, %v1254_v24 }
 0x16c   : > { %v4342_v27 = vpop.f32.mrf.mxu0  ;;  %v3776_v29 = vsel %vm1590_vm6, 1.0, %v4570_v48 }
 0x16d   : > { %vm1589_vm1 = vcmp.ge.f32.partialorder %v1255_v26, 0.0  ;;  %v1270_v28 = vadd.f32 %v4342_v27, %v4836_v37  ;;  %4492 = vmatmul.mubr.msk.bf16.gmra.mxu1 %vm1984_vm4, %v1934_v25 }
 0x16e   : > { %v3775_v30 = vsel %vm1589_vm1, 1.0, %v4570_v48  ;;  %v1264_v31 = vpop.f32.mrf.mxu0 }
 0x16f   : > { %v1935_v32 = vpack.c.bf16 %v3776_v29, %v3775_v30  ;;  %vm1592_vm7 = vcmp.ge.f32.partialorder %v1270_v28, 0.0  ;;  %v1265_v33 = vadd.f32 %v4836_v37, %v1264_v31 }
 0x170   : > { %v4345_v34 = vpop.f32.mrf.mxu0  ;;  %v3778_v36 = vsel %vm1592_vm7, 1.0, %v4570_v48 }
 0x171   : > { %vm1591_vm8 = vcmp.ge.f32.partialorder %v1265_v33, 0.0  ;;  %v1280_v35 = vadd.f32 %v4345_v34, %v4836_v37  ;;  %4495 = vmatprep.mubr.msk.bf16.mxu1 %vm1984_vm4, %v1935_v32 }
 0x172   : > { %v3777_v38 = vsel %vm1591_vm8, 1.0, %v4570_v48  ;;  %v1274_v39 = vpop.f32.mrf.mxu0 }
 0x173   : > { %v1936_v40 = vpack.c.bf16 %v3778_v36, %v3777_v38  ;;  %vm1594_vm9 = vcmp.ge.f32.partialorder %v1280_v35, 0.0  ;;  %v1275_v41 = vadd.f32 %v4836_v37, %v1274_v39 }
 0x174   : > { %v4348_v42 = vpop.f32.mrf.mxu0  ;;  %v3780_v44 = vsel %vm1594_vm9, 1.0, %v4570_v48 }
 0x175   : > { %vm1593_vm10 = vcmp.ge.f32.partialorder %v1275_v41, 0.0  ;;  %v1290_v43 = vadd.f32 %v4348_v42, %v4836_v37  ;;  %4496 = vmatmul.mubr.msk.bf16.gmra.mxu1 %vm1984_vm4, %v1936_v40 }
 0x176   : > { %v3779_v45 = vsel %vm1593_vm10, 1.0, %v4570_v48  ;;  %v1284_v46 = vpop.f32.mrf.mxu0 }
 0x177   : > { %v1937_v47 = vpack.c.bf16 %v3780_v44, %v3779_v45  ;;  %vm1596_vm11 = vcmp.ge.f32.partialorder %v1290_v43, 0.0  ;;  %v1285_v49 = vadd.f32 %v4836_v37, %v1284_v46 }
 0x178   : > { %v4351_v50 = vpop.f32.mrf.mxu0  ;;  %v3782_v52 = vsel %vm1596_vm11, 1.0, %v4570_v48 }
 0x179   : > { %vm1595_vm12 = vcmp.ge.f32.partialorder %v1285_v49, 0.0  ;;  %v1300_v51 = vadd.f32 %v4351_v50, %v4836_v37  ;;  %4499 = vmatprep.mubr.msk.bf16.mxu1 %vm1984_vm4, %v1937_v47 }
 0x17a   : > { %v3781_v53 = vsel %vm1595_vm12, 1.0, %v4570_v48  ;;  %v1294_v54 = vpop.f32.mrf.mxu0 }
 0x17b   : > { %v1938_v55 = vpack.c.bf16 %v3782_v52, %v3781_v53  ;;  %vm1598_vm13 = vcmp.ge.f32.partialorder %v1300_v51, 0.0  ;;  %v1295_v56 = vadd.f32 %v4836_v37, %v1294_v54  ;;  %v5158_v51 = vld [vmem:[%s6036_s4] ss:$0 sm:$0xff] }
 0x17c   : > { %v4354_v57 = vpop.f32.mrf.mxu0  ;;  %v3784_v59 = vsel %vm1598_vm13, 1.0, %v4570_v48 }
 0x17d   : > { %vm1597_vm14 = vcmp.ge.f32.partialorder %v1295_v56, 0.0  ;;  %v1310_v58 = vadd.f32 %v4354_v57, %v4836_v37  ;;  %4500 = vmatmul.mubr.msk.bf16.gmra.mxu1 %vm1984_vm4, %v1938_v55 }
 0x17e   : > { %v3783_v60 = vsel %vm1597_vm14, 1.0, %v4570_v48  ;;  %v1304_v61 = vpop.f32.mrf.mxu0 }
 0x17f   : > { %v1939_v62 = vpack.c.bf16 %v3784_v59, %v3783_v60  ;;  %vm1600_vm15 = vcmp.ge.f32.partialorder %v1310_v58, 0.0  ;;  %v1305_v63 = vadd.f32 %v4836_v37, %v1304_v61  ;;  %v5168_v60 = vld [vmem:[%s6037_s5] ss:$0 sm:$0xff] }
 0x180   : > { %v4357_v0 = vpop.f32.mrf.mxu0  ;;  %v3786_v2 = vsel %vm1600_vm15, 1.0, %v4570_v48 }
 0x181   : > { %vm1599_vm0 = vcmp.ge.f32.partialorder %v1305_v63, 0.0  ;;  %v1320_v1 = vadd.f32 %v4357_v0, %v4836_v37  ;;  %4503 = vmatprep.mubr.msk.bf16.mxu1 %vm1984_vm4, %v1939_v62 }
 0x182   : > { %v3785_v3 = vsel %vm1599_vm0, 1.0, %v4570_v48  ;;  %v1314_v4 = vpop.f32.mrf.mxu0 }
 0x183   : > { %v1940_v5 = vpack.c.bf16 %v3786_v2, %v3785_v3  ;;  %vm1602_vm2 = vcmp.ge.f32.partialorder %v1320_v1, 0.0  ;;  %v1315_v6 = vadd.f32 %v4836_v37, %v1314_v4  ;;  %v5177_v3 = vld [vmem:[%s6038_s6] ss:$0 sm:$0xff] }
 0x184   : > { %v4360_v7 = vpop.f32.mrf.mxu0  ;;  %v3788_v9 = vsel %vm1602_vm2, 1.0, %v4570_v48 }
 0x185   : > { %vm1601_vm3 = vcmp.ge.f32.partialorder %v1315_v6, 0.0  ;;  %v1330_v8 = vadd.f32 %v4360_v7, %v4836_v37  ;;  %4504 = vmatmul.mubr.msk.bf16.gmra.mxu1 %vm1984_vm4, %v1940_v5 }
 0x186   : > { %v3787_v10 = vsel %vm1601_vm3, 1.0, %v4570_v48  ;;  %v1324_v11 = vpop.f32.mrf.mxu0 }
 0x187   : > { %v1941_v12 = vpack.c.bf16 %v3788_v9, %v3787_v10  ;;  %vm1604_vm5 = vcmp.ge.f32.partialorder %v1330_v8, 0.0  ;;  %v1325_v14 = vadd.f32 %v5127_v13, %v1324_v11 }
 0x188   : > { %v4363_v15 = vpop.f32.mrf.mxu0  ;;  %v3790_v16 = vsel %vm1604_vm5, 1.0, %v4570_v48 }
 0x189   : > { %vm1603_vm6 = vcmp.ge.f32.partialorder %v1325_v14, 0.0  ;;  %v1340_v37 = vadd.f32 %v5127_v13, %v4363_v15  ;;  %4507 = vmatprep.mubr.msk.bf16.mxu1 %vm1984_vm4, %v1941_v12 }
 0x18a   : > { %v3789_v17 = vsel %vm1603_vm6, 1.0, %v4570_v48  ;;  %v1334_v18 = vpop.f32.mrf.mxu0 }
 0x18b   : > { %v1942_v19 = vpack.c.bf16 %v3790_v16, %v3789_v17  ;;  %vm1606_vm1 = vcmp.ge.f32.partialorder %v1340_v37, 0.0  ;;  %v1335_v20 = vadd.f32 %v5127_v13, %v1334_v18 }
 0x18c   : > { %v4366_v21 = vpop.f32.mrf.mxu0  ;;  %v3792_v23 = vsel %vm1606_vm1, 1.0, %v4570_v48 }
 0x18d   : > { %vm1605_vm7 = vcmp.ge.f32.partialorder %v1335_v20, 0.0  ;;  %v1350_v22 = vadd.f32 %v5127_v13, %v4366_v21  ;;  %4508 = vmatmul.mubr.msk.bf16.gmra.mxu1 %vm1984_vm4, %v1942_v19 }
 0x18e   : > { %v3791_v24 = vsel %vm1605_vm7, 1.0, %v4570_v48  ;;  %v1344_v25 = vpop.f32.mrf.mxu0 }
 0x18f   : > { %v1943_v26 = vpack.c.bf16 %v3792_v23, %v3791_v24  ;;  %vm1608_vm8 = vcmp.ge.f32.partialorder %v1350_v22, 0.0  ;;  %v1345_v27 = vadd.f32 %v5127_v13, %v1344_v25 }
 0x190   : > { %v4369_v28 = vpop.f32.mrf.mxu0  ;;  %v3794_v30 = vsel %vm1608_vm8, 1.0, %v4570_v48 }
 0x191   : > { %vm1607_vm9 = vcmp.ge.f32.partialorder %v1345_v27, 0.0  ;;  %v1360_v29 = vadd.f32 %v5127_v13, %v4369_v28  ;;  %4511 = vmatprep.mubr.msk.bf16.mxu1 %vm1984_vm4, %v1943_v26 }
 0x192   : > { %v3793_v31 = vsel %vm1607_vm9, 1.0, %v4570_v48  ;;  %v1354_v32 = vpop.f32.mrf.mxu0 }
 0x193   : > { %v1944_v33 = vpack.c.bf16 %v3794_v30, %v3793_v31  ;;  %vm1610_vm10 = vcmp.ge.f32.partialorder %v1360_v29, 0.0  ;;  %v1355_v34 = vadd.f32 %v5127_v13, %v1354_v32 }
 0x194   : > { %v4372_v35 = vpop.f32.mrf.mxu0  ;;  %v3796_v38 = vsel %vm1610_vm10, 1.0, %v4570_v48 }
 0x195   : > { %vm1609_vm11 = vcmp.ge.f32.partialorder %v1355_v34, 0.0  ;;  %v1370_v36 = vadd.f32 %v5127_v13, %v4372_v35  ;;  %4512 = vmatmul.mubr.msk.bf16.gmra.mxu1 %vm1984_vm4, %v1944_v33 }
 0x196   : > { %v3795_v39 = vsel %vm1609_vm11, 1.0, %v4570_v48  ;;  %v1364_v40 = vpop.f32.mrf.mxu0 }
 0x197   : > { %v1945_v41 = vpack.c.bf16 %v3796_v38, %v3795_v39  ;;  %vm1612_vm12 = vcmp.ge.f32.partialorder %v1370_v36, 0.0  ;;  %v1365_v42 = vadd.f32 %v5127_v13, %v1364_v40 }
 0x198   : > { %v4375_v43 = vpop.f32.mrf.mxu0  ;;  %v3798_v45 = vsel %vm1612_vm12, 1.0, %v4570_v48 }
 0x199   : > { %vm1611_vm13 = vcmp.ge.f32.partialorder %v1365_v42, 0.0  ;;  %v1380_v44 = vadd.f32 %v5127_v13, %v4375_v43  ;;  %4515 = vmatprep.mubr.msk.bf16.mxu1 %vm1984_vm4, %v1945_v41 }
 0x19a   : > { %v3797_v46 = vsel %vm1611_vm13, 1.0, %v4570_v48  ;;  %v1374_v47 = vpop.f32.mrf.mxu0 }
 0x19b   : > { %v1946_v49 = vpack.c.bf16 %v3798_v45, %v3797_v46  ;;  %vm1614_vm14 = vcmp.ge.f32.partialorder %v1380_v44, 0.0  ;;  %v1375_v50 = vadd.f32 %v5127_v13, %v1374_v47 }
 0x19c   : > { %v4378_v52 = vpop.f32.mrf.mxu0  ;;  %v3800_v55 = vsel %vm1614_vm14, 1.0, %v4570_v48 }
 0x19d   : > { %vm1613_vm15 = vcmp.ge.f32.partialorder %v1375_v50, 0.0  ;;  %v1390_v53 = vadd.f32 %v5127_v13, %v4378_v52  ;;  %v4421_v54 = vpop.f32.mrf.mxu1  ;;  %4516 = vmatmul.mubr.msk.bf16.gmra.mxu1 %vm1984_vm4, %v1946_v49 }
 0x19e   : > { %v3799_v56 = vsel %vm1613_vm15, 1.0, %v4570_v48  ;;  %v2220_v57 = vadd.f32 %v4421_v54, %v5158_v51  ;;  %v1384_v58 = vpop.f32.mrf.mxu0 }
 0x19f   : > { %v1947_v59 = vpack.c.bf16 %v3800_v55, %v3799_v56  ;;  %vm1616_vm0 = vcmp.ge.f32.partialorder %v1390_v53, 0.0  ;;  %v1385_v61 = vadd.f32 %v5127_v13, %v1384_v58  ;;  %v2211_v62 = vpop.f32.mrf.mxu1 }
 0x1a0   : > { %vm2724_vm2 = vcmp.ge.f32.partialorder %v2220_v57, 0.0  ;;  %v2212_v63 = vadd.f32 %v5158_v51, %v2211_v62  ;;  %v4381_v0 = vpop.f32.mrf.mxu0  ;;  %v3802_v1 = vsel %vm1616_vm0, 1.0, %v4570_v48 }
 0x1a1   : > { %v3896_v2 = vsel %vm2724_vm2, 1.0, %v4570_v48  ;;  %vm1615_vm3 = vcmp.ge.f32.partialorder %v1385_v61, 0.0  ;;  %v1400_v4 = vadd.f32 %v5127_v13, %v4381_v0  ;;  %v4422_v5 = vpop.f32.mrf.mxu1  ;;  %4519 = vmatprep.mubr.msk.bf16.mxu1 %vm1984_vm4, %v1947_v59 }
 0x1a2   : > { %v3115_v6 = vmul.f32 %v5168_v60, %v3896_v2  ;;  %v3801_v7 = vsel %vm1615_vm3, 1.0, %v4570_v48  ;;  %vm2722_vm5 = vcmp.ge.f32.partialorder %v2212_v63, 0.0  ;;  %v2223_v8 = vadd.f32 %v4422_v5, %v5158_v51  ;;  %v1394_v9 = vpop.f32.mrf.mxu0 }
 0x1a3   : > { %v1948_v10 = vpack.c.bf16 %v3802_v1, %v3801_v7  ;;  %v3894_v11 = vsel %vm2722_vm5, 1.0, %v4570_v48  ;;  %vm1618_vm6 = vcmp.ge.f32.partialorder %v1400_v4, 0.0  ;;  %v1395_v12 = vadd.f32 %v5127_v13, %v1394_v9  ;;  %v2214_v14 = vpop.f32.mrf.mxu1 }
 0x1a4   : > { %v3250_v15 = vadd.f32 %v5177_v3, %v3115_v6  ;;  %v3113_v37 = vmul.f32 %v5168_v60, %v3894_v11  ;;  %v3804_v16 = vsel %vm1618_vm6, 1.0, %v4570_v48  ;;  %vm2725_vm1 = vcmp.ge.f32.partialorder %v2223_v8, 0.0  ;;  %v4384_v17 = vpop.f32.mrf.mxu0 }
 0x1a5   : > { %v3897_v18 = vsel %vm2725_vm1, 1.0, %v4570_v48  ;;  %vm1617_vm7 = vcmp.ge.f32.partialorder %v1395_v12, 0.0  ;;  %v2215_v19 = vadd.f32 %v5158_v51, %v2214_v14  ;;  %v1410_v20 = vadd.f32 %v5127_v13, %v4384_v17  ;;  %v4425_v21 = vpop.f32.mrf.mxu1  ;;  %4520 = vmatmul.mubr.msk.bf16.gmra.mxu1 %vm1984_vm4, %v1948_v10 }
 0x1a6   : > { %3378 = vst.msk [vmem:[%s5189_s27 + $0x10] sm:$0xff] %vm1984_vm4, %v3250_v15  ;;  %v3248_v22 = vadd.f32 %v5177_v3, %v3113_v37  ;;  %v3116_v23 = vmul.f32 %v5168_v60, %v3897_v18  ;;  %v3803_v24 = vsel %vm1617_vm7, 1.0, %v4570_v48  ;;  %v2236_v25 = vadd.f32 %v4425_v21, %v5158_v51  ;;  %v1404_v26 = vpop.f32.mrf.mxu0 }
 0x1a7   : > { %v1949_v27 = vpack.c.bf16 %v3804_v16, %v3803_v24  ;;  %vm2723_vm8 = vcmp.ge.f32.partialorder %v2215_v19, 0.0  ;;  %vm1620_vm9 = vcmp.ge.f32.partialorder %v1410_v20, 0.0  ;;  %v1405_v28 = vadd.f32 %v5127_v13, %v1404_v26  ;;  %v2227_v29 = vpop.f32.mrf.mxu1 }
 0x1a8   : > { %3376 = vst.msk [vmem:[%s5189_s27] sm:$0xff] %vm1984_vm4, %v3248_v22  ;;  %v3251_v30 = vadd.f32 %v5177_v3, %v3116_v23  ;;  %v3895_v31 = vsel %vm2723_vm8, 1.0, %v4570_v48  ;;  %v3806_v32 = vsel %vm1620_vm9, 1.0, %v4570_v48  ;;  %vm2728_vm10 = vcmp.ge.f32.partialorder %v2236_v25, 0.0  ;;  %v4387_v33 = vpop.f32.mrf.mxu0 }
 0x1a9   : > { %v3114_v34 = vmul.f32 %v5168_v60, %v3895_v31  ;;  %v3900_v35 = vsel %vm2728_vm10, 1.0, %v4570_v48  ;;  %vm1619_vm11 = vcmp.ge.f32.partialorder %v1405_v28, 0.0  ;;  %v2228_v36 = vadd.f32 %v5158_v51, %v2227_v29  ;;  %v4426_v38 = vpop.f32.mrf.mxu1  ;;  %4523 = vmatprep.mubr.msk.bf16.mxu1 %vm1984_vm4, %v1949_v27 }
 0x1aa   : > { %3379 = vst.msk [vmem:[%s5189_s27 + $0x18] sm:$0xff] %vm1984_vm4, %v3251_v30  ;;  %v3119_v39 = vmul.f32 %v5168_v60, %v3900_v35  ;;  %v3805_v40 = vsel %vm1619_vm11, 1.0, %v4570_v48  ;;  %v1420_v41 = vadd.f32 %v5127_v13, %v4387_v33  ;;  %v2239_v42 = vadd.f32 %v4426_v38, %v5158_v51  ;;  %v1414_v43 = vpop.f32.mrf.mxu0 }
 0x1ab   : > { %v3249_v44 = vadd.f32 %v5177_v3, %v3114_v34  ;;  %v1950_v45 = vpack.c.bf16 %v3806_v32, %v3805_v40  ;;  %vm2726_vm12 = vcmp.ge.f32.partialorder %v2228_v36, 0.0  ;;  %v1415_v46 = vadd.f32 %v5127_v13, %v1414_v43  ;;  %v2230_v47 = vpop.f32.mrf.mxu1 }
 0x1ac   : > { %v3254_v49 = vadd.f32 %v5177_v3, %v3119_v39  ;;  %v3898_v50 = vsel %vm2726_vm12, 1.0, %v4570_v48  ;;  %vm1622_vm13 = vcmp.ge.f32.partialorder %v1420_v41, 0.0  ;;  %vm2729_vm14 = vcmp.ge.f32.partialorder %v2239_v42, 0.0  ;;  %v4390_v52 = vpop.f32.mrf.mxu0 }
 0x1ad   : > { %3377 = vst.msk [vmem:[%s5189_s27 + $0x8] sm:$0xff] %vm1984_vm4, %v3249_v44  ;;  %v3117_v53 = vmul.f32 %v5168_v60, %v3898_v50  ;;  %v3808_v54 = vsel %vm1622_vm13, 1.0, %v4570_v48  ;;  %v3901_v55 = vsel %vm2729_vm14, 1.0, %v4570_v48  ;;  %vm1621_vm15 = vcmp.ge.f32.partialorder %v1415_v46, 0.0  ;;  %v4429_v56 = vpop.f32.mrf.mxu1  ;;  %4524 = vmatmul.mubr.msk.bf16.gmra.mxu1 %vm1984_vm4, %v1950_v45 }
 0x1ae   : > { %3382 = vst.msk [vmem:[%s5189_s27 + $0x30] sm:$0xff] %vm1984_vm4, %v3254_v49  ;;  %v3120_v57 = vmul.f32 %v5168_v60, %v3901_v55  ;;  %v3807_v58 = vsel %vm1621_vm15, 1.0, %v4570_v48  ;;  %v2231_v59 = vadd.f32 %v5158_v51, %v2230_v47  ;;  %v1430_v61 = vadd.f32 %v5127_v13, %v4390_v52  ;;  %v1424_v62 = vpop.f32.mrf.mxu0 }
 0x1af   : > { %v3252_v63 = vadd.f32 %v5177_v3, %v3117_v53  ;;  %v1951_v0 = vpack.c.bf16 %v3808_v54, %v3807_v58  ;;  %v2252_v1 = vadd.f32 %v4429_v56, %v5158_v51  ;;  %v1425_v2 = vadd.f32 %v5127_v13, %v1424_v62  ;;  %v2243_v4 = vpop.f32.mrf.mxu1 }
 0x1b0   : > { %v3255_v5 = vadd.f32 %v5177_v3, %v3120_v57  ;;  %vm2727_vm0 = vcmp.ge.f32.partialorder %v2231_v59, 0.0  ;;  %vm1624_vm2 = vcmp.ge.f32.partialorder %v1430_v61, 0.0  ;;  %v2244_v6 = vadd.f32 %v5158_v51, %v2243_v4  ;;  %v4393_v7 = vpop.f32.mrf.mxu0 }
 0x1b1   : > { %3380 = vst.msk [vmem:[%s5189_s27 + $0x20] sm:$0xff] %vm1984_vm4, %v3252_v63  ;;  %v3899_v8 = vsel %vm2727_vm0, 1.0, %v4570_v48  ;;  %v3810_v9 = vsel %vm1624_vm2, 1.0, %v4570_v48  ;;  %vm2732_vm3 = vcmp.ge.f32.partialorder %v2252_v1, 0.0  ;;  %vm1623_vm5 = vcmp.ge.f32.partialorder %v1425_v2, 0.0  ;;  %v4430_v10 = vpop.f32.mrf.mxu1  ;;  %4527 = vmatprep.mubr.msk.bf16.mxu1 %vm1984_vm4, %v1951_v0 }
 0x1b2   : > { %3383 = vst.msk [vmem:[%s5189_s27 + $0x38] sm:$0xff] %vm1984_vm4, %v3255_v5  ;;  %v3118_v11 = vmul.f32 %v5168_v60, %v3899_v8  ;;  %v3904_v12 = vsel %vm2732_vm3, 1.0, %v4570_v48  ;;  %v3809_v14 = vsel %vm1623_vm5, 1.0, %v4570_v48  ;;  %vm2730_vm6 = vcmp.ge.f32.partialorder %v2244_v6, 0.0  ;;  %v1434_v15 = vpop.f32.mrf.mxu0 }
 0x1b3   : > { %v3123_v37 = vmul.f32 %v5168_v60, %v3904_v12  ;;  %v1952_v16 = vpack.c.bf16 %v3810_v9, %v3809_v14  ;;  %v3902_v17 = vsel %vm2730_vm6, 1.0, %v4570_v48  ;;  %v1440_v18 = vadd.f32 %v5127_v13, %v4393_v7  ;;  %v2246_v19 = vpop.f32.mrf.mxu1 }
 0x1b4   : > { %v3253_v20 = vadd.f32 %v5177_v3, %v3118_v11  ;;  %v3121_v21 = vmul.f32 %v5168_v60, %v3902_v17  ;;  %v2255_v22 = vadd.f32 %v4430_v10, %v5158_v51  ;;  %v1435_v23 = vadd.f32 %v5127_v13, %v1434_v15  ;;  %v4396_v24 = vpop.f32.mrf.mxu0 }
 0x1b5   : > { %v3258_v25 = vadd.f32 %v5177_v3, %v3123_v37  ;;  %vm1626_vm1 = vcmp.ge.f32.partialorder %v1440_v18, 0.0  ;;  %v2247_v26 = vadd.f32 %v5158_v51, %v2246_v19  ;;  %v1450_v27 = vadd.f32 %v5127_v13, %v4396_v24  ;;  %v4433_v28 = vpop.f32.mrf.mxu1  ;;  %4528 = vmatmul.mubr.msk.bf16.gmra.mxu1 %vm1984_vm4, %v1952_v16 }
 0x1b6   : > { %3381 = vst.msk [vmem:[%s5189_s27 + $0x28] sm:$0xff] %vm1984_vm4, %v3253_v20  ;;  %v3256_v29 = vadd.f32 %v5177_v3, %v3121_v21  ;;  %v3812_v30 = vsel %vm1626_vm1, 1.0, %v4570_v48  ;;  %vm2733_vm7 = vcmp.ge.f32.partialorder %v2255_v22, 0.0  ;;  %vm1625_vm8 = vcmp.ge.f32.partialorder %v1435_v23, 0.0  ;;  %v1444_v31 = vpop.f32.mrf.mxu0 }
 0x1b7   : > { %3386 = vst.msk [vmem:[%s5189_s27 + $0x50] sm:$0xff] %vm1984_vm4, %v3258_v25  ;;  %v3905_v32 = vsel %vm2733_vm7, 1.0, %v4570_v48  ;;  %v3811_v33 = vsel %vm1625_vm8, 1.0, %v4570_v48  ;;  %vm2731_vm9 = vcmp.ge.f32.partialorder %v2247_v26, 0.0  ;;  %vm1628_vm10 = vcmp.ge.f32.partialorder %v1450_v27, 0.0  ;;  %v2259_v34 = vpop.f32.mrf.mxu1 }
 0x1b8   : > { %3384 = vst.msk [vmem:[%s5189_s27 + $0x40] sm:$0xff] %vm1984_vm4, %v3256_v29  ;;  %v3124_v35 = vmul.f32 %v5168_v60, %v3905_v32  ;;  %v1953_v36 = vpack.c.bf16 %v3812_v30, %v3811_v33  ;;  %v3903_v38 = vsel %vm2731_vm9, 1.0, %v4570_v48  ;;  %v4399_v39 = vpop.f32.mrf.mxu0  ;;  %v2268_v41 = vadd.f32 %v4433_v28, %v5158_v51 }
 0x1b9   : > { %v3122_v40 = vmul.f32 %v5168_v60, %v3903_v38  ;;  %v1445_v42 = vadd.f32 %v5127_v13, %v1444_v31  ;;  %v2260_v43 = vadd.f32 %v5158_v51, %v2259_v34  ;;  %v4434_v44 = vpop.f32.mrf.mxu1  ;;  %v3814_v46 = vsel %vm1628_vm10, 1.0, %v4570_v48 }
 0x1ba   : > { %v3259_v45 = vadd.f32 %v5177_v3, %v3124_v35  ;;  %v1460_v47 = vadd.f32 %v5127_v13, %v4399_v39  ;;  %v2271_v49 = vadd.f32 %v4434_v44, %v5158_v51  ;;  %4531 = vmatprep.mubr.msk.bf16.mxu1 %vm1984_vm4, %v1953_v36  ;;  %v1454_v50 = vpop.f32.mrf.mxu0  ;;  %vm2736_vm11 = vcmp.ge.f32.partialorder %v2268_v41, 0.0 }
 0x1bb   : > { %v3257_v52 = vadd.f32 %v5177_v3, %v3122_v40  ;;  %vm1627_vm12 = vcmp.ge.f32.partialorder %v1445_v42, 0.0  ;;  %vm2734_vm13 = vcmp.ge.f32.partialorder %v2260_v43, 0.0  ;;  %v2262_v53 = vpop.f32.mrf.mxu1  ;;  %v3908_v54 = vsel %vm2736_vm11, 1.0, %v4570_v48 }
 0x1bc   : > { %3387 = vst.msk [vmem:[%s5189_s27 + $0x58] sm:$0xff] %vm1984_vm4, %v3259_v45  ;;  %v3813_v55 = vsel %vm1627_vm12, 1.0, %v4570_v48  ;;  %v3906_v56 = vsel %vm2734_vm13, 1.0, %v4570_v48  ;;  %vm1630_vm14 = vcmp.ge.f32.partialorder %v1460_v47, 0.0  ;;  %v4402_v57 = vpop.f32.mrf.mxu0  ;;  %v3127_v58 = vmul.f32 %v5168_v60, %v3908_v54 }
 0x1bd   : > { %3385 = vst.msk [vmem:[%s5189_s27 + $0x48] sm:$0xff] %vm1984_vm4, %v3257_v52  ;;  %v1954_v59 = vpack.c.bf16 %v3814_v46, %v3813_v55  ;;  %v3125_v61 = vmul.f32 %v5168_v60, %v3906_v56  ;;  %v3816_v62 = vsel %vm1630_vm14, 1.0, %v4570_v48  ;;  %v4437_v63 = vpop.f32.mrf.mxu1  ;;  %vm2737_vm15 = vcmp.ge.f32.partialorder %v2271_v49, 0.0 }
 0x1be   : > { %v1455_v0 = vadd.f32 %v5127_v13, %v1454_v50  ;;  %v2263_v1 = vadd.f32 %v5158_v51, %v2262_v53  ;;  %v1470_v2 = vadd.f32 %v5127_v13, %v4402_v57  ;;  %v1464_v4 = vpop.f32.mrf.mxu0  ;;  %v3262_v5 = vadd.f32 %v5177_v3, %v3127_v58 }
 0x1bf   : > { %v3260_v6 = vadd.f32 %v5177_v3, %v3125_v61  ;;  %v3909_v7 = vsel %vm2737_vm15, 1.0, %v4570_v48  ;;  %v2284_v8 = vadd.f32 %v4437_v63, %v5158_v51  ;;  %4532 = vmatmul.mubr.msk.bf16.gmra.mxu1 %vm1984_vm4, %v1954_v59  ;;  %v2275_v9 = vpop.f32.mrf.mxu1  ;;  %v1465_v22 = vadd.f32 %v5127_v13, %v1464_v4 }
 0x1c0   : > { %v3128_v10 = vmul.f32 %v5168_v60, %v3909_v7  ;;  %vm1629_vm0 = vcmp.ge.f32.partialorder %v1455_v0, 0.0  ;;  %vm2735_vm2 = vcmp.ge.f32.partialorder %v2263_v1, 0.0  ;;  %vm1632_vm3 = vcmp.ge.f32.partialorder %v1470_v2, 0.0  ;;  %v4405_v11 = vpop.f32.mrf.mxu0  ;;  %3390 = vst.msk [vmem:[%s5189_s27 + $0x70] sm:$0xff] %vm1984_vm4, %v3262_v5 }
 0x1c1   : > { %3388 = vst.msk [vmem:[%s5189_s27 + $0x60] sm:$0xff] %vm1984_vm4, %v3260_v6  ;;  %v3815_v12 = vsel %vm1629_vm0, 1.0, %v4570_v48  ;;  %v3907_v14 = vsel %vm2735_vm2, 1.0, %v4570_v48  ;;  %v3818_v15 = vsel %vm1632_vm3, 1.0, %v4570_v48  ;;  %vm2740_vm5 = vcmp.ge.f32.partialorder %v2284_v8, 0.0  ;;  %v4438_v37 = vpop.f32.mrf.mxu1 }
 0x1c2   : > { %v3263_v16 = vadd.f32 %v5177_v3, %v3128_v10  ;;  %v1955_v17 = vpack.c.bf16 %v3816_v62, %v3815_v12  ;;  %v3126_v18 = vmul.f32 %v5168_v60, %v3907_v14  ;;  %v3912_v19 = vsel %vm2740_vm5, 1.0, %v4570_v48  ;;  %v1474_v20 = vpop.f32.mrf.mxu0 }
 0x1c3   : > { %v3131_v21 = vmul.f32 %v5168_v60, %v3912_v19  ;;  %v2276_v23 = vadd.f32 %v5158_v51, %v2275_v9  ;;  %v1480_v24 = vadd.f32 %v5127_v13, %v4405_v11  ;;  %v2278_v25 = vpop.f32.mrf.mxu1  ;;  %v2287_v27 = vadd.f32 %v4438_v37, %v5158_v51 }
 0x1c4   : > { %3391 = vst.msk [vmem:[%s5189_s27 + $0x78] sm:$0xff] %vm1984_vm4, %v3263_v16  ;;  %v3261_v26 = vadd.f32 %v5177_v3, %v3126_v18  ;;  %4535 = vmatprep.mubr.msk.bf16.mxu1 %vm1984_vm4, %v1955_v17  ;;  %v1475_v28 = vadd.f32 %v5127_v13, %v1474_v20  ;;  %v2279_v29 = vadd.f32 %v5158_v51, %v2278_v25  ;;  %v4408_v30 = vpop.f32.mrf.mxu0  ;;  %vm1631_vm6 = vcmp.ge.f32.partialorder %v1465_v22, 0.0 }
 0x1c5   : > { %v3266_v31 = vadd.f32 %v5177_v3, %v3131_v21  ;;  %vm2738_vm1 = vcmp.ge.f32.partialorder %v2276_v23, 0.0  ;;  %vm1634_vm7 = vcmp.ge.f32.partialorder %v1480_v24, 0.0  ;;  %v4441_v32 = vpop.f32.mrf.mxu1  ;;  %v3817_v33 = vsel %vm1631_vm6, 1.0, %v4570_v48 }
 0x1c6   : > { %3389 = vst.msk [vmem:[%s5189_s27 + $0x68] sm:$0xff] %vm1984_vm4, %v3261_v26  ;;  %v3910_v34 = vsel %vm2738_vm1, 1.0, %v4570_v48  ;;  %v3820_v35 = vsel %vm1634_vm7, 1.0, %v4570_v48  ;;  %vm2741_vm8 = vcmp.ge.f32.partialorder %v2287_v27, 0.0  ;;  %v1484_v36 = vpop.f32.mrf.mxu0  ;;  %v1956_v38 = vpack.c.bf16 %v3818_v15, %v3817_v33 }
 0x1c7   : > { %3394 = vst.msk [vmem:[%s5189_s27 + $0x90] sm:$0xff] %vm1984_vm4, %v3266_v31  ;;  %v3129_v39 = vmul.f32 %v5168_v60, %v3910_v34  ;;  %v3913_v40 = vsel %vm2741_vm8, 1.0, %v4570_v48  ;;  %vm1633_vm9 = vcmp.ge.f32.partialorder %v1475_v28, 0.0  ;;  %v2291_v41 = vpop.f32.mrf.mxu1  ;;  %vm2739_vm10 = vcmp.ge.f32.partialorder %v2279_v29, 0.0 }
 0x1c8   : > { %v3132_v42 = vmul.f32 %v5168_v60, %v3913_v40  ;;  %v3819_v43 = vsel %vm1633_vm9, 1.0, %v4570_v48  ;;  %v1490_v44 = vadd.f32 %v5127_v13, %v4408_v30  ;;  %v4411_v45 = vpop.f32.mrf.mxu0  ;;  %v3911_v49 = vsel %vm2739_vm10, 1.0, %v4570_v48  ;;  %4536 = vmatmul.mubr.msk.bf16.gmra.mxu1 %vm1984_vm4, %v1956_v38 }
 0x1c9   : > { %v3264_v46 = vadd.f32 %v5177_v3, %v3129_v39  ;;  %v1957_v47 = vpack.c.bf16 %v3820_v35, %v3819_v43  ;;  %v2300_v50 = vadd.f32 %v4441_v32, %v5158_v51  ;;  %v4442_v52 = vpop.f32.mrf.mxu1  ;;  %v3130_v54 = vmul.f32 %v5168_v60, %v3911_v49 }
 0x1ca   : > { %v3267_v53 = vadd.f32 %v5177_v3, %v3132_v42  ;;  %vm1636_vm11 = vcmp.ge.f32.partialorder %v1490_v44, 0.0  ;;  %v1485_v55 = vadd.f32 %v5127_v13, %v1484_v36  ;;  %v1494_v56 = vpop.f32.mrf.mxu0  ;;  %v2292_v58 = vadd.f32 %v5158_v51, %v2291_v41 }
 0x1cb   : > { %3392 = vst.msk [vmem:[%s5189_s27 + $0x80] sm:$0xff] %vm1984_vm4, %v3264_v46  ;;  %v3822_v57 = vsel %vm1636_vm11, 1.0, %v4570_v48  ;;  %vm2744_vm12 = vcmp.ge.f32.partialorder %v2300_v50, 0.0  ;;  %v1500_v59 = vadd.f32 %v5127_v13, %v4411_v45  ;;  %4539 = vmatprep.mubr.msk.bf16.mxu1 %vm1984_vm4, %v1957_v47  ;;  %v2294_v61 = vpop.f32.mrf.mxu1  ;;  %v3265_v62 = vadd.f32 %v5177_v3, %v3130_v54 }
 0x1cc   : > { %3395 = vst.msk [vmem:[%s5189_s27 + $0x98] sm:$0xff] %vm1984_vm4, %v3267_v53  ;;  %v3916_v63 = vsel %vm2744_vm12, 1.0, %v4570_v48  ;;  %vm1635_vm13 = vcmp.ge.f32.partialorder %v1485_v55, 0.0  ;;  %v2303_v0 = vadd.f32 %v4442_v52, %v5158_v51  ;;  %v4414_v1 = vpop.f32.mrf.mxu0  ;;  %vm2742_vm14 = vcmp.ge.f32.partialorder %v2292_v58, 0.0 }
 0x1cd   : > { %v3135_v2 = vmul.f32 %v5168_v60, %v3916_v63  ;;  %v3821_v4 = vsel %vm1635_vm13, 1.0, %v4570_v48  ;;  %vm1638_vm15 = vcmp.ge.f32.partialorder %v1500_v59, 0.0  ;;  %v4445_v5 = vpop.f32.mrf.mxu1  ;;  %3393 = vst.msk [vmem:[%s5189_s27 + $0x88] sm:$0xff] %vm1984_vm4, %v3265_v62  ;;  %v3914_v7 = vsel %vm2742_vm14, 1.0, %v4570_v48 }
 0x1ce   : > { %v1958_v6 = vpack.c.bf16 %v3822_v57, %v3821_v4  ;;  %v3824_v8 = vsel %vm1638_vm15, 1.0, %v4570_v48  ;;  %vm2745_vm0 = vcmp.ge.f32.partialorder %v2303_v0, 0.0  ;;  %v1504_v9 = vpop.f32.mrf.mxu0  ;;  %v3133_v11 = vmul.f32 %v5168_v60, %v3914_v7 }
 0x1cf   : > { %v3270_v10 = vadd.f32 %v5177_v3, %v3135_v2  ;;  %v3917_v12 = vsel %vm2745_vm0, 1.0, %v4570_v48  ;;  %v1495_v14 = vadd.f32 %v5127_v13, %v1494_v56  ;;  %v2307_v15 = vpop.f32.mrf.mxu1  ;;  %v2295_v16 = vadd.f32 %v5158_v51, %v2294_v61 }
 0x1d0   : > { %v3136_v37 = vmul.f32 %v5168_v60, %v3917_v12  ;;  %v1510_v17 = vadd.f32 %v5127_v13, %v4414_v1  ;;  %v2316_v18 = vadd.f32 %v4445_v5, %v5158_v51  ;;  %v3268_v19 = vadd.f32 %v5177_v3, %v3133_v11  ;;  %4540 = vmatmul.mubr.msk.bf16.gmra.mxu1 %vm1984_vm4, %v1958_v6 }
 0x1d1   : > { %3398 = vst.msk [vmem:[%s5189_s27 + $0xb0] sm:$0xff] %vm1984_vm4, %v3270_v10  ;;  %vm1637_vm2 = vcmp.ge.f32.partialorder %v1495_v14, 0.0  ;;  %v1505_v20 = vadd.f32 %v5127_v13, %v1504_v9  ;;  %v2308_v21 = vadd.f32 %v5158_v51, %v2307_v15  ;;  %v4446_v22 = vpop.f32.mrf.mxu1  ;;  %vm2743_vm3 = vcmp.ge.f32.partialorder %v2295_v16, 0.0 }
 0x1d2   : > { %v3271_v23 = vadd.f32 %v5177_v3, %v3136_v37  ;;  %v3823_v24 = vsel %vm1637_vm2, 1.0, %v4570_v48  ;;  %vm1640_vm5 = vcmp.ge.f32.partialorder %v1510_v17, 0.0  ;;  %3396 = vst.msk [vmem:[%s5189_s27 + $0xa0] sm:$0xff] %vm1984_vm4, %v3268_v19  ;;  %v3915_v26 = vsel %vm2743_vm3, 1.0, %v4570_v48 }
 0x1d3   : > { %v1959_v25 = vpack.c.bf16 %v3824_v8, %v3823_v24  ;;  %v3826_v27 = vsel %vm1640_vm5, 1.0, %v4570_v48  ;;  %vm2748_vm6 = vcmp.ge.f32.partialorder %v2316_v18, 0.0  ;;  %v2310_v28 = vpop.f32.mrf.mxu1  ;;  %v3134_v13 = vmul.f32 %v5168_v60, %v3915_v26 }
 0x1d4   : > { %3399 = vst.msk [vmem:[%s5189_s27 + $0xb8] sm:$0xff] %vm1984_vm4, %v3271_v23  ;;  %v3920_v29 = vsel %vm2748_vm6, 1.0, %v4570_v48  ;;  %vm1639_vm1 = vcmp.ge.f32.partialorder %v1505_v20, 0.0  ;;  %vm2746_vm7 = vcmp.ge.f32.partialorder %v2308_v21, 0.0  ;;  %v2319_v33 = vadd.f32 %v4446_v22, %v5158_v51 }
 0x1d5   : > { %v3139_v30 = vmul.f32 %v5168_v60, %v3920_v29  ;;  %v3825_v31 = vsel %vm1639_vm1, 1.0, %v4570_v48  ;;  %v3918_v32 = vsel %vm2746_vm7, 1.0, %v4570_v48  ;;  %4543 = vmatprep.mubr.msk.bf16.mxu1 %vm1984_vm4, %v1959_v25  ;;  %v4449_v34 = vpop.f32.mrf.mxu1  ;;  %v3269_v35 = vadd.f32 %v5177_v3, %v3134_v13 }
 0x1d6   : > { %v1960_v36 = vpack.c.bf16 %v3826_v27, %v3825_v31  ;;  %v3137_v38 = vmul.f32 %v5168_v60, %v3918_v32  ;;  %v2311_v39 = vadd.f32 %v5158_v51, %v2310_v28  ;;  %vm2749_vm8 = vcmp.ge.f32.partialorder %v2319_v33, 0.0 }
 0x1d7   : > { %v3274_v40 = vadd.f32 %v5177_v3, %v3139_v30  ;;  %v2332_v41 = vadd.f32 %v4449_v34, %v5158_v51  ;;  %v2323_v42 = vpop.f32.mrf.mxu1  ;;  %3397 = vst.msk [vmem:[%s5189_s27 + $0xa8] sm:$0xff] %vm1984_vm4, %v3269_v35  ;;  %v3921_v44 = vsel %vm2749_vm8, 1.0, %v4570_v48 }
 0x1d8   : > { %v3272_v43 = vadd.f32 %v5177_v3, %v3137_v38  ;;  %vm2747_vm9 = vcmp.ge.f32.partialorder %v2311_v39, 0.0  ;;  %v2324_v45 = vadd.f32 %v5158_v51, %v2323_v42  ;;  %v3140_v46 = vmul.f32 %v5168_v60, %v3921_v44  ;;  %4544 = vmatmul.mubr.msk.bf16.gmra.mxu1 %vm1984_vm4, %v1960_v36 }
 0x1d9   : > { %3402 = vst.msk [vmem:[%s5189_s27 + $0xd0] sm:$0xff] %vm1984_vm4, %v3274_v40  ;;  %v3919_v47 = vsel %vm2747_vm9, 1.0, %v4570_v48  ;;  %vm2752_vm10 = vcmp.ge.f32.partialorder %v2332_v41, 0.0  ;;  %v4450_v49 = vpop.f32.mrf.mxu1 }
 0x1da   : > { %3400 = vst.msk [vmem:[%s5189_s27 + $0xc0] sm:$0xff] %vm1984_vm4, %v3272_v43  ;;  %v3138_v50 = vmul.f32 %v5168_v60, %v3919_v47  ;;  %v3924_v52 = vsel %vm2752_vm10, 1.0, %v4570_v48  ;;  %vm2750_vm11 = vcmp.ge.f32.partialorder %v2324_v45, 0.0  ;;  %v2335_v53 = vadd.f32 %v4450_v49, %v5158_v51 }
 0x1db   : > { %v3275_v54 = vadd.f32 %v5177_v3, %v3140_v46  ;;  %v3143_v55 = vmul.f32 %v5168_v60, %v3924_v52  ;;  %v3922_v56 = vsel %vm2750_vm11, 1.0, %v4570_v48  ;;  %v2326_v57 = vpop.f32.mrf.mxu1 }
 0x1dc   : > { %v3273_v58 = vadd.f32 %v5177_v3, %v3138_v50  ;;  %v3141_v59 = vmul.f32 %v5168_v60, %v3922_v56  ;;  %vm2753_vm12 = vcmp.ge.f32.partialorder %v2335_v53, 0.0  ;;  %v2327_v61 = vadd.f32 %v5158_v51, %v2326_v57 }
 0x1dd   : > { %3403 = vst.msk [vmem:[%s5189_s27 + $0xd8] sm:$0xff] %vm1984_vm4, %v3275_v54  ;;  %v3278_v62 = vadd.f32 %v5177_v3, %v3143_v55  ;;  %v3925_v63 = vsel %vm2753_vm12, 1.0, %v4570_v48  ;;  %v4453_v0 = vpop.f32.mrf.mxu1 }
 0x1de   : > { %3401 = vst.msk [vmem:[%s5189_s27 + $0xc8] sm:$0xff] %vm1984_vm4, %v3273_v58  ;;  %v3276_v1 = vadd.f32 %v5177_v3, %v3141_v59  ;;  %v3144_v2 = vmul.f32 %v5168_v60, %v3925_v63  ;;  %vm2751_vm13 = vcmp.ge.f32.partialorder %v2327_v61, 0.0  ;;  %v2348_v4 = vadd.f32 %v4453_v0, %v5158_v51 }
 0x1df   : > { %3406 = vst.msk [vmem:[%s5189_s27 + $0xf0] sm:$0xff] %vm1984_vm4, %v3278_v62  ;;  %v3923_v5 = vsel %vm2751_vm13, 1.0, %v4570_v48  ;;  %v2339_v6 = vpop.f32.mrf.mxu1 }
 0x1e0   : > { %3404 = vst.msk [vmem:[%s5189_s27 + $0xe0] sm:$0xff] %vm1984_vm4, %v3276_v1  ;;  %v3279_v7 = vadd.f32 %v5177_v3, %v3144_v2  ;;  %v3142_v8 = vmul.f32 %v5168_v60, %v3923_v5  ;;  %vm2756_vm14 = vcmp.ge.f32.partialorder %v2348_v4, 0.0  ;;  %v2340_v9 = vadd.f32 %v5158_v51, %v2339_v6 }
 0x1e1   : > { %v3928_v10 = vsel %vm2756_vm14, 1.0, %v4570_v48  ;;  %v4454_v11 = vpop.f32.mrf.mxu1 }
 0x1e2   : > { %3407 = vst.msk [vmem:[%s5189_s27 + $0xf8] sm:$0xff] %vm1984_vm4, %v3279_v7  ;;  %v3277_v12 = vadd.f32 %v5177_v3, %v3142_v8  ;;  %v3147_v14 = vmul.f32 %v5168_v60, %v3928_v10  ;;  %vm2754_vm15 = vcmp.ge.f32.partialorder %v2340_v9, 0.0  ;;  %v2351_v15 = vadd.f32 %v4454_v11, %v5158_v51 }
 0x1e3   : > { %v3926_v37 = vsel %vm2754_vm15, 1.0, %v4570_v48  ;;  %v2342_v16 = vpop.f32.mrf.mxu1 }
 0x1e4   : > { %3405 = vst.msk [vmem:[%s5189_s27 + $0xe8] sm:$0xff] %vm1984_vm4, %v3277_v12  ;;  %v3282_v17 = vadd.f32 %v5177_v3, %v3147_v14  ;;  %v3145_v18 = vmul.f32 %v5168_v60, %v3926_v37  ;;  %vm2757_vm0 = vcmp.ge.f32.partialorder %v2351_v15, 0.0  ;;  %v2343_v19 = vadd.f32 %v5158_v51, %v2342_v16 }
 0x1e5   : > { %v3929_v20 = vsel %vm2757_vm0, 1.0, %v4570_v48  ;;  %v4457_v21 = vpop.f32.mrf.mxu1 }
 0x1e6   : > { %3410 = vst.msk [vmem:[%s5189_s27 + $0x110] sm:$0xff] %vm1984_vm4, %v3282_v17  ;;  %v3280_v22 = vadd.f32 %v5177_v3, %v3145_v18  ;;  %v3148_v23 = vmul.f32 %v5168_v60, %v3929_v20  ;;  %vm2755_vm2 = vcmp.ge.f32.partialorder %v2343_v19, 0.0  ;;  %v2364_v24 = vadd.f32 %v4457_v21, %v5158_v51 }
 0x1e7   : > { %v3927_v25 = vsel %vm2755_vm2, 1.0, %v4570_v48  ;;  %v2355_v26 = vpop.f32.mrf.mxu1 }
 0x1e8   : > { %3408 = vst.msk [vmem:[%s5189_s27 + $0x100] sm:$0xff] %vm1984_vm4, %v3280_v22  ;;  %v3283_v27 = vadd.f32 %v5177_v3, %v3148_v23  ;;  %v3146_v28 = vmul.f32 %v5168_v60, %v3927_v25  ;;  %vm2760_vm3 = vcmp.ge.f32.partialorder %v2364_v24, 0.0  ;;  %v2356_v13 = vadd.f32 %v5158_v51, %v2355_v26 }
 0x1e9   : > { %v3932_v29 = vsel %vm2760_vm3, 1.0, %v4570_v48  ;;  %v4458_v30 = vpop.f32.mrf.mxu1 }
 0x1ea   : > { %3411 = vst.msk [vmem:[%s5189_s27 + $0x118] sm:$0xff] %vm1984_vm4, %v3283_v27  ;;  %v3281_v31 = vadd.f32 %v5177_v3, %v3146_v28  ;;  %v3151_v32 = vmul.f32 %v5168_v60, %v3932_v29  ;;  %vm2758_vm5 = vcmp.ge.f32.partialorder %v2356_v13, 0.0  ;;  %v2367_v33 = vadd.f32 %v4458_v30, %v5158_v51 }
 0x1eb   : > { %v3930_v34 = vsel %vm2758_vm5, 1.0, %v4570_v48  ;;  %v2358_v35 = vpop.f32.mrf.mxu1 }
 0x1ec   : > { %3409 = vst.msk [vmem:[%s5189_s27 + $0x108] sm:$0xff] %vm1984_vm4, %v3281_v31  ;;  %v3286_v36 = vadd.f32 %v5177_v3, %v3151_v32  ;;  %v3149_v38 = vmul.f32 %v5168_v60, %v3930_v34  ;;  %vm2761_vm6 = vcmp.ge.f32.partialorder %v2367_v33, 0.0  ;;  %v2359_v39 = vadd.f32 %v5158_v51, %v2358_v35 }
 0x1ed   : > { %v3933_v40 = vsel %vm2761_vm6, 1.0, %v4570_v48  ;;  %v4461_v41 = vpop.f32.mrf.mxu1 }
 0x1ee   : > { %3414 = vst.msk [vmem:[%s5189_s27 + $0x130] sm:$0xff] %vm1984_vm4, %v3286_v36  ;;  %v3284_v42 = vadd.f32 %v5177_v3, %v3149_v38  ;;  %v3152_v43 = vmul.f32 %v5168_v60, %v3933_v40  ;;  %vm2759_vm1 = vcmp.ge.f32.partialorder %v2359_v39, 0.0  ;;  %v2380_v44 = vadd.f32 %v4461_v41, %v5158_v51 }
 0x1ef   : > { %v3931_v45 = vsel %vm2759_vm1, 1.0, %v4570_v48  ;;  %v2371_v46 = vpop.f32.mrf.mxu1 }
 0x1f0   : > { %3412 = vst.msk [vmem:[%s5189_s27 + $0x120] sm:$0xff] %vm1984_vm4, %v3284_v42  ;;  %v3287_v47 = vadd.f32 %v5177_v3, %v3152_v43  ;;  %v3150_v49 = vmul.f32 %v5168_v60, %v3931_v45  ;;  %vm2764_vm7 = vcmp.ge.f32.partialorder %v2380_v44, 0.0  ;;  %v2372_v50 = vadd.f32 %v5158_v51, %v2371_v46 }
 0x1f1   : > { %v3936_v52 = vsel %vm2764_vm7, 1.0, %v4570_v48  ;;  %v4462_v53 = vpop.f32.mrf.mxu1 }
 0x1f2   : > { %3415 = vst.msk [vmem:[%s5189_s27 + $0x138] sm:$0xff] %vm1984_vm4, %v3287_v47  ;;  %v3285_v54 = vadd.f32 %v5177_v3, %v3150_v49  ;;  %v3155_v55 = vmul.f32 %v5168_v60, %v3936_v52  ;;  %vm2762_vm8 = vcmp.ge.f32.partialorder %v2372_v50, 0.0  ;;  %v2383_v56 = vadd.f32 %v4462_v53, %v5158_v51 }
 0x1f3   : > { %v3934_v57 = vsel %vm2762_vm8, 1.0, %v4570_v48  ;;  %v2374_v58 = vpop.f32.mrf.mxu1 }
 0x1f4   : > { %3413 = vst.msk [vmem:[%s5189_s27 + $0x128] sm:$0xff] %vm1984_vm4, %v3285_v54  ;;  %v3290_v59 = vadd.f32 %v5177_v3, %v3155_v55  ;;  %v3153_v61 = vmul.f32 %v5168_v60, %v3934_v57  ;;  %vm2765_vm9 = vcmp.ge.f32.partialorder %v2383_v56, 0.0  ;;  %v2375_v62 = vadd.f32 %v5158_v51, %v2374_v58  ;;  %v5563_v56 = vld [vmem:[%s6036_s4] ss:$0 sm:$0xff] }
 0x1f5   : > { %v3937_v63 = vsel %vm2765_vm9, 1.0, %v4570_v48  ;;  %v4465_v0 = vpop.f32.mrf.mxu1 }
 0x1f6   : > { %3418 = vst.msk [vmem:[%s5189_s27 + $0x150] sm:$0xff] %vm1984_vm4, %v3290_v59  ;;  %v3288_v1 = vadd.f32 %v5177_v3, %v3153_v61  ;;  %v3156_v2 = vmul.f32 %v5168_v60, %v3937_v63  ;;  %vm2763_vm10 = vcmp.ge.f32.partialorder %v2375_v62, 0.0  ;;  %v2396_v4 = vadd.f32 %v4465_v0, %v5158_v51 }
 0x1f7   : > { %v3935_v5 = vsel %vm2763_vm10, 1.0, %v4570_v48  ;;  %v2387_v6 = vpop.f32.mrf.mxu1 }
 0x1f8   : > { %3416 = vst.msk [vmem:[%s5189_s27 + $0x140] sm:$0xff] %vm1984_vm4, %v3288_v1  ;;  %v3291_v7 = vadd.f32 %v5177_v3, %v3156_v2  ;;  %v3154_v8 = vmul.f32 %v5168_v60, %v3935_v5  ;;  %vm2768_vm11 = vcmp.ge.f32.partialorder %v2396_v4, 0.0  ;;  %v2388_v9 = vadd.f32 %v5158_v51, %v2387_v6  ;;  %v5579_v2 = vld [vmem:[%s6037_s5] ss:$0 sm:$0xff] }
 0x1f9   : > { %v3940_v10 = vsel %vm2768_vm11, 1.0, %v4570_v48  ;;  %v4466_v11 = vpop.f32.mrf.mxu1 }
 0x1fa   : > { %3419 = vst.msk [vmem:[%s5189_s27 + $0x158] sm:$0xff] %vm1984_vm4, %v3291_v7  ;;  %v3289_v12 = vadd.f32 %v5177_v3, %v3154_v8  ;;  %v3159_v14 = vmul.f32 %v5168_v60, %v3940_v10  ;;  %vm2766_vm12 = vcmp.ge.f32.partialorder %v2388_v9, 0.0  ;;  %v2399_v15 = vadd.f32 %v4466_v11, %v5158_v51 }
 0x1fb   : > { %v3938_v37 = vsel %vm2766_vm12, 1.0, %v4570_v48  ;;  %v2390_v16 = vpop.f32.mrf.mxu1 }
 0x1fc   : > { %3417 = vst.msk [vmem:[%s5189_s27 + $0x148] sm:$0xff] %vm1984_vm4, %v3289_v12  ;;  %v3294_v17 = vadd.f32 %v5177_v3, %v3159_v14  ;;  %v3157_v18 = vmul.f32 %v5168_v60, %v3938_v37  ;;  %vm2769_vm13 = vcmp.ge.f32.partialorder %v2399_v15, 0.0  ;;  %v2391_v19 = vadd.f32 %v5158_v51, %v2390_v16  ;;  %v5595_v12 = vld [vmem:[%s6038_s6] ss:$0 sm:$0xff] }
 0x1fd   : > { %v3941_v20 = vsel %vm2769_vm13, 1.0, %v4570_v48  ;;  %v4469_v21 = vpop.f32.mrf.mxu1 }
 0x1fe   : > { %3422 = vst.msk [vmem:[%s5189_s27 + $0x170] sm:$0xff] %vm1984_vm4, %v3294_v17  ;;  %v3292_v22 = vadd.f32 %v5177_v3, %v3157_v18  ;;  %v3160_v23 = vmul.f32 %v5168_v60, %v3941_v20  ;;  %vm2767_vm14 = vcmp.ge.f32.partialorder %v2391_v19, 0.0  ;;  %v2412_v24 = vadd.f32 %v4469_v21, %v5158_v51 }
 0x1ff   : > { %v3939_v25 = vsel %vm2767_vm14, 1.0, %v4570_v48  ;;  %v2403_v26 = vpop.f32.mrf.mxu1 }
 0x200   : > { %3420 = vst.msk [vmem:[%s5189_s27 + $0x160] sm:$0xff] %vm1984_vm4, %v3292_v22  ;;  %v3295_v27 = vadd.f32 %v5177_v3, %v3160_v23  ;;  %v3158_v28 = vmul.f32 %v5168_v60, %v3939_v25  ;;  %vm2772_vm15 = vcmp.ge.f32.partialorder %v2412_v24, 0.0  ;;  %v2404_v13 = vadd.f32 %v5158_v51, %v2403_v26 }
 0x201   : > { %v3944_v29 = vsel %vm2772_vm15, 1.0, %v4570_v48  ;;  %v4470_v30 = vpop.f32.mrf.mxu1 }
 0x202   : > { %3423 = vst.msk [vmem:[%s5189_s27 + $0x178] sm:$0xff] %vm1984_vm4, %v3295_v27  ;;  %v3293_v31 = vadd.f32 %v5177_v3, %v3158_v28  ;;  %v3163_v32 = vmul.f32 %v5168_v60, %v3944_v29  ;;  %vm2770_vm0 = vcmp.ge.f32.partialorder %v2404_v13, 0.0  ;;  %v2415_v33 = vadd.f32 %v4470_v30, %v5158_v51 }
 0x203   : > { %v3942_v34 = vsel %vm2770_vm0, 1.0, %v4570_v48  ;;  %v2406_v35 = vpop.f32.mrf.mxu1 }
 0x204   : > { %3421 = vst.msk [vmem:[%s5189_s27 + $0x168] sm:$0xff] %vm1984_vm4, %v3293_v31  ;;  %v3298_v36 = vadd.f32 %v5177_v3, %v3163_v32  ;;  %v3161_v38 = vmul.f32 %v5168_v60, %v3942_v34  ;;  %vm2773_vm2 = vcmp.ge.f32.partialorder %v2415_v33, 0.0  ;;  %v2407_v39 = vadd.f32 %v5158_v51, %v2406_v35 }
 0x205   : > { %v3945_v40 = vsel %vm2773_vm2, 1.0, %v4570_v48  ;;  %v4473_v41 = vpop.f32.mrf.mxu1 }
 0x206   : > { %3426 = vst.msk [vmem:[%s5189_s27 + $0x190] sm:$0xff] %vm1984_vm4, %v3298_v36  ;;  %v3296_v42 = vadd.f32 %v5177_v3, %v3161_v38  ;;  %v3164_v43 = vmul.f32 %v5168_v60, %v3945_v40  ;;  %vm2771_vm3 = vcmp.ge.f32.partialorder %v2407_v39, 0.0  ;;  %v2428_v44 = vadd.f32 %v4473_v41, %v5158_v51 }
 0x207   : > { %v3943_v45 = vsel %vm2771_vm3, 1.0, %v4570_v48  ;;  %v2419_v46 = vpop.f32.mrf.mxu1 }
 0x208   : > { %3424 = vst.msk [vmem:[%s5189_s27 + $0x180] sm:$0xff] %vm1984_vm4, %v3296_v42  ;;  %v3299_v47 = vadd.f32 %v5177_v3, %v3164_v43  ;;  %v3162_v49 = vmul.f32 %v5168_v60, %v3943_v45  ;;  %vm2776_vm5 = vcmp.ge.f32.partialorder %v2428_v44, 0.0  ;;  %v2420_v50 = vadd.f32 %v5158_v51, %v2419_v46 }
 0x209   : > { %v3948_v52 = vsel %vm2776_vm5, 1.0, %v4570_v48  ;;  %v4474_v53 = vpop.f32.mrf.mxu1 }
 0x20a   : > { %3427 = vst.msk [vmem:[%s5189_s27 + $0x198] sm:$0xff] %vm1984_vm4, %v3299_v47  ;;  %v3297_v54 = vadd.f32 %v5177_v3, %v3162_v49  ;;  %v3167_v55 = vmul.f32 %v5168_v60, %v3948_v52  ;;  %vm2774_vm6 = vcmp.ge.f32.partialorder %v2420_v50, 0.0  ;;  %v2431_v57 = vadd.f32 %v5563_v56, %v4474_v53 }
 0x20b   : > { %v3946_v51 = vsel %vm2774_vm6, 1.0, %v4570_v48  ;;  %v2422_v58 = vpop.f32.mrf.mxu1 }
 0x20c   : > { %3425 = vst.msk [vmem:[%s5189_s27 + $0x188] sm:$0xff] %vm1984_vm4, %v3297_v54  ;;  %v3302_v59 = vadd.f32 %v5177_v3, %v3167_v55  ;;  %v3165_v61 = vmul.f32 %v5168_v60, %v3946_v51  ;;  %vm2777_vm1 = vcmp.ge.f32.partialorder %v2431_v57, 0.0  ;;  %v2423_v62 = vadd.f32 %v5563_v56, %v2422_v58 }
 0x20d   : > { %v3949_v63 = vsel %vm2777_vm1, 1.0, %v4570_v48  ;;  %v4477_v0 = vpop.f32.mrf.mxu1 }
 0x20e   : > { %3430 = vst.msk [vmem:[%s5189_s27 + $0x1b0] sm:$0xff] %vm1984_vm4, %v3302_v59  ;;  %v3300_v1 = vadd.f32 %v5177_v3, %v3165_v61  ;;  %v3168_v4 = vmul.f32 %v5579_v2, %v3949_v63  ;;  %vm2775_vm7 = vcmp.ge.f32.partialorder %v2423_v62, 0.0  ;;  %v2444_v60 = vadd.f32 %v5563_v56, %v4477_v0 }
 0x20f   : > { %v3947_v5 = vsel %vm2775_vm7, 1.0, %v4570_v48  ;;  %v2435_v6 = vpop.f32.mrf.mxu1 }
 0x210   : > { %3428 = vst.msk [vmem:[%s5189_s27 + $0x1a0] sm:$0xff] %vm1984_vm4, %v3300_v1  ;;  %v3303_v7 = vadd.f32 %v5177_v3, %v3168_v4  ;;  %v3166_v8 = vmul.f32 %v5579_v2, %v3947_v5  ;;  %vm2780_vm8 = vcmp.ge.f32.partialorder %v2444_v60, 0.0  ;;  %v2436_v9 = vadd.f32 %v5563_v56, %v2435_v6 }
 0x211   : > { %v3952_v10 = vsel %vm2780_vm8, 1.0, %v4570_v48  ;;  %v4478_v11 = vpop.f32.mrf.mxu1 }
 0x212   : > { %3431 = vst.msk [vmem:[%s5189_s27 + $0x1b8] sm:$0xff] %vm1984_vm4, %v3303_v7  ;;  %v3301_v14 = vadd.f32 %v5595_v12, %v3166_v8  ;;  %v3171_v3 = vmul.f32 %v5579_v2, %v3952_v10  ;;  %vm2778_vm9 = vcmp.ge.f32.partialorder %v2436_v9, 0.0  ;;  %v2447_v15 = vadd.f32 %v5563_v56, %v4478_v11 }
 0x213   : > { %v3950_v37 = vsel %vm2778_vm9, 1.0, %v4570_v48  ;;  %v2438_v16 = vpop.f32.mrf.mxu1 }
 0x214   : > { %3429 = vst.msk [vmem:[%s5189_s27 + $0x1a8] sm:$0xff] %vm1984_vm4, %v3301_v14  ;;  %v3306_v17 = vadd.f32 %v5595_v12, %v3171_v3  ;;  %v3169_v18 = vmul.f32 %v5579_v2, %v3950_v37  ;;  %vm2781_vm10 = vcmp.ge.f32.partialorder %v2447_v15, 0.0  ;;  %v2439_v19 = vadd.f32 %v5563_v56, %v2438_v16 }
 0x215   : > { %v3953_v20 = vsel %vm2781_vm10, 1.0, %v4570_v48  ;;  %v4481_v21 = vpop.f32.mrf.mxu1 }
 0x216   : > { %3434 = vst.msk [vmem:[%s5189_s27 + $0x1d0] sm:$0xff] %vm1984_vm4, %v3306_v17  ;;  %v3304_v22 = vadd.f32 %v5595_v12, %v3169_v18  ;;  %v3172_v23 = vmul.f32 %v5579_v2, %v3953_v20  ;;  %vm2779_vm11 = vcmp.ge.f32.partialorder %v2439_v19, 0.0  ;;  %v2460_v24 = vadd.f32 %v5563_v56, %v4481_v21 }
 0x217   : > { %v3951_v25 = vsel %vm2779_vm11, 1.0, %v4570_v48  ;;  %v2451_v26 = vpop.f32.mrf.mxu1 }
 0x218   : > { %3432 = vst.msk [vmem:[%s5189_s27 + $0x1c0] sm:$0xff] %vm1984_vm4, %v3304_v22  ;;  %v3307_v27 = vadd.f32 %v5595_v12, %v3172_v23  ;;  %v3170_v28 = vmul.f32 %v5579_v2, %v3951_v25  ;;  %vm2784_vm12 = vcmp.ge.f32.partialorder %v2460_v24, 0.0  ;;  %v2452_v13 = vadd.f32 %v5563_v56, %v2451_v26 }
 0x219   : > { %v3956_v29 = vsel %vm2784_vm12, 1.0, %v4570_v48  ;;  %v4482_v30 = vpop.f32.mrf.mxu1 }
 0x21a   : > { %3435 = vst.msk [vmem:[%s5189_s27 + $0x1d8] sm:$0xff] %vm1984_vm4, %v3307_v27  ;;  %v3305_v31 = vadd.f32 %v5595_v12, %v3170_v28  ;;  %v3175_v32 = vmul.f32 %v5579_v2, %v3956_v29  ;;  %vm2782_vm13 = vcmp.ge.f32.partialorder %v2452_v13, 0.0  ;;  %v2463_v33 = vadd.f32 %v5563_v56, %v4482_v30 }
 0x21b   : > { %v3954_v34 = vsel %vm2782_vm13, 1.0, %v4570_v48  ;;  %v2454_v35 = vpop.f32.mrf.mxu1 }
 0x21c   : > { %3433 = vst.msk [vmem:[%s5189_s27 + $0x1c8] sm:$0xff] %vm1984_vm4, %v3305_v31  ;;  %v3310_v36 = vadd.f32 %v5595_v12, %v3175_v32  ;;  %v3173_v38 = vmul.f32 %v5579_v2, %v3954_v34  ;;  %vm2785_vm14 = vcmp.ge.f32.partialorder %v2463_v33, 0.0  ;;  %v2455_v39 = vadd.f32 %v5563_v56, %v2454_v35 }
 0x21d   : > { %v3957_v40 = vsel %vm2785_vm14, 1.0, %v4570_v48  ;;  %v4485_v41 = vpop.f32.mrf.mxu1 }
 0x21e   : > { %3438 = vst.msk [vmem:[%s5189_s27 + $0x1f0] sm:$0xff] %vm1984_vm4, %v3310_v36  ;;  %v3308_v42 = vadd.f32 %v5595_v12, %v3173_v38  ;;  %v3176_v43 = vmul.f32 %v5579_v2, %v3957_v40  ;;  %vm2783_vm15 = vcmp.ge.f32.partialorder %v2455_v39, 0.0  ;;  %v2476_v44 = vadd.f32 %v5563_v56, %v4485_v41 }
 0x21f   : > { %v3955_v45 = vsel %vm2783_vm15, 1.0, %v4570_v48  ;;  %v2467_v46 = vpop.f32.mrf.mxu1 }
 0x220   : > { %3436 = vst.msk [vmem:[%s5189_s27 + $0x1e0] sm:$0xff] %vm1984_vm4, %v3308_v42  ;;  %v3311_v47 = vadd.f32 %v5595_v12, %v3176_v43  ;;  %v3174_v49 = vmul.f32 %v5579_v2, %v3955_v45  ;;  %vm2788_vm0 = vcmp.ge.f32.partialorder %v2476_v44, 0.0  ;;  %v2468_v50 = vadd.f32 %v5563_v56, %v2467_v46 }
 0x221   : > { %v3960_v52 = vsel %vm2788_vm0, 1.0, %v4570_v48  ;;  %v4486_v53 = vpop.f32.mrf.mxu1 }
 0x222   : > { %3439 = vst.msk [vmem:[%s5189_s27 + $0x1f8] sm:$0xff] %vm1984_vm4, %v3311_v47  ;;  %v3309_v54 = vadd.f32 %v5595_v12, %v3174_v49  ;;  %v3179_v55 = vmul.f32 %v5579_v2, %v3960_v52  ;;  %vm2786_vm2 = vcmp.ge.f32.partialorder %v2468_v50, 0.0  ;;  %v2479_v57 = vadd.f32 %v5563_v56, %v4486_v53 }
 0x223   : > { %v3958_v51 = vsel %vm2786_vm2, 1.0, %v4570_v48  ;;  %v2470_v58 = vpop.f32.mrf.mxu1 }
 0x224   : > { %3437 = vst.msk [vmem:[%s5189_s27 + $0x1e8] sm:$0xff] %vm1984_vm4, %v3309_v54  ;;  %v3314_v59 = vadd.f32 %v5595_v12, %v3179_v55  ;;  %v3177_v61 = vmul.f32 %v5579_v2, %v3958_v51  ;;  %vm2789_vm3 = vcmp.ge.f32.partialorder %v2479_v57, 0.0  ;;  %v2471_v62 = vadd.f32 %v5563_v56, %v2470_v58 }
 0x225   : > { %v3961_v63 = vsel %vm2789_vm3, 1.0, %v4570_v48  ;;  %v4489_v0 = vpop.f32.mrf.mxu1 }
 0x226   : > { %3442 = vst.msk [vmem:[%s5189_s27 + $0x210] sm:$0xff] %vm1984_vm4, %v3314_v59  ;;  %v3312_v1 = vadd.f32 %v5595_v12, %v3177_v61  ;;  %v3180_v4 = vmul.f32 %v5579_v2, %v3961_v63  ;;  %vm2787_vm5 = vcmp.ge.f32.partialorder %v2471_v62, 0.0  ;;  %v2492_v60 = vadd.f32 %v5563_v56, %v4489_v0 }
 0x227   : > { %v3959_v5 = vsel %vm2787_vm5, 1.0, %v4570_v48  ;;  %v2483_v6 = vpop.f32.mrf.mxu1 }
 0x228   : > { %3440 = vst.msk [vmem:[%s5189_s27 + $0x200] sm:$0xff] %vm1984_vm4, %v3312_v1  ;;  %v3315_v7 = vadd.f32 %v5595_v12, %v3180_v4  ;;  %v3178_v8 = vmul.f32 %v5579_v2, %v3959_v5  ;;  %vm2792_vm6 = vcmp.ge.f32.partialorder %v2492_v60, 0.0  ;;  %v2484_v9 = vadd.f32 %v5563_v56, %v2483_v6 }
 0x229   : > { %v3964_v10 = vsel %vm2792_vm6, 1.0, %v4570_v48  ;;  %v4490_v11 = vpop.f32.mrf.mxu1 }
 0x22a   : > { %3443 = vst.msk [vmem:[%s5189_s27 + $0x218] sm:$0xff] %vm1984_vm4, %v3315_v7  ;;  %v3313_v14 = vadd.f32 %v5595_v12, %v3178_v8  ;;  %v3183_v3 = vmul.f32 %v5579_v2, %v3964_v10  ;;  %vm2790_vm1 = vcmp.ge.f32.partialorder %v2484_v9, 0.0  ;;  %v2495_v15 = vadd.f32 %v5563_v56, %v4490_v11 }
 0x22b   : > { %v3962_v37 = vsel %vm2790_vm1, 1.0, %v4570_v48  ;;  %v2486_v16 = vpop.f32.mrf.mxu1 }
 0x22c   : > { %3441 = vst.msk [vmem:[%s5189_s27 + $0x208] sm:$0xff] %vm1984_vm4, %v3313_v14  ;;  %v3318_v17 = vadd.f32 %v5595_v12, %v3183_v3  ;;  %v3181_v18 = vmul.f32 %v5579_v2, %v3962_v37  ;;  %vm2793_vm7 = vcmp.ge.f32.partialorder %v2495_v15, 0.0  ;;  %v2487_v19 = vadd.f32 %v5563_v56, %v2486_v16 }
 0x22d   : > { %v3965_v20 = vsel %vm2793_vm7, 1.0, %v4570_v48  ;;  %v4493_v21 = vpop.f32.mrf.mxu1 }
 0x22e   : > { %3446 = vst.msk [vmem:[%s5189_s27 + $0x230] sm:$0xff] %vm1984_vm4, %v3318_v17  ;;  %v3316_v22 = vadd.f32 %v5595_v12, %v3181_v18  ;;  %v3184_v23 = vmul.f32 %v5579_v2, %v3965_v20  ;;  %vm2791_vm8 = vcmp.ge.f32.partialorder %v2487_v19, 0.0  ;;  %v2508_v24 = vadd.f32 %v5563_v56, %v4493_v21 }
 0x22f   : > { %v3963_v25 = vsel %vm2791_vm8, 1.0, %v4570_v48  ;;  %v2499_v26 = vpop.f32.mrf.mxu1 }
 0x230   : > { %3444 = vst.msk [vmem:[%s5189_s27 + $0x220] sm:$0xff] %vm1984_vm4, %v3316_v22  ;;  %v3319_v27 = vadd.f32 %v5595_v12, %v3184_v23  ;;  %v3182_v28 = vmul.f32 %v5579_v2, %v3963_v25  ;;  %vm2796_vm9 = vcmp.ge.f32.partialorder %v2508_v24, 0.0  ;;  %v2500_v13 = vadd.f32 %v5563_v56, %v2499_v26 }
 0x231   : > { %v3968_v29 = vsel %vm2796_vm9, 1.0, %v4570_v48  ;;  %v4494_v30 = vpop.f32.mrf.mxu1 }
 0x232   : > { %3447 = vst.msk [vmem:[%s5189_s27 + $0x238] sm:$0xff] %vm1984_vm4, %v3319_v27  ;;  %v3317_v31 = vadd.f32 %v5595_v12, %v3182_v28  ;;  %v3187_v32 = vmul.f32 %v5579_v2, %v3968_v29  ;;  %vm2794_vm10 = vcmp.ge.f32.partialorder %v2500_v13, 0.0  ;;  %v2511_v33 = vadd.f32 %v5563_v56, %v4494_v30 }
 0x233   : > { %v3966_v34 = vsel %vm2794_vm10, 1.0, %v4570_v48  ;;  %v2502_v35 = vpop.f32.mrf.mxu1 }
 0x234   : > { %3445 = vst.msk [vmem:[%s5189_s27 + $0x228] sm:$0xff] %vm1984_vm4, %v3317_v31  ;;  %v3322_v36 = vadd.f32 %v5595_v12, %v3187_v32  ;;  %v3185_v38 = vmul.f32 %v5579_v2, %v3966_v34  ;;  %vm2797_vm11 = vcmp.ge.f32.partialorder %v2511_v33, 0.0  ;;  %v2503_v39 = vadd.f32 %v5563_v56, %v2502_v35 }
 0x235   : > { %v3969_v40 = vsel %vm2797_vm11, 1.0, %v4570_v48  ;;  %v4497_v41 = vpop.f32.mrf.mxu1 }
 0x236   : > { %3450 = vst.msk [vmem:[%s5189_s27 + $0x250] sm:$0xff] %vm1984_vm4, %v3322_v36  ;;  %v3320_v42 = vadd.f32 %v5595_v12, %v3185_v38  ;;  %v3188_v43 = vmul.f32 %v5579_v2, %v3969_v40  ;;  %vm2795_vm12 = vcmp.ge.f32.partialorder %v2503_v39, 0.0  ;;  %v2524_v44 = vadd.f32 %v5563_v56, %v4497_v41 }
 0x237   : > { %v3967_v45 = vsel %vm2795_vm12, 1.0, %v4570_v48  ;;  %v2515_v46 = vpop.f32.mrf.mxu1 }
 0x238   : > { %3448 = vst.msk [vmem:[%s5189_s27 + $0x240] sm:$0xff] %vm1984_vm4, %v3320_v42  ;;  %v3323_v47 = vadd.f32 %v5595_v12, %v3188_v43  ;;  %v3186_v49 = vmul.f32 %v5579_v2, %v3967_v45  ;;  %vm2800_vm13 = vcmp.ge.f32.partialorder %v2524_v44, 0.0  ;;  %v2516_v50 = vadd.f32 %v5563_v56, %v2515_v46 }
 0x239   : > { %v3972_v52 = vsel %vm2800_vm13, 1.0, %v4570_v48  ;;  %v4498_v53 = vpop.f32.mrf.mxu1 }
 0x23a   : > { %3451 = vst.msk [vmem:[%s5189_s27 + $0x258] sm:$0xff] %vm1984_vm4, %v3323_v47  ;;  %v3321_v54 = vadd.f32 %v5595_v12, %v3186_v49  ;;  %v3191_v55 = vmul.f32 %v5579_v2, %v3972_v52  ;;  %vm2798_vm14 = vcmp.ge.f32.partialorder %v2516_v50, 0.0  ;;  %v2527_v57 = vadd.f32 %v5563_v56, %v4498_v53 }
 0x23b   : > { %v3970_v51 = vsel %vm2798_vm14, 1.0, %v4570_v48  ;;  %v2518_v58 = vpop.f32.mrf.mxu1 }
 0x23c   : > { %3449 = vst.msk [vmem:[%s5189_s27 + $0x248] sm:$0xff] %vm1984_vm4, %v3321_v54  ;;  %v3326_v59 = vadd.f32 %v5595_v12, %v3191_v55  ;;  %v3189_v61 = vmul.f32 %v5579_v2, %v3970_v51  ;;  %vm2801_vm15 = vcmp.ge.f32.partialorder %v2527_v57, 0.0  ;;  %v2519_v62 = vadd.f32 %v5563_v56, %v2518_v58 }
 0x23d   : > { %v3973_v63 = vsel %vm2801_vm15, 1.0, %v4570_v48  ;;  %v4501_v0 = vpop.f32.mrf.mxu1 }
 0x23e   : > { %3454 = vst.msk [vmem:[%s5189_s27 + $0x270] sm:$0xff] %vm1984_vm4, %v3326_v59  ;;  %v3324_v1 = vadd.f32 %v5595_v12, %v3189_v61  ;;  %v3192_v4 = vmul.f32 %v5579_v2, %v3973_v63  ;;  %vm2799_vm0 = vcmp.ge.f32.partialorder %v2519_v62, 0.0  ;;  %v2540_v60 = vadd.f32 %v5563_v56, %v4501_v0 }
 0x23f   : > { %v3971_v5 = vsel %vm2799_vm0, 1.0, %v4570_v48  ;;  %v2531_v6 = vpop.f32.mrf.mxu1 }
 0x240   : > { %3452 = vst.msk [vmem:[%s5189_s27 + $0x260] sm:$0xff] %vm1984_vm4, %v3324_v1  ;;  %v3327_v7 = vadd.f32 %v5595_v12, %v3192_v4  ;;  %v3190_v8 = vmul.f32 %v5579_v2, %v3971_v5  ;;  %vm2804_vm2 = vcmp.ge.f32.partialorder %v2540_v60, 0.0  ;;  %v2532_v9 = vadd.f32 %v5563_v56, %v2531_v6 }
 0x241   : > { %v3976_v10 = vsel %vm2804_vm2, 1.0, %v4570_v48  ;;  %v4502_v11 = vpop.f32.mrf.mxu1 }
 0x242   : > { %3455 = vst.msk [vmem:[%s5189_s27 + $0x278] sm:$0xff] %vm1984_vm4, %v3327_v7  ;;  %v3325_v14 = vadd.f32 %v5595_v12, %v3190_v8  ;;  %v3195_v3 = vmul.f32 %v5579_v2, %v3976_v10  ;;  %vm2802_vm3 = vcmp.ge.f32.partialorder %v2532_v9, 0.0  ;;  %v2543_v15 = vadd.f32 %v5563_v56, %v4502_v11 }
 0x243   : > { %v3974_v37 = vsel %vm2802_vm3, 1.0, %v4570_v48  ;;  %v2534_v16 = vpop.f32.mrf.mxu1 }
 0x244   : > { %3453 = vst.msk [vmem:[%s5189_s27 + $0x268] sm:$0xff] %vm1984_vm4, %v3325_v14  ;;  %v3330_v17 = vadd.f32 %v5595_v12, %v3195_v3  ;;  %v3193_v18 = vmul.f32 %v5579_v2, %v3974_v37  ;;  %vm2805_vm5 = vcmp.ge.f32.partialorder %v2543_v15, 0.0  ;;  %v2535_v19 = vadd.f32 %v5563_v56, %v2534_v16 }
 0x245   : > { %v3977_v20 = vsel %vm2805_vm5, 1.0, %v4570_v48  ;;  %v4505_v21 = vpop.f32.mrf.mxu1 }
 0x246   : > { %3458 = vst.msk [vmem:[%s5189_s27 + $0x290] sm:$0xff] %vm1984_vm4, %v3330_v17  ;;  %v3328_v22 = vadd.f32 %v5595_v12, %v3193_v18  ;;  %v3196_v23 = vmul.f32 %v5579_v2, %v3977_v20  ;;  %vm2803_vm6 = vcmp.ge.f32.partialorder %v2535_v19, 0.0  ;;  %v2556_v24 = vadd.f32 %v5563_v56, %v4505_v21 }
 0x247   : > { %v3975_v25 = vsel %vm2803_vm6, 1.0, %v4570_v48  ;;  %v2547_v26 = vpop.f32.mrf.mxu1 }
 0x248   : > { %3456 = vst.msk [vmem:[%s5189_s27 + $0x280] sm:$0xff] %vm1984_vm4, %v3328_v22  ;;  %v3331_v27 = vadd.f32 %v5595_v12, %v3196_v23  ;;  %v3194_v28 = vmul.f32 %v5579_v2, %v3975_v25  ;;  %vm2808_vm1 = vcmp.ge.f32.partialorder %v2556_v24, 0.0  ;;  %v2548_v13 = vadd.f32 %v5563_v56, %v2547_v26 }
 0x249   : > { %v3980_v29 = vsel %vm2808_vm1, 1.0, %v4570_v48  ;;  %v4506_v30 = vpop.f32.mrf.mxu1 }
 0x24a   : > { %3459 = vst.msk [vmem:[%s5189_s27 + $0x298] sm:$0xff] %vm1984_vm4, %v3331_v27  ;;  %v3329_v31 = vadd.f32 %v5595_v12, %v3194_v28  ;;  %v3199_v32 = vmul.f32 %v5579_v2, %v3980_v29  ;;  %vm2806_vm7 = vcmp.ge.f32.partialorder %v2548_v13, 0.0  ;;  %v2559_v33 = vadd.f32 %v5563_v56, %v4506_v30 }
 0x24b   : > { %v3978_v34 = vsel %vm2806_vm7, 1.0, %v4570_v48  ;;  %v2550_v35 = vpop.f32.mrf.mxu1 }
 0x24c   : > { %3457 = vst.msk [vmem:[%s5189_s27 + $0x288] sm:$0xff] %vm1984_vm4, %v3329_v31  ;;  %v3334_v36 = vadd.f32 %v5595_v12, %v3199_v32  ;;  %v3197_v38 = vmul.f32 %v5579_v2, %v3978_v34  ;;  %vm2809_vm8 = vcmp.ge.f32.partialorder %v2559_v33, 0.0  ;;  %v2551_v39 = vadd.f32 %v5563_v56, %v2550_v35 }
 0x24d   : > { %v3981_v40 = vsel %vm2809_vm8, 1.0, %v4570_v48  ;;  %v4509_v41 = vpop.f32.mrf.mxu1 }
 0x24e   : > { %3462 = vst.msk [vmem:[%s5189_s27 + $0x2b0] sm:$0xff] %vm1984_vm4, %v3334_v36  ;;  %v3332_v42 = vadd.f32 %v5595_v12, %v3197_v38  ;;  %v3200_v43 = vmul.f32 %v5579_v2, %v3981_v40  ;;  %vm2807_vm9 = vcmp.ge.f32.partialorder %v2551_v39, 0.0  ;;  %v2572_v44 = vadd.f32 %v5563_v56, %v4509_v41 }
 0x24f   : > { %v3979_v45 = vsel %vm2807_vm9, 1.0, %v4570_v48  ;;  %v2563_v46 = vpop.f32.mrf.mxu1 }
 0x250   : > { %3460 = vst.msk [vmem:[%s5189_s27 + $0x2a0] sm:$0xff] %vm1984_vm4, %v3332_v42  ;;  %v3335_v47 = vadd.f32 %v5595_v12, %v3200_v43  ;;  %v3198_v49 = vmul.f32 %v5579_v2, %v3979_v45  ;;  %vm2812_vm10 = vcmp.ge.f32.partialorder %v2572_v44, 0.0  ;;  %v2564_v50 = vadd.f32 %v5563_v56, %v2563_v46 }
 0x251   : > { %v3984_v52 = vsel %vm2812_vm10, 1.0, %v4570_v48  ;;  %v4510_v53 = vpop.f32.mrf.mxu1 }
 0x252   : > { %3463 = vst.msk [vmem:[%s5189_s27 + $0x2b8] sm:$0xff] %vm1984_vm4, %v3335_v47  ;;  %v3333_v54 = vadd.f32 %v5595_v12, %v3198_v49  ;;  %v3203_v55 = vmul.f32 %v5579_v2, %v3984_v52  ;;  %vm2810_vm11 = vcmp.ge.f32.partialorder %v2564_v50, 0.0  ;;  %v2575_v57 = vadd.f32 %v5563_v56, %v4510_v53 }
 0x253   : > { %v3982_v51 = vsel %vm2810_vm11, 1.0, %v4570_v48  ;;  %v2566_v58 = vpop.f32.mrf.mxu1 }
 0x254   : > { %3461 = vst.msk [vmem:[%s5189_s27 + $0x2a8] sm:$0xff] %vm1984_vm4, %v3333_v54  ;;  %v3338_v59 = vadd.f32 %v5595_v12, %v3203_v55  ;;  %v3201_v61 = vmul.f32 %v5579_v2, %v3982_v51  ;;  %vm2813_vm12 = vcmp.ge.f32.partialorder %v2575_v57, 0.0  ;;  %v2567_v62 = vadd.f32 %v5563_v56, %v2566_v58 }
 0x255   : > { %v3985_v63 = vsel %vm2813_vm12, 1.0, %v4570_v48  ;;  %v4513_v0 = vpop.f32.mrf.mxu1 }
 0x256   : > { %3466 = vst.msk [vmem:[%s5189_s27 + $0x2d0] sm:$0xff] %vm1984_vm4, %v3338_v59  ;;  %v3336_v1 = vadd.f32 %v5595_v12, %v3201_v61  ;;  %v3204_v4 = vmul.f32 %v5579_v2, %v3985_v63  ;;  %vm2811_vm13 = vcmp.ge.f32.partialorder %v2567_v62, 0.0  ;;  %v2588_v60 = vadd.f32 %v5563_v56, %v4513_v0 }
 0x257   : > { %v3983_v5 = vsel %vm2811_vm13, 1.0, %v4570_v48  ;;  %v2579_v6 = vpop.f32.mrf.mxu1 }
 0x258   : > { %3464 = vst.msk [vmem:[%s5189_s27 + $0x2c0] sm:$0xff] %vm1984_vm4, %v3336_v1  ;;  %v3339_v7 = vadd.f32 %v5595_v12, %v3204_v4  ;;  %v3202_v8 = vmul.f32 %v5579_v2, %v3983_v5  ;;  %vm2816_vm14 = vcmp.ge.f32.partialorder %v2588_v60, 0.0  ;;  %v2580_v9 = vadd.f32 %v5563_v56, %v2579_v6 }
 0x259   : > { %v3988_v10 = vsel %vm2816_vm14, 1.0, %v4570_v48  ;;  %v4514_v11 = vpop.f32.mrf.mxu1 }
 0x25a   : > { %3467 = vst.msk [vmem:[%s5189_s27 + $0x2d8] sm:$0xff] %vm1984_vm4, %v3339_v7  ;;  %v3337_v14 = vadd.f32 %v5595_v12, %v3202_v8  ;;  %v3207_v3 = vmul.f32 %v5579_v2, %v3988_v10  ;;  %vm2814_vm15 = vcmp.ge.f32.partialorder %v2580_v9, 0.0  ;;  %v2591_v15 = vadd.f32 %v5563_v56, %v4514_v11 }
 0x25b   : > { %v3986_v37 = vsel %vm2814_vm15, 1.0, %v4570_v48  ;;  %v2582_v16 = vpop.f32.mrf.mxu1 }
 0x25c   : > { %3465 = vst.msk [vmem:[%s5189_s27 + $0x2c8] sm:$0xff] %vm1984_vm4, %v3337_v14  ;;  %v3342_v17 = vadd.f32 %v5595_v12, %v3207_v3  ;;  %v3205_v18 = vmul.f32 %v5579_v2, %v3986_v37  ;;  %vm2817_vm0 = vcmp.ge.f32.partialorder %v2591_v15, 0.0  ;;  %v2583_v19 = vadd.f32 %v5563_v56, %v2582_v16 }
 0x25d   : > { %v3989_v20 = vsel %vm2817_vm0, 1.0, %v4570_v48  ;;  %v4517_v21 = vpop.f32.mrf.mxu1 }
 0x25e   : > { %3470 = vst.msk [vmem:[%s5189_s27 + $0x2f0] sm:$0xff] %vm1984_vm4, %v3342_v17  ;;  %v3340_v22 = vadd.f32 %v5595_v12, %v3205_v18  ;;  %v3208_v23 = vmul.f32 %v5579_v2, %v3989_v20  ;;  %vm2815_vm2 = vcmp.ge.f32.partialorder %v2583_v19, 0.0  ;;  %v2604_v24 = vadd.f32 %v5563_v56, %v4517_v21 }
 0x25f   : > { %v3987_v25 = vsel %vm2815_vm2, 1.0, %v4570_v48  ;;  %v2595_v26 = vpop.f32.mrf.mxu1 }
 0x260   : > { %3468 = vst.msk [vmem:[%s5189_s27 + $0x2e0] sm:$0xff] %vm1984_vm4, %v3340_v22  ;;  %v3343_v27 = vadd.f32 %v5595_v12, %v3208_v23  ;;  %v3206_v28 = vmul.f32 %v5579_v2, %v3987_v25  ;;  %vm2820_vm3 = vcmp.ge.f32.partialorder %v2604_v24, 0.0  ;;  %v2596_v13 = vadd.f32 %v5563_v56, %v2595_v26 }
 0x261   : > { %v3992_v29 = vsel %vm2820_vm3, 1.0, %v4570_v48  ;;  %v4518_v30 = vpop.f32.mrf.mxu1 }
 0x262   : > { %3471 = vst.msk [vmem:[%s5189_s27 + $0x2f8] sm:$0xff] %vm1984_vm4, %v3343_v27  ;;  %v3341_v31 = vadd.f32 %v5595_v12, %v3206_v28  ;;  %v3211_v32 = vmul.f32 %v5579_v2, %v3992_v29  ;;  %vm2818_vm5 = vcmp.ge.f32.partialorder %v2596_v13, 0.0  ;;  %v2607_v33 = vadd.f32 %v5563_v56, %v4518_v30 }
 0x263   : > { %v3990_v34 = vsel %vm2818_vm5, 1.0, %v4570_v48  ;;  %v2598_v35 = vpop.f32.mrf.mxu1 }
 0x264   : > { %3469 = vst.msk [vmem:[%s5189_s27 + $0x2e8] sm:$0xff] %vm1984_vm4, %v3341_v31  ;;  %v3346_v36 = vadd.f32 %v5595_v12, %v3211_v32  ;;  %v3209_v38 = vmul.f32 %v5579_v2, %v3990_v34  ;;  %vm2821_vm6 = vcmp.ge.f32.partialorder %v2607_v33, 0.0  ;;  %v2599_v39 = vadd.f32 %v5563_v56, %v2598_v35 }
 0x265   : > { %v3993_v40 = vsel %vm2821_vm6, 1.0, %v4570_v48  ;;  %v4521_v41 = vpop.f32.mrf.mxu1 }
 0x266   : > { %3474 = vst.msk [vmem:[%s5189_s27 + $0x310] sm:$0xff] %vm1984_vm4, %v3346_v36  ;;  %v3344_v42 = vadd.f32 %v5595_v12, %v3209_v38  ;;  %v3212_v43 = vmul.f32 %v5579_v2, %v3993_v40  ;;  %vm2819_vm1 = vcmp.ge.f32.partialorder %v2599_v39, 0.0  ;;  %v2620_v44 = vadd.f32 %v5563_v56, %v4521_v41 }
 0x267   : > { %v3991_v45 = vsel %vm2819_vm1, 1.0, %v4570_v48  ;;  %v2611_v46 = vpop.f32.mrf.mxu1 }
 0x268   : > { %3472 = vst.msk [vmem:[%s5189_s27 + $0x300] sm:$0xff] %vm1984_vm4, %v3344_v42  ;;  %v3347_v47 = vadd.f32 %v5595_v12, %v3212_v43  ;;  %v3210_v49 = vmul.f32 %v5579_v2, %v3991_v45  ;;  %vm2824_vm7 = vcmp.ge.f32.partialorder %v2620_v44, 0.0  ;;  %v2612_v50 = vadd.f32 %v5563_v56, %v2611_v46 }
 0x269   : > { %v3996_v52 = vsel %vm2824_vm7, 1.0, %v4570_v48  ;;  %v4522_v53 = vpop.f32.mrf.mxu1 }
 0x26a   : > { %3475 = vst.msk [vmem:[%s5189_s27 + $0x318] sm:$0xff] %vm1984_vm4, %v3347_v47  ;;  %v3345_v54 = vadd.f32 %v5595_v12, %v3210_v49  ;;  %v3215_v55 = vmul.f32 %v5579_v2, %v3996_v52  ;;  %vm2822_vm8 = vcmp.ge.f32.partialorder %v2612_v50, 0.0  ;;  %v2623_v57 = vadd.f32 %v5563_v56, %v4522_v53 }
 0x26b   : > { %v3994_v51 = vsel %vm2822_vm8, 1.0, %v4570_v48  ;;  %v2614_v58 = vpop.f32.mrf.mxu1 }
 0x26c   : > { %3473 = vst.msk [vmem:[%s5189_s27 + $0x308] sm:$0xff] %vm1984_vm4, %v3345_v54  ;;  %v3350_v59 = vadd.f32 %v5595_v12, %v3215_v55  ;;  %v3213_v61 = vmul.f32 %v5579_v2, %v3994_v51  ;;  %vm2825_vm9 = vcmp.ge.f32.partialorder %v2623_v57, 0.0  ;;  %v2615_v62 = vadd.f32 %v5563_v56, %v2614_v58 }
 0x26d   : > { %v3997_v63 = vsel %vm2825_vm9, 1.0, %v4570_v48  ;;  %v4525_v0 = vpop.f32.mrf.mxu1 }
 0x26e   : > { %3478 = vst.msk [vmem:[%s5189_s27 + $0x330] sm:$0xff] %vm1984_vm4, %v3350_v59  ;;  %v3348_v1 = vadd.f32 %v5595_v12, %v3213_v61  ;;  %v3216_v4 = vmul.f32 %v5579_v2, %v3997_v63  ;;  %vm2823_vm10 = vcmp.ge.f32.partialorder %v2615_v62, 0.0  ;;  %v2636_v60 = vadd.f32 %v5563_v56, %v4525_v0 }
 0x26f   : > { %v3995_v5 = vsel %vm2823_vm10, 1.0, %v4570_v48  ;;  %v2627_v6 = vpop.f32.mrf.mxu1 }
 0x270   : > { %3476 = vst.msk [vmem:[%s5189_s27 + $0x320] sm:$0xff] %vm1984_vm4, %v3348_v1  ;;  %v3351_v7 = vadd.f32 %v5595_v12, %v3216_v4  ;;  %v3214_v8 = vmul.f32 %v5579_v2, %v3995_v5  ;;  %vm2828_vm11 = vcmp.ge.f32.partialorder %v2636_v60, 0.0  ;;  %v2628_v9 = vadd.f32 %v5563_v56, %v2627_v6 }
 0x271   : > { %v4000_v10 = vsel %vm2828_vm11, 1.0, %v4570_v48  ;;  %v4526_v11 = vpop.f32.mrf.mxu1 }
 0x272   : > { %3479 = vst.msk [vmem:[%s5189_s27 + $0x338] sm:$0xff] %vm1984_vm4, %v3351_v7  ;;  %v3349_v14 = vadd.f32 %v5595_v12, %v3214_v8  ;;  %v3219_v3 = vmul.f32 %v5579_v2, %v4000_v10  ;;  %vm2826_vm12 = vcmp.ge.f32.partialorder %v2628_v9, 0.0  ;;  %v2639_v15 = vadd.f32 %v5563_v56, %v4526_v11 }
 0x273   : > { %v3998_v37 = vsel %vm2826_vm12, 1.0, %v4570_v48  ;;  %v2630_v16 = vpop.f32.mrf.mxu1 }
 0x274   : > { %3477 = vst.msk [vmem:[%s5189_s27 + $0x328] sm:$0xff] %vm1984_vm4, %v3349_v14  ;;  %v3354_v17 = vadd.f32 %v5595_v12, %v3219_v3  ;;  %v3217_v18 = vmul.f32 %v5579_v2, %v3998_v37  ;;  %vm2829_vm13 = vcmp.ge.f32.partialorder %v2639_v15, 0.0  ;;  %v2631_v19 = vadd.f32 %v5563_v56, %v2630_v16 }
 0x275   : > { %v4001_v20 = vsel %vm2829_vm13, 1.0, %v4570_v48  ;;  %v4529_v21 = vpop.f32.mrf.mxu1 }
 0x276   : > { %3482 = vst.msk [vmem:[%s5189_s27 + $0x350] sm:$0xff] %vm1984_vm4, %v3354_v17  ;;  %v3352_v22 = vadd.f32 %v5595_v12, %v3217_v18  ;;  %v3220_v23 = vmul.f32 %v5579_v2, %v4001_v20  ;;  %vm2827_vm14 = vcmp.ge.f32.partialorder %v2631_v19, 0.0  ;;  %v2652_v24 = vadd.f32 %v5563_v56, %v4529_v21 }
 0x277   : > { %v3999_v25 = vsel %vm2827_vm14, 1.0, %v4570_v48  ;;  %v2643_v26 = vpop.f32.mrf.mxu1 }
 0x278   : > { %3480 = vst.msk [vmem:[%s5189_s27 + $0x340] sm:$0xff] %vm1984_vm4, %v3352_v22  ;;  %v3355_v27 = vadd.f32 %v5595_v12, %v3220_v23  ;;  %v3218_v28 = vmul.f32 %v5579_v2, %v3999_v25  ;;  %vm2832_vm15 = vcmp.ge.f32.partialorder %v2652_v24, 0.0  ;;  %v2644_v13 = vadd.f32 %v5563_v56, %v2643_v26 }
 0x279   : > { %v4004_v29 = vsel %vm2832_vm15, 1.0, %v4570_v48  ;;  %v4530_v30 = vpop.f32.mrf.mxu1 }
 0x27a   : > { %3483 = vst.msk [vmem:[%s5189_s27 + $0x358] sm:$0xff] %vm1984_vm4, %v3355_v27  ;;  %v3353_v31 = vadd.f32 %v5595_v12, %v3218_v28  ;;  %v3223_v32 = vmul.f32 %v5579_v2, %v4004_v29  ;;  %vm2830_vm0 = vcmp.ge.f32.partialorder %v2644_v13, 0.0  ;;  %v2655_v33 = vadd.f32 %v5563_v56, %v4530_v30 }
 0x27b   : > { %v4002_v34 = vsel %vm2830_vm0, 1.0, %v4570_v48  ;;  %v2646_v35 = vpop.f32.mrf.mxu1 }
 0x27c   : > { %3481 = vst.msk [vmem:[%s5189_s27 + $0x348] sm:$0xff] %vm1984_vm4, %v3353_v31  ;;  %v3358_v36 = vadd.f32 %v5595_v12, %v3223_v32  ;;  %v3221_v38 = vmul.f32 %v5579_v2, %v4002_v34  ;;  %vm2833_vm2 = vcmp.ge.f32.partialorder %v2655_v33, 0.0  ;;  %v2647_v39 = vadd.f32 %v5563_v56, %v2646_v35 }
 0x27d   : > { %v4005_v40 = vsel %vm2833_vm2, 1.0, %v4570_v48 }
 0x27e   : > { %3486 = vst.msk [vmem:[%s5189_s27 + $0x370] sm:$0xff] %vm1984_vm4, %v3358_v36  ;;  %v3356_v41 = vadd.f32 %v5595_v12, %v3221_v38  ;;  %v3224_v42 = vmul.f32 %v5579_v2, %v4005_v40  ;;  %vm2831_vm3 = vcmp.ge.f32.partialorder %v2647_v39, 0.0 }
 0x27f   : > { %v4003_v43 = vsel %vm2831_vm3, 1.0, %v4570_v48  ;;  %v4533_v44 = vpop.f32.mrf.mxu1 }
 0x280   : > { %3484 = vst.msk [vmem:[%s5189_s27 + $0x360] sm:$0xff] %vm1984_vm4, %v3356_v41  ;;  %v3359_v45 = vadd.f32 %v5595_v12, %v3224_v42  ;;  %v3222_v46 = vmul.f32 %v5579_v2, %v4003_v43  ;;  %v2668_v47 = vadd.f32 %v5563_v56, %v4533_v44 }
 0x281   : > { %v2659_v49 = vpop.f32.mrf.mxu1 }
 0x282   : > { %3487 = vst.msk [vmem:[%s5189_s27 + $0x378] sm:$0xff] %vm1984_vm4, %v3359_v45  ;;  %v3357_v50 = vadd.f32 %v5595_v12, %v3222_v46  ;;  %vm2836_vm5 = vcmp.ge.f32.partialorder %v2668_v47, 0.0  ;;  %v2660_v52 = vadd.f32 %v5563_v56, %v2659_v49 }
 0x283   : > { %v4008_v53 = vsel %vm2836_vm5, 1.0, %v4570_v48  ;;  %v4534_v54 = vpop.f32.mrf.mxu1 }
 0x284   : > { %3485 = vst.msk [vmem:[%s5189_s27 + $0x368] sm:$0xff] %vm1984_vm4, %v3357_v50  ;;  %v3227_v55 = vmul.f32 %v5579_v2, %v4008_v53  ;;  %vm2834_vm6 = vcmp.ge.f32.partialorder %v2660_v52, 0.0  ;;  %v2671_v57 = vadd.f32 %v5563_v56, %v4534_v54 }
 0x285   : > { %v4006_v51 = vsel %vm2834_vm6, 1.0, %v4570_v48  ;;  %v2662_v58 = vpop.f32.mrf.mxu1 }
 0x286   : > { %v3362_v59 = vadd.f32 %v5595_v12, %v3227_v55  ;;  %v3225_v61 = vmul.f32 %v5579_v2, %v4006_v51  ;;  %vm2837_vm1 = vcmp.ge.f32.partialorder %v2671_v57, 0.0  ;;  %v2663_v62 = vadd.f32 %v5563_v56, %v2662_v58 }
 0x287   : > { %v4009_v63 = vsel %vm2837_vm1, 1.0, %v4570_v48 }
 0x288   : > { %3490 = vst.msk [vmem:[%s5189_s27 + $0x390] sm:$0xff] %vm1984_vm4, %v3362_v59  ;;  %v3360_v0 = vadd.f32 %v5595_v12, %v3225_v61  ;;  %v3228_v1 = vmul.f32 %v5579_v2, %v4009_v63  ;;  %vm2835_vm7 = vcmp.ge.f32.partialorder %v2663_v62, 0.0  ;;  %v4537_v60 = vpop.f32.mrf.mxu1 }
 0x289   : > { %v4007_v4 = vsel %vm2835_vm7, 1.0, %v4570_v48  ;;  %v2684_v7 = vadd.f32 %v5563_v56, %v4537_v60 }
 0x28a   : > { %3488 = vst.msk [vmem:[%s5189_s27 + $0x380] sm:$0xff] %vm1984_vm4, %v3360_v0  ;;  %v3363_v5 = vadd.f32 %v5595_v12, %v3228_v1  ;;  %v3226_v6 = vmul.f32 %v5579_v2, %v4007_v4  ;;  %v2675_v8 = vpop.f32.mrf.mxu1 }
 0x28b   : > { %vm2840_vm8 = vcmp.ge.f32.partialorder %v2684_v7, 0.0  ;;  %v2676_v10 = vadd.f32 %v5563_v56, %v2675_v8 }
 0x28c   : > { %3491 = vst.msk [vmem:[%s5189_s27 + $0x398] sm:$0xff] %vm1984_vm4, %v3363_v5  ;;  %v3361_v9 = vadd.f32 %v5595_v12, %v3226_v6  ;;  %v4012_v11 = vsel %vm2840_vm8, 1.0, %v4570_v48  ;;  %v4538_v14 = vpop.f32.mrf.mxu1 }
 0x28d   : > { %v3231_v3 = vmul.f32 %v5579_v2, %v4012_v11  ;;  %vm2838_vm9 = vcmp.ge.f32.partialorder %v2676_v10, 0.0  ;;  %v2687_v15 = vadd.f32 %v5563_v56, %v4538_v14 }
 0x28e   : > { %3489 = vst.msk [vmem:[%s5189_s27 + $0x388] sm:$0xff] %vm1984_vm4, %v3361_v9  ;;  %v4010_v37 = vsel %vm2838_vm9, 1.0, %v4570_v48  ;;  %v2678_v16 = vpop.f32.mrf.mxu1 }
 0x28f   : > { %v3366_v17 = vadd.f32 %v5595_v12, %v3231_v3  ;;  %v3229_v18 = vmul.f32 %v5579_v2, %v4010_v37  ;;  %vm2841_vm10 = vcmp.ge.f32.partialorder %v2687_v15, 0.0  ;;  %v2679_v19 = vadd.f32 %v5563_v56, %v2678_v16 }
 0x290   : > { %v4013_v20 = vsel %vm2841_vm10, 1.0, %v4570_v48  ;;  %v4541_v21 = vpop.f32.mrf.mxu1 }
 0x291   : > { %3494 = vst.msk [vmem:[%s5189_s27 + $0x3b0] sm:$0xff] %vm1984_vm4, %v3366_v17  ;;  %v3364_v22 = vadd.f32 %v5595_v12, %v3229_v18  ;;  %v3232_v23 = vmul.f32 %v5579_v2, %v4013_v20  ;;  %vm2839_vm11 = vcmp.ge.f32.partialorder %v2679_v19, 0.0  ;;  %v2700_v24 = vadd.f32 %v5563_v56, %v4541_v21 }
 0x292   : > { %v4011_v25 = vsel %vm2839_vm11, 1.0, %v4570_v48  ;;  %v2691_v26 = vpop.f32.mrf.mxu1 }
 0x293   : > { %3492 = vst.msk [vmem:[%s5189_s27 + $0x3a0] sm:$0xff] %vm1984_vm4, %v3364_v22  ;;  %v3367_v27 = vadd.f32 %v5595_v12, %v3232_v23  ;;  %v3230_v28 = vmul.f32 %v5579_v2, %v4011_v25  ;;  %vm2844_vm12 = vcmp.ge.f32.partialorder %v2700_v24, 0.0  ;;  %v2692_v13 = vadd.f32 %v5563_v56, %v2691_v26 }
 0x294   : > { %v4016_v29 = vsel %vm2844_vm12, 1.0, %v4570_v48  ;;  %v4542_v30 = vpop.f32.mrf.mxu1 }
 0x295   : > { %3495 = vst.msk [vmem:[%s5189_s27 + $0x3b8] sm:$0xff] %vm1984_vm4, %v3367_v27  ;;  %v3365_v31 = vadd.f32 %v5595_v12, %v3230_v28  ;;  %v3235_v32 = vmul.f32 %v5579_v2, %v4016_v29  ;;  %vm2842_vm13 = vcmp.ge.f32.partialorder %v2692_v13, 0.0  ;;  %v2703_v33 = vadd.f32 %v5563_v56, %v4542_v30 }
 0x296   : > { %v4014_v34 = vsel %vm2842_vm13, 1.0, %v4570_v48  ;;  %v2694_v35 = vpop.f32.mrf.mxu1 }
 0x297   : > { %3493 = vst.msk [vmem:[%s5189_s27 + $0x3a8] sm:$0xff] %vm1984_vm4, %v3365_v31  ;;  %v3370_v36 = vadd.f32 %v5595_v12, %v3235_v32  ;;  %v3233_v38 = vmul.f32 %v5579_v2, %v4014_v34  ;;  %vm2845_vm14 = vcmp.ge.f32.partialorder %v2703_v33, 0.0  ;;  %v2695_v39 = vadd.f32 %v5563_v56, %v2694_v35 }
 0x298   : > { %v4017_v40 = vsel %vm2845_vm14, 1.0, %v4570_v48  ;;  %v4545_v41 = vpop.f32.mrf.mxu1 }
 0x299   : > { %3498 = vst.msk [vmem:[%s5189_s27 + $0x3d0] sm:$0xff] %vm1984_vm4, %v3370_v36  ;;  %v3368_v42 = vadd.f32 %v5595_v12, %v3233_v38  ;;  %v3236_v43 = vmul.f32 %v5579_v2, %v4017_v40  ;;  %vm2843_vm15 = vcmp.ge.f32.partialorder %v2695_v39, 0.0  ;;  %v2716_v44 = vadd.f32 %v5563_v56, %v4545_v41 }
 0x29a   : > { %v4015_v45 = vsel %vm2843_vm15, 1.0, %v4570_v48  ;;  %v2707_v46 = vpop.f32.mrf.mxu1 }
 0x29b   : > { %3496 = vst.msk [vmem:[%s5189_s27 + $0x3c0] sm:$0xff] %vm1984_vm4, %v3368_v42  ;;  %v3371_v47 = vadd.f32 %v5595_v12, %v3236_v43  ;;  %v3234_v49 = vmul.f32 %v5579_v2, %v4015_v45  ;;  %vm2848_vm0 = vcmp.ge.f32.partialorder %v2716_v44, 0.0  ;;  %v2708_v50 = vadd.f32 %v5563_v56, %v2707_v46 }
 0x29c   : > { %v4020_v52 = vsel %vm2848_vm0, 1.0, %v4570_v48  ;;  %v4546_v53 = vpop.f32.mrf.mxu1 }
 0x29d   : > { %3499 = vst.msk [vmem:[%s5189_s27 + $0x3d8] sm:$0xff] %vm1984_vm4, %v3371_v47  ;;  %v3369_v54 = vadd.f32 %v5595_v12, %v3234_v49  ;;  %v3239_v55 = vmul.f32 %v5579_v2, %v4020_v52  ;;  %vm2846_vm2 = vcmp.ge.f32.partialorder %v2708_v50, 0.0  ;;  %v2719_v57 = vadd.f32 %v5563_v56, %v4546_v53 }
 0x29e   : > { %v4018_v51 = vsel %vm2846_vm2, 1.0, %v4570_v48  ;;  %v2710_v58 = vpop.f32.mrf.mxu1 }
 0x29f   : > { %3497 = vst.msk [vmem:[%s5189_s27 + $0x3c8] sm:$0xff] %vm1984_vm4, %v3369_v54  ;;  %v3374_v59 = vadd.f32 %v5595_v12, %v3239_v55  ;;  %v3237_v61 = vmul.f32 %v5579_v2, %v4018_v51  ;;  %vm2849_vm3 = vcmp.ge.f32.partialorder %v2719_v57, 0.0  ;;  %v2711_v62 = vadd.f32 %v5563_v56, %v2710_v58 }
 0x2a0   : > { %v4021_v63 = vsel %vm2849_vm3, 1.0, %v4570_v48 }
 0x2a1   : > { %3502 = vst.msk [vmem:[%s5189_s27 + $0x3f0] sm:$0xff] %vm1984_vm4, %v3374_v59  ;;  %v3372_v0 = vadd.f32 %v5595_v12, %v3237_v61  ;;  %v3240_v1 = vmul.f32 %v5579_v2, %v4021_v63  ;;  %vm2847_vm5 = vcmp.ge.f32.partialorder %v2711_v62, 0.0 }
 0x2a2   : > { %v4019_v4 = vsel %vm2847_vm5, 1.0, %v4570_v48 }
 0x2a3   : > { %3500 = vst.msk [vmem:[%s5189_s27 + $0x3e0] sm:$0xff] %vm1984_vm4, %v3372_v0  ;;  %v3375_v60 = vadd.f32 %v5595_v12, %v3240_v1  ;;  %v3238_v5 = vmul.f32 %v5579_v2, %v4019_v4 }
 0x2a5   : > { %3503 = vst.msk [vmem:[%s5189_s27 + $0x3f8] sm:$0xff] %vm1984_vm4, %v3375_v60  ;;  %v3373_v56 = vadd.f32 %v5595_v12, %v3238_v5 }
 0x2a7   : > { %3501 = vst.msk [vmem:[%s5189_s27 + $0x3e8] sm:$0xff] %vm1984_vm4, %v3373_v56 }
 0x2a8 PF: > { %s17_s24 = sadd.s32 1, %s4568_s24  }
 0x2a9   : > { %p14_p4 = scmp.ge.s32.totalorder %s17_s24, 6  }
 0x2ab   :  { %16 = sbr.rel (!%p14_p4) target bundleno = 1 (0x1), region = 78 }

</bundles_post_ra>
